<compile_context>
chip_gen: v5e
topology: v5e:2x2
jax: 0.10.0
libtpu: 0.0.40
codegen_flags: <defaults>
</compile_context>

<pallas_src>
import functools

import numpy as np
import jax
import jax.numpy as jnp
from jax.experimental import pallas as pl
from jax.experimental.pallas import tpu as pltpu

MULTIPLIER = 4        # DARTS cell: 4 intermediate nodes, concat -> 4*C channels
STEM_MULTIPLIER = 3


# ---------------------------------------------------------------------------
# Fused whole-network kernel (one grid step == one batch element)
# ---------------------------------------------------------------------------
def _network_kernel(x_ref, masks_ref, *refs, H, W, n_cells):
    """Whole-network forward for one batch element.

    Feature maps live as (C, H*W) float32: channels on sublanes, flattened
    spatial on the lane axis (lane-dense).

      x_ref:     (1, 3, H*W)
      masks_ref: (9, H*W)   0/1 validity per 3x3 tap (in-kernel zero padding)
      refs:      stem_w, [pre0, pre1, nodes_w] * n_cells, up_w, wfold, out_ref
      out_ref:   (1, scale*scale*n_colors, H*W)
    """
    out_ref = refs[-1]
    w_refs = refs[:-1]
    HW = H * W
    masks = masks_ref[...]                          # (9, HW)

    def im2col(xf, relu=False):
        # (C, HW) -> (9*C, HW) patch matrix of the 3x3 neighborhood (zero pad).
        if relu:
            xf = jnp.maximum(xf, 0.0)               # ReLU hoisted out of tap loop
        C = xf.shape[0]
        zpad = jnp.zeros((C, W + 1), xf.dtype)
        xpad = jnp.concatenate([zpad, xf, zpad], axis=1)   # (C, HW + 2W + 2)
        cols = []
        k = 0
        for dh in (-1, 0, 1):
            for dw in (-1, 0, 1):
                if dh == 0 and dw == 0:
                    cols.append(xf)
                else:
                    s = dh * W + dw
                    col = xpad[:, W + 1 + s: W + 1 + s + HW]
                    if dw != 0:                      # mask row-wrap contamination
                        col = col * masks[k:k + 1, :]
                    cols.append(col)
                k += 1
        return jnp.concatenate(cols, axis=0)         # (9*C, HW)

    def mm(w, p):
        # (Cout, K) @ (K, HW) -> lane-dense (Cout, HW) on the MXU
        return jnp.dot(w, p, preferred_element_type=jnp.float32)

    # ---- stem: 3x3 conv, 3 -> stem_multiplier*C channels (no bias) ----
    x = x_ref[0]                                     # (3, HW)
    s0 = s1 = mm(w_refs[0][...], im2col(x))

    # ---- DARTS cells ----
    idx = 1
    for _ in range(n_cells):
        pre0_w = w_refs[idx][...]                    # (C, C_prev_prev)
        pre1_w = w_refs[idx + 1][...]                # (C, C_prev)
        nodes_w = w_refs[idx + 2][...]               # (4*C, 18*C)
        idx += 3
        C = pre0_w.shape[0]

        # preprocess: ReLU -> 1x1 conv (per-pixel matmul)
        states = [mm(pre0_w, jnp.maximum(s0, 0.0)),
                  mm(pre1_w, jnp.maximum(s1, 0.0))]

        pcols = {}                                   # im2col(relu(state)) cache

        def patches(j):
            if j not in pcols:
                pcols[j] = im2col(states[j], relu=True)
            return pcols[j]

        nodes = []
        for j in range(MULTIPLIER):
            # node_j = conv3x3(relu(states[j]), wa_j) + conv3x3(relu(states[j+1]), wb_j)
            wj = nodes_w[j * C:(j + 1) * C, :]                           # (C, 18*C)
            pj = jnp.concatenate([patches(j), patches(j + 1)], axis=0)   # (18*C, HW)
            node = mm(wj, pj)
            states.append(node)
            nodes.append(node)

        s0, s1 = s1, jnp.concatenate(nodes, axis=0)   # channel concat -> (4*C, HW)

    # ---- upsampler conv: 3x3, C_prev -> C_prev*scale^2 ----
    up = mm(w_refs[idx][...], im2col(s1))

    # ---- fused PixelShuffle(scale) + 3x3 channel_reducer conv ----
    out_ref[0] = mm(w_refs[idx + 1][...], im2col(up))


# ---------------------------------------------------------------------------
# Host-side weight folding / mask construction
# ---------------------------------------------------------------------------
def _fold3x3(w):
    """(Cout, Cin, 3, 3) torch layout -> (Cout, 9*Cin) im2col layout
    (tap-major over (kh, kw), input channel minor)."""
    co, ci = w.shape[0], w.shape[1]
    return jnp.transpose(w, (0, 2, 3, 1)).reshape(co, 9 * ci)


def _fold_shuffle_reduce(w_reduce, r):
    """Fold PixelShuffle(r) followed by a 3x3 conv (weight (n_colors, C, 3, 3))
    into a single 3x3 conv over the coarse grid acting on the pre-shuffle
    C*r*r-channel map, producing r*r "output parity" copies of each channel."""
    wr = np.asarray(w_reduce, dtype=np.float32)
    n_colors, C = wr.shape[0], wr.shape[1]
    cup_total = C * r * r
    out = np.zeros((r * r * n_colors, 9 * cup_total), np.float32)
    for py in range(r):
        for px in range(r):
            p = py * r + px
            for dy in (-1, 0, 1):
                for dx in (-1, 0, 1):
                    ty, tx = py + dy, px + dx
                    ah, iv = ty // r, ty % r      # coarse row offset / sub-pixel row
                    aw, iu = tx // r, tx % r
                    k = (ah + 1) * 3 + (aw + 1)
                    for o in range(n_colors):
                        for c in range(C):
                            cup = c * r * r + iv * r + iu   # PixelShuffle channel order
                            out[p * n_colors + o, k * cup_total + cup] = \
                                wr[o, c, dy + 1, dx + 1]
    return jnp.asarray(out)


def _make_masks(H, W):
    hh = np.repeat(np.arange(H), W)
    ww = np.tile(np.arange(W), H)
    rows = []
    for dh in (-1, 0, 1):
        for dw in (-1, 0, 1):
            valid = ((hh + dh >= 0) & (hh + dh < H) &
                     (ww + dw >= 0) & (ww + dw < W))
            rows.append(valid.astype(np.float32))
    return jnp.asarray(np.stack(rows, axis=0))        # (9, H*W)


# ---------------------------------------------------------------------------
# Parameter init (torch-layout, deterministic) and folding
# ---------------------------------------------------------------------------
def _conv_w(key, cout, cin, kh, kw):
    std = (2.0 / (kh * kw * cin)) ** 0.5
    return std * jax.random.normal(key, (cout, cin, kh, kw), jnp.float32)


def init_params(key, C=4, n_colors=3, scale=2, n_cells=2):
    """PyTorch-layout (Cout, Cin, kh, kw) conv weights, all bias-free."""
    keys = iter(jax.random.split(key, 8 + (2 + 2 * MULTIPLIER) * n_cells))
    params = {}
    C_curr = STEM_MULTIPLIER * C
    params["stem"] = _conv_w(next(keys), C_curr, 3, 3, 3)
    C_pp, C_p, C_curr = C_curr, C_curr, C
    cells = []
    for _ in range(n_cells):
        cells.append({
            "pre0": _conv_w(next(keys), C_curr, C_pp, 1, 1),
            "pre1": _conv_w(next(keys), C_curr, C_p, 1, 1),
            "nodes": [(_conv_w(next(keys), C_curr, C_curr, 3, 3),
                       _conv_w(next(keys), C_curr, C_curr, 3, 3))
                      for _ in range(MULTIPLIER)],
        })
        C_pp, C_p = C_p, MULTIPLIER * C_curr
    params["cells"] = cells
    params["up"] = _conv_w(next(keys), C_p * scale * scale, C_p, 3, 3)
    params["reduce"] = _conv_w(next(keys), n_colors, C_p, 3, 3)
    return params


def fold_params(params, scale):
    """Pre-fold all conv weights into the kernel's im2col layouts (done once)."""
    ws = [_fold3x3(params["stem"])]
    for cell in params["cells"]:
        pre0 = cell["pre0"][:, :, 0, 0]
        pre1 = cell["pre1"][:, :, 0, 0]
        nodes_w = jnp.concatenate(
            [jnp.concatenate([_fold3x3(wa), _fold3x3(wb)], axis=1)
             for wa, wb in cell["nodes"]], axis=0)           # (4*C, 18*C)
        ws += [pre0, pre1, nodes_w]
    ws.append(_fold3x3(params["up"]))
    ws.append(_fold_shuffle_reduce(params["reduce"], scale))
    meta = {"n_cells": len(params["cells"]),
            "n_colors": int(params["reduce"].shape[0]),
            "scale": int(scale)}
    return ws, meta


# ---------------------------------------------------------------------------
# Forward pass (single pallas_call + tiny XLA epilogue)
# ---------------------------------------------------------------------------
def network_forward(weights, meta, x_nchw, drop_path_prob=0.0):
    """x_nchw: (N, 3, H, W)  ->  (N, n_colors, H*scale, W*scale)."""
    # TODO(synk): drop_path is identity at prob=0 / eval; BatchNorm omitted.
    del drop_path_prob
    n_cells, n_colors, r = meta["n_cells"], meta["n_colors"], meta["scale"]
    N, _, H, W = x_nchw.shape
    HW = H * W

    x_flat = x_nchw.reshape(N, x_nchw.shape[1], HW).astype(jnp.float32)  # free reshape
    masks = _make_masks(H, W)

    kern = functools.partial(_network_kernel, H=H, W=W, n_cells=n_cells)

    # TODO(synk): for large H*W (real SR resolutions) these whole-image blocks
    # must become H-tiled blocks with a 1-row halo to respect VMEM limits.
    in_specs = [pl.BlockSpec((1,) + x_flat.shape[1:], lambda n: (n, 0, 0)),
                pl.BlockSpec(masks.shape, lambda n: (0, 0))]
    in_specs += [pl.BlockSpec(w.shape, lambda n: (0, 0)) for w in weights]

    out_flat = pl.pallas_call(
        kern,
        grid=(N,),
        in_specs=in_specs,
        out_specs=pl.BlockSpec((1, r * r * n_colors, HW), lambda n: (n, 0, 0)),
        out_shape=jax.ShapeDtypeStruct((N, r * r * n_colors, HW), jnp.float32),
        compiler_params=pltpu.CompilerParams(
            dimension_semantics=("parallel",)),   # shard batch over both TCs on v7x
    )(x_flat, masks, *weights)

    # Un-interleave the r*r output parities (tiny XLA epilogue, ~tens of KB).
    out = out_flat.reshape(N, r, r, n_colors, H, W)
    out = jnp.transpose(out, (0, 3, 4, 1, 5, 2))
    return out.reshape(N, n_colors, H * r, W * r)


# ---------------------------------------------------------------------------
# Pure-JAX reference (same assumed architecture) for validation
# ---------------------------------------------------------------------------
def _conv2d_ref(x, w, pad):
    return jax.lax.conv_general_dilated(
        x, w, window_strides=(1, 1), padding=[(pad, pad), (pad, pad)],
        dimension_numbers=("NCHW", "OIHW", "NCHW"),
        precision=jax.lax.Precision.HIGHEST)


def reference_forward(params, x, scale):
    s0 = s1 = _conv2d_ref(x, params["stem"], 1)
    for cell in params["cells"]:
        pre0 = _conv2d_ref(jax.nn.relu(s0), cell["pre0"], 0)
        pre1 = _conv2d_ref(jax.nn.relu(s1), cell["pre1"], 0)
        states = [pre0, pre1]
        nodes = []
        for wa, wb in cell["nodes"]:
            node = (_conv2d_ref(jax.nn.relu(states[-2]), wa, 1) +
                    _conv2d_ref(jax.nn.relu(states[-1]), wb, 1))
            states.append(node)
            nodes.append(node)
        s0, s1 = s1, jnp.concatenate(nodes, axis=1)
    up = _conv2d_ref(s1, params["up"], 1)
    N, crr, H, W = up.shape
    r = scale
    c = crr // (r * r)
    up = up.reshape(N, c, r, r, H, W).transpose(0, 1, 4, 2, 5, 3)
    up = up.reshape(N, c, H * r, W * r)
    return _conv2d_ref(up, params["reduce"], 1)


if __name__ == "__main__":
    key = jax.random.PRNGKey(0)
    pkey, xkey = jax.random.split(key)

    C, n_colors, scale, n_cells = 4, 3, 2, 2
    params = init_params(pkey, C=C, n_colors=n_colors, scale=scale, n_cells=n_cells)
    weights, meta = fold_params(params, scale)

    x = jax.random.normal(xkey, (2, 3, 16, 16), jnp.float32)     # NCHW, like PyTorch

    fwd = jax.jit(functools.partial(network_forward, weights, meta))
    out = jax.block_until_ready(fwd(x))

    assert out.shape == (2, n_colors, 16 * scale, 16 * scale), out.shape
    assert bool(jnp.all(jnp.isfinite(out)))

    ref = reference_forward(params, x, scale)
    err = float(jnp.max(jnp.abs(out - ref)))
    assert err < 2e-2, f"max abs error vs reference: {err}"

    print("KERNEL_OK")
</pallas_src>

<mosaic_0001>
module attributes {stable_mosaic.version = 11 : i64} {
  func.func @_network_kernel(%arg0: i32, %arg1: memref<1x3x256xf32, #tpu.memory_space<vmem>>, %arg2: memref<9x256xf32, #tpu.memory_space<vmem>>, %arg3: memref<12x27xf32, #tpu.memory_space<vmem>>, %arg4: memref<4x12xf32, #tpu.memory_space<vmem>>, %arg5: memref<4x12xf32, #tpu.memory_space<vmem>>, %arg6: memref<16x72xf32, #tpu.memory_space<vmem>>, %arg7: memref<4x12xf32, #tpu.memory_space<vmem>>, %arg8: memref<4x16xf32, #tpu.memory_space<vmem>>, %arg9: memref<16x72xf32, #tpu.memory_space<vmem>>, %arg10: memref<64x144xf32, #tpu.memory_space<vmem>>, %arg11: memref<12x576xf32, #tpu.memory_space<vmem>>, %arg12: memref<1x12x256xf32, #tpu.memory_space<vmem>>) attributes {dimension_semantics = [#tpu.dimension_semantics<parallel>], iteration_bounds = array<i64: 2>, scalar_prefetch = 0 : i64, scratch_operands = 0 : i64, tpu.core_type = #tpu.core_type<tc>, window_params = [{transform_indices = @transform_0, window_bounds = array<i64: 1, 3, 256>}, {pipeline_mode = #tpu.pipeline_mode<synchronous>, transform_indices = @transform_1, window_bounds = array<i64: 9, 256>}, {pipeline_mode = #tpu.pipeline_mode<synchronous>, transform_indices = @transform_2, window_bounds = array<i64: 12, 27>}, {pipeline_mode = #tpu.pipeline_mode<synchronous>, transform_indices = @transform_3, window_bounds = array<i64: 4, 12>}, {pipeline_mode = #tpu.pipeline_mode<synchronous>, transform_indices = @transform_4, window_bounds = array<i64: 4, 12>}, {pipeline_mode = #tpu.pipeline_mode<synchronous>, transform_indices = @transform_5, window_bounds = array<i64: 16, 72>}, {pipeline_mode = #tpu.pipeline_mode<synchronous>, transform_indices = @transform_6, window_bounds = array<i64: 4, 12>}, {pipeline_mode = #tpu.pipeline_mode<synchronous>, transform_indices = @transform_7, window_bounds = array<i64: 4, 16>}, {pipeline_mode = #tpu.pipeline_mode<synchronous>, transform_indices = @transform_8, window_bounds = array<i64: 16, 72>}, {pipeline_mode = #tpu.pipeline_mode<synchronous>, transform_indices = @transform_9, window_bounds = array<i64: 64, 144>}, {pipeline_mode = #tpu.pipeline_mode<synchronous>, transform_indices = @transform_10, window_bounds = array<i64: 12, 576>}, {transform_indices = @transform_11, window_bounds = array<i64: 1, 12, 256>}]} {
    %c0 = arith.constant 0 : index
    %c0_0 = arith.constant 0 : index
    %0 = vector.load %arg2[%c0, %c0_0] : memref<9x256xf32, #tpu.memory_space<vmem>>, vector<9x256xf32>
    %c0_1 = arith.constant 0 : index
    %c0_2 = arith.constant 0 : index
    %c0_3 = arith.constant 0 : index
    %1 = vector.load %arg1[%c0_1, %c0_2, %c0_3] : memref<1x3x256xf32, #tpu.memory_space<vmem>>, vector<1x3x256xf32>
    %2 = vector.shape_cast %1 : vector<1x3x256xf32> to vector<3x256xf32>
    %c0_4 = arith.constant 0 : index
    %c0_5 = arith.constant 0 : index
    %3 = vector.load %arg3[%c0_4, %c0_5] : memref<12x27xf32, #tpu.memory_space<vmem>>, vector<12x27xf32>
    %cst = arith.constant 0.000000e+00 : f32
    %4 = vector.broadcast %cst : f32 to vector<3x17xf32>
    %5 = tpu.concatenate %4, %2, %4 in 1 : vector<3x17xf32>, vector<3x256xf32>, vector<3x17xf32> -> vector<3x290xf32>
    %6 = vector.extract_strided_slice %5 {offsets = [0, 0], sizes = [3, 256], strides = [1, 1]} : vector<3x290xf32> to vector<3x256xf32>
    %7 = vector.extract_strided_slice %0 {offsets = [0, 0], sizes = [1, 256], strides = [1, 1]} : vector<9x256xf32> to vector<1x256xf32>
    %8 = vector.broadcast %7 : vector<1x256xf32> to vector<3x256xf32>
    %9 = arith.mulf %6, %8 : vector<3x256xf32>
    %10 = vector.extract_strided_slice %5 {offsets = [0, 1], sizes = [3, 256], strides = [1, 1]} : vector<3x290xf32> to vector<3x256xf32>
    %11 = vector.extract_strided_slice %5 {offsets = [0, 2], sizes = [3, 256], strides = [1, 1]} : vector<3x290xf32> to vector<3x256xf32>
    %12 = vector.extract_strided_slice %0 {offsets = [2, 0], sizes = [1, 256], strides = [1, 1]} : vector<9x256xf32> to vector<1x256xf32>
    %13 = vector.broadcast %12 : vector<1x256xf32> to vector<3x256xf32>
    %14 = arith.mulf %11, %13 : vector<3x256xf32>
    %15 = vector.extract_strided_slice %5 {offsets = [0, 16], sizes = [3, 256], strides = [1, 1]} : vector<3x290xf32> to vector<3x256xf32>
    %16 = vector.extract_strided_slice %0 {offsets = [3, 0], sizes = [1, 256], strides = [1, 1]} : vector<9x256xf32> to vector<1x256xf32>
    %17 = vector.broadcast %16 : vector<1x256xf32> to vector<3x256xf32>
    %18 = arith.mulf %15, %17 : vector<3x256xf32>
    %19 = vector.extract_strided_slice %5 {offsets = [0, 18], sizes = [3, 256], strides = [1, 1]} : vector<3x290xf32> to vector<3x256xf32>
    %20 = vector.extract_strided_slice %0 {offsets = [5, 0], sizes = [1, 256], strides = [1, 1]} : vector<9x256xf32> to vector<1x256xf32>
    %21 = vector.broadcast %20 : vector<1x256xf32> to vector<3x256xf32>
    %22 = arith.mulf %19, %21 : vector<3x256xf32>
    %23 = vector.extract_strided_slice %5 {offsets = [0, 32], sizes = [3, 256], strides = [1, 1]} : vector<3x290xf32> to vector<3x256xf32>
    %24 = vector.extract_strided_slice %0 {offsets = [6, 0], sizes = [1, 256], strides = [1, 1]} : vector<9x256xf32> to vector<1x256xf32>
    %25 = vector.broadcast %24 : vector<1x256xf32> to vector<3x256xf32>
    %26 = arith.mulf %23, %25 : vector<3x256xf32>
    %27 = vector.extract_strided_slice %5 {offsets = [0, 33], sizes = [3, 256], strides = [1, 1]} : vector<3x290xf32> to vector<3x256xf32>
    %28 = vector.extract_strided_slice %5 {offsets = [0, 34], sizes = [3, 256], strides = [1, 1]} : vector<3x290xf32> to vector<3x256xf32>
    %29 = vector.extract_strided_slice %0 {offsets = [8, 0], sizes = [1, 256], strides = [1, 1]} : vector<9x256xf32> to vector<1x256xf32>
    %30 = vector.broadcast %29 : vector<1x256xf32> to vector<3x256xf32>
    %31 = arith.mulf %28, %30 : vector<3x256xf32>
    %32 = tpu.concatenate %9, %10, %14, %18, %2, %22, %26, %27, %31 in 0 : vector<3x256xf32>, vector<3x256xf32>, vector<3x256xf32>, vector<3x256xf32>, vector<3x256xf32>, vector<3x256xf32>, vector<3x256xf32>, vector<3x256xf32>, vector<3x256xf32> -> vector<27x256xf32>
    %cst_6 = arith.constant dense<0.000000e+00> : vector<12x256xf32>
    %33 = tpu.matmul %3, %32, %cst_6 {dimension_numbers = #tpu.dot_dimension_numbers<[1], [0], [0], [1], [0, 0, 1, 1], [], []>} : vector<12x27xf32>, vector<27x256xf32>, vector<12x256xf32> -> vector<12x256xf32>
    %c0_7 = arith.constant 0 : index
    %c0_8 = arith.constant 0 : index
    %34 = vector.load %arg4[%c0_7, %c0_8] : memref<4x12xf32, #tpu.memory_space<vmem>>, vector<4x12xf32>
    %c0_9 = arith.constant 0 : index
    %c0_10 = arith.constant 0 : index
    %35 = vector.load %arg5[%c0_9, %c0_10] : memref<4x12xf32, #tpu.memory_space<vmem>>, vector<4x12xf32>
    %c0_11 = arith.constant 0 : index
    %c0_12 = arith.constant 0 : index
    %36 = vector.load %arg6[%c0_11, %c0_12] : memref<16x72xf32, #tpu.memory_space<vmem>>, vector<16x72xf32>
    %cst_13 = arith.constant 0.000000e+00 : f32
    %37 = vector.broadcast %cst_13 : f32 to vector<12x256xf32>
    %38 = arith.maximumf %33, %37 : vector<12x256xf32>
    %cst_14 = arith.constant dense<0.000000e+00> : vector<4x256xf32>
    %39 = tpu.matmul %34, %38, %cst_14 {dimension_numbers = #tpu.dot_dimension_numbers<[1], [0], [0], [1], [0, 0, 1, 1], [], []>} : vector<4x12xf32>, vector<12x256xf32>, vector<4x256xf32> -> vector<4x256xf32>
    %cst_15 = arith.constant 0.000000e+00 : f32
    %40 = vector.broadcast %cst_15 : f32 to vector<12x256xf32>
    %41 = arith.maximumf %33, %40 : vector<12x256xf32>
    %cst_16 = arith.constant dense<0.000000e+00> : vector<4x256xf32>
    %42 = tpu.matmul %35, %41, %cst_16 {dimension_numbers = #tpu.dot_dimension_numbers<[1], [0], [0], [1], [0, 0, 1, 1], [], []>} : vector<4x12xf32>, vector<12x256xf32>, vector<4x256xf32> -> vector<4x256xf32>
    %43 = vector.extract_strided_slice %36 {offsets = [0, 0], sizes = [4, 72], strides = [1, 1]} : vector<16x72xf32> to vector<4x72xf32>
    %cst_17 = arith.constant 0.000000e+00 : f32
    %44 = vector.broadcast %cst_17 : f32 to vector<4x256xf32>
    %45 = arith.maximumf %39, %44 : vector<4x256xf32>
    %cst_18 = arith.constant 0.000000e+00 : f32
    %46 = vector.broadcast %cst_18 : f32 to vector<4x17xf32>
    %47 = tpu.concatenate %46, %45, %46 in 1 : vector<4x17xf32>, vector<4x256xf32>, vector<4x17xf32> -> vector<4x290xf32>
    %48 = vector.extract_strided_slice %47 {offsets = [0, 0], sizes = [4, 256], strides = [1, 1]} : vector<4x290xf32> to vector<4x256xf32>
    %49 = vector.extract_strided_slice %0 {offsets = [0, 0], sizes = [1, 256], strides = [1, 1]} : vector<9x256xf32> to vector<1x256xf32>
    %50 = vector.broadcast %49 : vector<1x256xf32> to vector<4x256xf32>
    %51 = arith.mulf %48, %50 : vector<4x256xf32>
    %52 = vector.extract_strided_slice %47 {offsets = [0, 1], sizes = [4, 256], strides = [1, 1]} : vector<4x290xf32> to vector<4x256xf32>
    %53 = vector.extract_strided_slice %47 {offsets = [0, 2], sizes = [4, 256], strides = [1, 1]} : vector<4x290xf32> to vector<4x256xf32>
    %54 = vector.extract_strided_slice %0 {offsets = [2, 0], sizes = [1, 256], strides = [1, 1]} : vector<9x256xf32> to vector<1x256xf32>
    %55 = vector.broadcast %54 : vector<1x256xf32> to vector<4x256xf32>
    %56 = arith.mulf %53, %55 : vector<4x256xf32>
    %57 = vector.extract_strided_slice %47 {offsets = [0, 16], sizes = [4, 256], strides = [1, 1]} : vector<4x290xf32> to vector<4x256xf32>
    %58 = vector.extract_strided_slice %0 {offsets = [3, 0], sizes = [1, 256], strides = [1, 1]} : vector<9x256xf32> to vector<1x256xf32>
    %59 = vector.broadcast %58 : vector<1x256xf32> to vector<4x256xf32>
    %60 = arith.mulf %57, %59 : vector<4x256xf32>
    %61 = vector.extract_strided_slice %47 {offsets = [0, 18], sizes = [4, 256], strides = [1, 1]} : vector<4x290xf32> to vector<4x256xf32>
    %62 = vector.extract_strided_slice %0 {offsets = [5, 0], sizes = [1, 256], strides = [1, 1]} : vector<9x256xf32> to vector<1x256xf32>
    %63 = vector.broadcast %62 : vector<1x256xf32> to vector<4x256xf32>
    %64 = arith.mulf %61, %63 : vector<4x256xf32>
    %65 = vector.extract_strided_slice %47 {offsets = [0, 32], sizes = [4, 256], strides = [1, 1]} : vector<4x290xf32> to vector<4x256xf32>
    %66 = vector.extract_strided_slice %0 {offsets = [6, 0], sizes = [1, 256], strides = [1, 1]} : vector<9x256xf32> to vector<1x256xf32>
    %67 = vector.broadcast %66 : vector<1x256xf32> to vector<4x256xf32>
    %68 = arith.mulf %65, %67 : vector<4x256xf32>
    %69 = vector.extract_strided_slice %47 {offsets = [0, 33], sizes = [4, 256], strides = [1, 1]} : vector<4x290xf32> to vector<4x256xf32>
    %70 = vector.extract_strided_slice %47 {offsets = [0, 34], sizes = [4, 256], strides = [1, 1]} : vector<4x290xf32> to vector<4x256xf32>
    %71 = vector.extract_strided_slice %0 {offsets = [8, 0], sizes = [1, 256], strides = [1, 1]} : vector<9x256xf32> to vector<1x256xf32>
    %72 = vector.broadcast %71 : vector<1x256xf32> to vector<4x256xf32>
    %73 = arith.mulf %70, %72 : vector<4x256xf32>
    %74 = tpu.concatenate %51, %52, %56, %60, %45, %64, %68, %69, %73 in 0 : vector<4x256xf32>, vector<4x256xf32>, vector<4x256xf32>, vector<4x256xf32>, vector<4x256xf32>, vector<4x256xf32>, vector<4x256xf32>, vector<4x256xf32>, vector<4x256xf32> -> vector<36x256xf32>
    %cst_19 = arith.constant 0.000000e+00 : f32
    %75 = vector.broadcast %cst_19 : f32 to vector<4x256xf32>
    %76 = arith.maximumf %42, %75 : vector<4x256xf32>
    %cst_20 = arith.constant 0.000000e+00 : f32
    %77 = vector.broadcast %cst_20 : f32 to vector<4x17xf32>
    %78 = tpu.concatenate %77, %76, %77 in 1 : vector<4x17xf32>, vector<4x256xf32>, vector<4x17xf32> -> vector<4x290xf32>
    %79 = vector.extract_strided_slice %78 {offsets = [0, 0], sizes = [4, 256], strides = [1, 1]} : vector<4x290xf32> to vector<4x256xf32>
    %80 = vector.extract_strided_slice %0 {offsets = [0, 0], sizes = [1, 256], strides = [1, 1]} : vector<9x256xf32> to vector<1x256xf32>
    %81 = vector.broadcast %80 : vector<1x256xf32> to vector<4x256xf32>
    %82 = arith.mulf %79, %81 : vector<4x256xf32>
    %83 = vector.extract_strided_slice %78 {offsets = [0, 1], sizes = [4, 256], strides = [1, 1]} : vector<4x290xf32> to vector<4x256xf32>
    %84 = vector.extract_strided_slice %78 {offsets = [0, 2], sizes = [4, 256], strides = [1, 1]} : vector<4x290xf32> to vector<4x256xf32>
    %85 = vector.extract_strided_slice %0 {offsets = [2, 0], sizes = [1, 256], strides = [1, 1]} : vector<9x256xf32> to vector<1x256xf32>
    %86 = vector.broadcast %85 : vector<1x256xf32> to vector<4x256xf32>
    %87 = arith.mulf %84, %86 : vector<4x256xf32>
    %88 = vector.extract_strided_slice %78 {offsets = [0, 16], sizes = [4, 256], strides = [1, 1]} : vector<4x290xf32> to vector<4x256xf32>
    %89 = vector.extract_strided_slice %0 {offsets = [3, 0], sizes = [1, 256], strides = [1, 1]} : vector<9x256xf32> to vector<1x256xf32>
    %90 = vector.broadcast %89 : vector<1x256xf32> to vector<4x256xf32>
    %91 = arith.mulf %88, %90 : vector<4x256xf32>
    %92 = vector.extract_strided_slice %78 {offsets = [0, 18], sizes = [4, 256], strides = [1, 1]} : vector<4x290xf32> to vector<4x256xf32>
    %93 = vector.extract_strided_slice %0 {offsets = [5, 0], sizes = [1, 256], strides = [1, 1]} : vector<9x256xf32> to vector<1x256xf32>
    %94 = vector.broadcast %93 : vector<1x256xf32> to vector<4x256xf32>
    %95 = arith.mulf %92, %94 : vector<4x256xf32>
    %96 = vector.extract_strided_slice %78 {offsets = [0, 32], sizes = [4, 256], strides = [1, 1]} : vector<4x290xf32> to vector<4x256xf32>
    %97 = vector.extract_strided_slice %0 {offsets = [6, 0], sizes = [1, 256], strides = [1, 1]} : vector<9x256xf32> to vector<1x256xf32>
    %98 = vector.broadcast %97 : vector<1x256xf32> to vector<4x256xf32>
    %99 = arith.mulf %96, %98 : vector<4x256xf32>
    %100 = vector.extract_strided_slice %78 {offsets = [0, 33], sizes = [4, 256], strides = [1, 1]} : vector<4x290xf32> to vector<4x256xf32>
    %101 = vector.extract_strided_slice %78 {offsets = [0, 34], sizes = [4, 256], strides = [1, 1]} : vector<4x290xf32> to vector<4x256xf32>
    %102 = vector.extract_strided_slice %0 {offsets = [8, 0], sizes = [1, 256], strides = [1, 1]} : vector<9x256xf32> to vector<1x256xf32>
    %103 = vector.broadcast %102 : vector<1x256xf32> to vector<4x256xf32>
    %104 = arith.mulf %101, %103 : vector<4x256xf32>
    %105 = tpu.concatenate %82, %83, %87, %91, %76, %95, %99, %100, %104 in 0 : vector<4x256xf32>, vector<4x256xf32>, vector<4x256xf32>, vector<4x256xf32>, vector<4x256xf32>, vector<4x256xf32>, vector<4x256xf32>, vector<4x256xf32>, vector<4x256xf32> -> vector<36x256xf32>
    %106 = tpu.concatenate %74, %105 in 0 : vector<36x256xf32>, vector<36x256xf32> -> vector<72x256xf32>
    %cst_21 = arith.constant dense<0.000000e+00> : vector<4x256xf32>
    %107 = tpu.matmul %43, %106, %cst_21 {dimension_numbers = #tpu.dot_dimension_numbers<[1], [0], [0], [1], [0, 0, 1, 1], [], []>} : vector<4x72xf32>, vector<72x256xf32>, vector<4x256xf32> -> vector<4x256xf32>
    %108 = vector.extract_strided_slice %36 {offsets = [4, 0], sizes = [4, 72], strides = [1, 1]} : vector<16x72xf32> to vector<4x72xf32>
    %cst_22 = arith.constant 0.000000e+00 : f32
    %109 = vector.broadcast %cst_22 : f32 to vector<4x256xf32>
    %110 = arith.maximumf %107, %109 : vector<4x256xf32>
    %cst_23 = arith.constant 0.000000e+00 : f32
    %111 = vector.broadcast %cst_23 : f32 to vector<4x17xf32>
    %112 = tpu.concatenate %111, %110, %111 in 1 : vector<4x17xf32>, vector<4x256xf32>, vector<4x17xf32> -> vector<4x290xf32>
    %113 = vector.extract_strided_slice %112 {offsets = [0, 0], sizes = [4, 256], strides = [1, 1]} : vector<4x290xf32> to vector<4x256xf32>
    %114 = vector.extract_strided_slice %0 {offsets = [0, 0], sizes = [1, 256], strides = [1, 1]} : vector<9x256xf32> to vector<1x256xf32>
    %115 = vector.broadcast %114 : vector<1x256xf32> to vector<4x256xf32>
    %116 = arith.mulf %113, %115 : vector<4x256xf32>
    %117 = vector.extract_strided_slice %112 {offsets = [0, 1], sizes = [4, 256], strides = [1, 1]} : vector<4x290xf32> to vector<4x256xf32>
    %118 = vector.extract_strided_slice %112 {offsets = [0, 2], sizes = [4, 256], strides = [1, 1]} : vector<4x290xf32> to vector<4x256xf32>
    %119 = vector.extract_strided_slice %0 {offsets = [2, 0], sizes = [1, 256], strides = [1, 1]} : vector<9x256xf32> to vector<1x256xf32>
    %120 = vector.broadcast %119 : vector<1x256xf32> to vector<4x256xf32>
    %121 = arith.mulf %118, %120 : vector<4x256xf32>
    %122 = vector.extract_strided_slice %112 {offsets = [0, 16], sizes = [4, 256], strides = [1, 1]} : vector<4x290xf32> to vector<4x256xf32>
    %123 = vector.extract_strided_slice %0 {offsets = [3, 0], sizes = [1, 256], strides = [1, 1]} : vector<9x256xf32> to vector<1x256xf32>
    %124 = vector.broadcast %123 : vector<1x256xf32> to vector<4x256xf32>
    %125 = arith.mulf %122, %124 : vector<4x256xf32>
    %126 = vector.extract_strided_slice %112 {offsets = [0, 18], sizes = [4, 256], strides = [1, 1]} : vector<4x290xf32> to vector<4x256xf32>
    %127 = vector.extract_strided_slice %0 {offsets = [5, 0], sizes = [1, 256], strides = [1, 1]} : vector<9x256xf32> to vector<1x256xf32>
    %128 = vector.broadcast %127 : vector<1x256xf32> to vector<4x256xf32>
    %129 = arith.mulf %126, %128 : vector<4x256xf32>
    %130 = vector.extract_strided_slice %112 {offsets = [0, 32], sizes = [4, 256], strides = [1, 1]} : vector<4x290xf32> to vector<4x256xf32>
    %131 = vector.extract_strided_slice %0 {offsets = [6, 0], sizes = [1, 256], strides = [1, 1]} : vector<9x256xf32> to vector<1x256xf32>
    %132 = vector.broadcast %131 : vector<1x256xf32> to vector<4x256xf32>
    %133 = arith.mulf %130, %132 : vector<4x256xf32>
    %134 = vector.extract_strided_slice %112 {offsets = [0, 33], sizes = [4, 256], strides = [1, 1]} : vector<4x290xf32> to vector<4x256xf32>
    %135 = vector.extract_strided_slice %112 {offsets = [0, 34], sizes = [4, 256], strides = [1, 1]} : vector<4x290xf32> to vector<4x256xf32>
    %136 = vector.extract_strided_slice %0 {offsets = [8, 0], sizes = [1, 256], strides = [1, 1]} : vector<9x256xf32> to vector<1x256xf32>
    %137 = vector.broadcast %136 : vector<1x256xf32> to vector<4x256xf32>
    %138 = arith.mulf %135, %137 : vector<4x256xf32>
    %139 = tpu.concatenate %116, %117, %121, %125, %110, %129, %133, %134, %138 in 0 : vector<4x256xf32>, vector<4x256xf32>, vector<4x256xf32>, vector<4x256xf32>, vector<4x256xf32>, vector<4x256xf32>, vector<4x256xf32>, vector<4x256xf32>, vector<4x256xf32> -> vector<36x256xf32>
    %140 = tpu.concatenate %105, %139 in 0 : vector<36x256xf32>, vector<36x256xf32> -> vector<72x256xf32>
    %cst_24 = arith.constant dense<0.000000e+00> : vector<4x256xf32>
    %141 = tpu.matmul %108, %140, %cst_24 {dimension_numbers = #tpu.dot_dimension_numbers<[1], [0], [0], [1], [0, 0, 1, 1], [], []>} : vector<4x72xf32>, vector<72x256xf32>, vector<4x256xf32> -> vector<4x256xf32>
    %142 = vector.extract_strided_slice %36 {offsets = [8, 0], sizes = [4, 72], strides = [1, 1]} : vector<16x72xf32> to vector<4x72xf32>
    %cst_25 = arith.constant 0.000000e+00 : f32
    %143 = vector.broadcast %cst_25 : f32 to vector<4x256xf32>
    %144 = arith.maximumf %141, %143 : vector<4x256xf32>
    %cst_26 = arith.constant 0.000000e+00 : f32
    %145 = vector.broadcast %cst_26 : f32 to vector<4x17xf32>
    %146 = tpu.concatenate %145, %144, %145 in 1 : vector<4x17xf32>, vector<4x256xf32>, vector<4x17xf32> -> vector<4x290xf32>
    %147 = vector.extract_strided_slice %146 {offsets = [0, 0], sizes = [4, 256], strides = [1, 1]} : vector<4x290xf32> to vector<4x256xf32>
    %148 = vector.extract_strided_slice %0 {offsets = [0, 0], sizes = [1, 256], strides = [1, 1]} : vector<9x256xf32> to vector<1x256xf32>
    %149 = vector.broadcast %148 : vector<1x256xf32> to vector<4x256xf32>
    %150 = arith.mulf %147, %149 : vector<4x256xf32>
    %151 = vector.extract_strided_slice %146 {offsets = [0, 1], sizes = [4, 256], strides = [1, 1]} : vector<4x290xf32> to vector<4x256xf32>
    %152 = vector.extract_strided_slice %146 {offsets = [0, 2], sizes = [4, 256], strides = [1, 1]} : vector<4x290xf32> to vector<4x256xf32>
    %153 = vector.extract_strided_slice %0 {offsets = [2, 0], sizes = [1, 256], strides = [1, 1]} : vector<9x256xf32> to vector<1x256xf32>
    %154 = vector.broadcast %153 : vector<1x256xf32> to vector<4x256xf32>
    %155 = arith.mulf %152, %154 : vector<4x256xf32>
    %156 = vector.extract_strided_slice %146 {offsets = [0, 16], sizes = [4, 256], strides = [1, 1]} : vector<4x290xf32> to vector<4x256xf32>
    %157 = vector.extract_strided_slice %0 {offsets = [3, 0], sizes = [1, 256], strides = [1, 1]} : vector<9x256xf32> to vector<1x256xf32>
    %158 = vector.broadcast %157 : vector<1x256xf32> to vector<4x256xf32>
    %159 = arith.mulf %156, %158 : vector<4x256xf32>
    %160 = vector.extract_strided_slice %146 {offsets = [0, 18], sizes = [4, 256], strides = [1, 1]} : vector<4x290xf32> to vector<4x256xf32>
    %161 = vector.extract_strided_slice %0 {offsets = [5, 0], sizes = [1, 256], strides = [1, 1]} : vector<9x256xf32> to vector<1x256xf32>
    %162 = vector.broadcast %161 : vector<1x256xf32> to vector<4x256xf32>
    %163 = arith.mulf %160, %162 : vector<4x256xf32>
    %164 = vector.extract_strided_slice %146 {offsets = [0, 32], sizes = [4, 256], strides = [1, 1]} : vector<4x290xf32> to vector<4x256xf32>
    %165 = vector.extract_strided_slice %0 {offsets = [6, 0], sizes = [1, 256], strides = [1, 1]} : vector<9x256xf32> to vector<1x256xf32>
    %166 = vector.broadcast %165 : vector<1x256xf32> to vector<4x256xf32>
    %167 = arith.mulf %164, %166 : vector<4x256xf32>
    %168 = vector.extract_strided_slice %146 {offsets = [0, 33], sizes = [4, 256], strides = [1, 1]} : vector<4x290xf32> to vector<4x256xf32>
    %169 = vector.extract_strided_slice %146 {offsets = [0, 34], sizes = [4, 256], strides = [1, 1]} : vector<4x290xf32> to vector<4x256xf32>
    %170 = vector.extract_strided_slice %0 {offsets = [8, 0], sizes = [1, 256], strides = [1, 1]} : vector<9x256xf32> to vector<1x256xf32>
    %171 = vector.broadcast %170 : vector<1x256xf32> to vector<4x256xf32>
    %172 = arith.mulf %169, %171 : vector<4x256xf32>
    %173 = tpu.concatenate %150, %151, %155, %159, %144, %163, %167, %168, %172 in 0 : vector<4x256xf32>, vector<4x256xf32>, vector<4x256xf32>, vector<4x256xf32>, vector<4x256xf32>, vector<4x256xf32>, vector<4x256xf32>, vector<4x256xf32>, vector<4x256xf32> -> vector<36x256xf32>
    %174 = tpu.concatenate %139, %173 in 0 : vector<36x256xf32>, vector<36x256xf32> -> vector<72x256xf32>
    %cst_27 = arith.constant dense<0.000000e+00> : vector<4x256xf32>
    %175 = tpu.matmul %142, %174, %cst_27 {dimension_numbers = #tpu.dot_dimension_numbers<[1], [0], [0], [1], [0, 0, 1, 1], [], []>} : vector<4x72xf32>, vector<72x256xf32>, vector<4x256xf32> -> vector<4x256xf32>
    %176 = vector.extract_strided_slice %36 {offsets = [12, 0], sizes = [4, 72], strides = [1, 1]} : vector<16x72xf32> to vector<4x72xf32>
    %cst_28 = arith.constant 0.000000e+00 : f32
    %177 = vector.broadcast %cst_28 : f32 to vector<4x256xf32>
    %178 = arith.maximumf %175, %177 : vector<4x256xf32>
    %cst_29 = arith.constant 0.000000e+00 : f32
    %179 = vector.broadcast %cst_29 : f32 to vector<4x17xf32>
    %180 = tpu.concatenate %179, %178, %179 in 1 : vector<4x17xf32>, vector<4x256xf32>, vector<4x17xf32> -> vector<4x290xf32>
    %181 = vector.extract_strided_slice %180 {offsets = [0, 0], sizes = [4, 256], strides = [1, 1]} : vector<4x290xf32> to vector<4x256xf32>
    %182 = vector.extract_strided_slice %0 {offsets = [0, 0], sizes = [1, 256], strides = [1, 1]} : vector<9x256xf32> to vector<1x256xf32>
    %183 = vector.broadcast %182 : vector<1x256xf32> to vector<4x256xf32>
    %184 = arith.mulf %181, %183 : vector<4x256xf32>
    %185 = vector.extract_strided_slice %180 {offsets = [0, 1], sizes = [4, 256], strides = [1, 1]} : vector<4x290xf32> to vector<4x256xf32>
    %186 = vector.extract_strided_slice %180 {offsets = [0, 2], sizes = [4, 256], strides = [1, 1]} : vector<4x290xf32> to vector<4x256xf32>
    %187 = vector.extract_strided_slice %0 {offsets = [2, 0], sizes = [1, 256], strides = [1, 1]} : vector<9x256xf32> to vector<1x256xf32>
    %188 = vector.broadcast %187 : vector<1x256xf32> to vector<4x256xf32>
    %189 = arith.mulf %186, %188 : vector<4x256xf32>
    %190 = vector.extract_strided_slice %180 {offsets = [0, 16], sizes = [4, 256], strides = [1, 1]} : vector<4x290xf32> to vector<4x256xf32>
    %191 = vector.extract_strided_slice %0 {offsets = [3, 0], sizes = [1, 256], strides = [1, 1]} : vector<9x256xf32> to vector<1x256xf32>
    %192 = vector.broadcast %191 : vector<1x256xf32> to vector<4x256xf32>
    %193 = arith.mulf %190, %192 : vector<4x256xf32>
    %194 = vector.extract_strided_slice %180 {offsets = [0, 18], sizes = [4, 256], strides = [1, 1]} : vector<4x290xf32> to vector<4x256xf32>
    %195 = vector.extract_strided_slice %0 {offsets = [5, 0], sizes = [1, 256], strides = [1, 1]} : vector<9x256xf32> to vector<1x256xf32>
    %196 = vector.broadcast %195 : vector<1x256xf32> to vector<4x256xf32>
    %197 = arith.mulf %194, %196 : vector<4x256xf32>
    %198 = vector.extract_strided_slice %180 {offsets = [0, 32], sizes = [4, 256], strides = [1, 1]} : vector<4x290xf32> to vector<4x256xf32>
    %199 = vector.extract_strided_slice %0 {offsets = [6, 0], sizes = [1, 256], strides = [1, 1]} : vector<9x256xf32> to vector<1x256xf32>
    %200 = vector.broadcast %199 : vector<1x256xf32> to vector<4x256xf32>
    %201 = arith.mulf %198, %200 : vector<4x256xf32>
    %202 = vector.extract_strided_slice %180 {offsets = [0, 33], sizes = [4, 256], strides = [1, 1]} : vector<4x290xf32> to vector<4x256xf32>
    %203 = vector.extract_strided_slice %180 {offsets = [0, 34], sizes = [4, 256], strides = [1, 1]} : vector<4x290xf32> to vector<4x256xf32>
    %204 = vector.extract_strided_slice %0 {offsets = [8, 0], sizes = [1, 256], strides = [1, 1]} : vector<9x256xf32> to vector<1x256xf32>
    %205 = vector.broadcast %204 : vector<1x256xf32> to vector<4x256xf32>
    %206 = arith.mulf %203, %205 : vector<4x256xf32>
    %207 = tpu.concatenate %184, %185, %189, %193, %178, %197, %201, %202, %206 in 0 : vector<4x256xf32>, vector<4x256xf32>, vector<4x256xf32>, vector<4x256xf32>, vector<4x256xf32>, vector<4x256xf32>, vector<4x256xf32>, vector<4x256xf32>, vector<4x256xf32> -> vector<36x256xf32>
    %208 = tpu.concatenate %173, %207 in 0 : vector<36x256xf32>, vector<36x256xf32> -> vector<72x256xf32>
    %cst_30 = arith.constant dense<0.000000e+00> : vector<4x256xf32>
    %209 = tpu.matmul %176, %208, %cst_30 {dimension_numbers = #tpu.dot_dimension_numbers<[1], [0], [0], [1], [0, 0, 1, 1], [], []>} : vector<4x72xf32>, vector<72x256xf32>, vector<4x256xf32> -> vector<4x256xf32>
    %210 = tpu.concatenate %107, %141, %175, %209 in 0 : vector<4x256xf32>, vector<4x256xf32>, vector<4x256xf32>, vector<4x256xf32> -> vector<16x256xf32>
    %c0_31 = arith.constant 0 : index
    %c0_32 = arith.constant 0 : index
    %211 = vector.load %arg7[%c0_31, %c0_32] : memref<4x12xf32, #tpu.memory_space<vmem>>, vector<4x12xf32>
    %c0_33 = arith.constant 0 : index
    %c0_34 = arith.constant 0 : index
    %212 = vector.load %arg8[%c0_33, %c0_34] : memref<4x16xf32, #tpu.memory_space<vmem>>, vector<4x16xf32>
    %c0_35 = arith.constant 0 : index
    %c0_36 = arith.constant 0 : index
    %213 = vector.load %arg9[%c0_35, %c0_36] : memref<16x72xf32, #tpu.memory_space<vmem>>, vector<16x72xf32>
    %cst_37 = arith.constant 0.000000e+00 : f32
    %214 = vector.broadcast %cst_37 : f32 to vector<12x256xf32>
    %215 = arith.maximumf %33, %214 : vector<12x256xf32>
    %cst_38 = arith.constant dense<0.000000e+00> : vector<4x256xf32>
    %216 = tpu.matmul %211, %215, %cst_38 {dimension_numbers = #tpu.dot_dimension_numbers<[1], [0], [0], [1], [0, 0, 1, 1], [], []>} : vector<4x12xf32>, vector<12x256xf32>, vector<4x256xf32> -> vector<4x256xf32>
    %cst_39 = arith.constant 0.000000e+00 : f32
    %217 = vector.broadcast %cst_39 : f32 to vector<16x256xf32>
    %218 = arith.maximumf %210, %217 : vector<16x256xf32>
    %cst_40 = arith.constant dense<0.000000e+00> : vector<4x256xf32>
    %219 = tpu.matmul %212, %218, %cst_40 {dimension_numbers = #tpu.dot_dimension_numbers<[1], [0], [0], [1], [0, 0, 1, 1], [], []>} : vector<4x16xf32>, vector<16x256xf32>, vector<4x256xf32> -> vector<4x256xf32>
    %220 = vector.extract_strided_slice %213 {offsets = [0, 0], sizes = [4, 72], strides = [1, 1]} : vector<16x72xf32> to vector<4x72xf32>
    %cst_41 = arith.constant 0.000000e+00 : f32
    %221 = vector.broadcast %cst_41 : f32 to vector<4x256xf32>
    %222 = arith.maximumf %216, %221 : vector<4x256xf32>
    %cst_42 = arith.constant 0.000000e+00 : f32
    %223 = vector.broadcast %cst_42 : f32 to vector<4x17xf32>
    %224 = tpu.concatenate %223, %222, %223 in 1 : vector<4x17xf32>, vector<4x256xf32>, vector<4x17xf32> -> vector<4x290xf32>
    %225 = vector.extract_strided_slice %224 {offsets = [0, 0], sizes = [4, 256], strides = [1, 1]} : vector<4x290xf32> to vector<4x256xf32>
    %226 = vector.extract_strided_slice %0 {offsets = [0, 0], sizes = [1, 256], strides = [1, 1]} : vector<9x256xf32> to vector<1x256xf32>
    %227 = vector.broadcast %226 : vector<1x256xf32> to vector<4x256xf32>
    %228 = arith.mulf %225, %227 : vector<4x256xf32>
    %229 = vector.extract_strided_slice %224 {offsets = [0, 1], sizes = [4, 256], strides = [1, 1]} : vector<4x290xf32> to vector<4x256xf32>
    %230 = vector.extract_strided_slice %224 {offsets = [0, 2], sizes = [4, 256], strides = [1, 1]} : vector<4x290xf32> to vector<4x256xf32>
    %231 = vector.extract_strided_slice %0 {offsets = [2, 0], sizes = [1, 256], strides = [1, 1]} : vector<9x256xf32> to vector<1x256xf32>
    %232 = vector.broadcast %231 : vector<1x256xf32> to vector<4x256xf32>
    %233 = arith.mulf %230, %232 : vector<4x256xf32>
    %234 = vector.extract_strided_slice %224 {offsets = [0, 16], sizes = [4, 256], strides = [1, 1]} : vector<4x290xf32> to vector<4x256xf32>
    %235 = vector.extract_strided_slice %0 {offsets = [3, 0], sizes = [1, 256], strides = [1, 1]} : vector<9x256xf32> to vector<1x256xf32>
    %236 = vector.broadcast %235 : vector<1x256xf32> to vector<4x256xf32>
    %237 = arith.mulf %234, %236 : vector<4x256xf32>
    %238 = vector.extract_strided_slice %224 {offsets = [0, 18], sizes = [4, 256], strides = [1, 1]} : vector<4x290xf32> to vector<4x256xf32>
    %239 = vector.extract_strided_slice %0 {offsets = [5, 0], sizes = [1, 256], strides = [1, 1]} : vector<9x256xf32> to vector<1x256xf32>
    %240 = vector.broadcast %239 : vector<1x256xf32> to vector<4x256xf32>
    %241 = arith.mulf %238, %240 : vector<4x256xf32>
    %242 = vector.extract_strided_slice %224 {offsets = [0, 32], sizes = [4, 256], strides = [1, 1]} : vector<4x290xf32> to vector<4x256xf32>
    %243 = vector.extract_strided_slice %0 {offsets = [6, 0], sizes = [1, 256], strides = [1, 1]} : vector<9x256xf32> to vector<1x256xf32>
    %244 = vector.broadcast %243 : vector<1x256xf32> to vector<4x256xf32>
    %245 = arith.mulf %242, %244 : vector<4x256xf32>
    %246 = vector.extract_strided_slice %224 {offsets = [0, 33], sizes = [4, 256], strides = [1, 1]} : vector<4x290xf32> to vector<4x256xf32>
    %247 = vector.extract_strided_slice %224 {offsets = [0, 34], sizes = [4, 256], strides = [1, 1]} : vector<4x290xf32> to vector<4x256xf32>
    %248 = vector.extract_strided_slice %0 {offsets = [8, 0], sizes = [1, 256], strides = [1, 1]} : vector<9x256xf32> to vector<1x256xf32>
    %249 = vector.broadcast %248 : vector<1x256xf32> to vector<4x256xf32>
    %250 = arith.mulf %247, %249 : vector<4x256xf32>
    %251 = tpu.concatenate %228, %229, %233, %237, %222, %241, %245, %246, %250 in 0 : vector<4x256xf32>, vector<4x256xf32>, vector<4x256xf32>, vector<4x256xf32>, vector<4x256xf32>, vector<4x256xf32>, vector<4x256xf32>, vector<4x256xf32>, vector<4x256xf32> -> vector<36x256xf32>
    %cst_43 = arith.constant 0.000000e+00 : f32
    %252 = vector.broadcast %cst_43 : f32 to vector<4x256xf32>
    %253 = arith.maximumf %219, %252 : vector<4x256xf32>
    %cst_44 = arith.constant 0.000000e+00 : f32
    %254 = vector.broadcast %cst_44 : f32 to vector<4x17xf32>
    %255 = tpu.concatenate %254, %253, %254 in 1 : vector<4x17xf32>, vector<4x256xf32>, vector<4x17xf32> -> vector<4x290xf32>
    %256 = vector.extract_strided_slice %255 {offsets = [0, 0], sizes = [4, 256], strides = [1, 1]} : vector<4x290xf32> to vector<4x256xf32>
    %257 = vector.extract_strided_slice %0 {offsets = [0, 0], sizes = [1, 256], strides = [1, 1]} : vector<9x256xf32> to vector<1x256xf32>
    %258 = vector.broadcast %257 : vector<1x256xf32> to vector<4x256xf32>
    %259 = arith.mulf %256, %258 : vector<4x256xf32>
    %260 = vector.extract_strided_slice %255 {offsets = [0, 1], sizes = [4, 256], strides = [1, 1]} : vector<4x290xf32> to vector<4x256xf32>
    %261 = vector.extract_strided_slice %255 {offsets = [0, 2], sizes = [4, 256], strides = [1, 1]} : vector<4x290xf32> to vector<4x256xf32>
    %262 = vector.extract_strided_slice %0 {offsets = [2, 0], sizes = [1, 256], strides = [1, 1]} : vector<9x256xf32> to vector<1x256xf32>
    %263 = vector.broadcast %262 : vector<1x256xf32> to vector<4x256xf32>
    %264 = arith.mulf %261, %263 : vector<4x256xf32>
    %265 = vector.extract_strided_slice %255 {offsets = [0, 16], sizes = [4, 256], strides = [1, 1]} : vector<4x290xf32> to vector<4x256xf32>
    %266 = vector.extract_strided_slice %0 {offsets = [3, 0], sizes = [1, 256], strides = [1, 1]} : vector<9x256xf32> to vector<1x256xf32>
    %267 = vector.broadcast %266 : vector<1x256xf32> to vector<4x256xf32>
    %268 = arith.mulf %265, %267 : vector<4x256xf32>
    %269 = vector.extract_strided_slice %255 {offsets = [0, 18], sizes = [4, 256], strides = [1, 1]} : vector<4x290xf32> to vector<4x256xf32>
    %270 = vector.extract_strided_slice %0 {offsets = [5, 0], sizes = [1, 256], strides = [1, 1]} : vector<9x256xf32> to vector<1x256xf32>
    %271 = vector.broadcast %270 : vector<1x256xf32> to vector<4x256xf32>
    %272 = arith.mulf %269, %271 : vector<4x256xf32>
    %273 = vector.extract_strided_slice %255 {offsets = [0, 32], sizes = [4, 256], strides = [1, 1]} : vector<4x290xf32> to vector<4x256xf32>
    %274 = vector.extract_strided_slice %0 {offsets = [6, 0], sizes = [1, 256], strides = [1, 1]} : vector<9x256xf32> to vector<1x256xf32>
    %275 = vector.broadcast %274 : vector<1x256xf32> to vector<4x256xf32>
    %276 = arith.mulf %273, %275 : vector<4x256xf32>
    %277 = vector.extract_strided_slice %255 {offsets = [0, 33], sizes = [4, 256], strides = [1, 1]} : vector<4x290xf32> to vector<4x256xf32>
    %278 = vector.extract_strided_slice %255 {offsets = [0, 34], sizes = [4, 256], strides = [1, 1]} : vector<4x290xf32> to vector<4x256xf32>
    %279 = vector.extract_strided_slice %0 {offsets = [8, 0], sizes = [1, 256], strides = [1, 1]} : vector<9x256xf32> to vector<1x256xf32>
    %280 = vector.broadcast %279 : vector<1x256xf32> to vector<4x256xf32>
    %281 = arith.mulf %278, %280 : vector<4x256xf32>
    %282 = tpu.concatenate %259, %260, %264, %268, %253, %272, %276, %277, %281 in 0 : vector<4x256xf32>, vector<4x256xf32>, vector<4x256xf32>, vector<4x256xf32>, vector<4x256xf32>, vector<4x256xf32>, vector<4x256xf32>, vector<4x256xf32>, vector<4x256xf32> -> vector<36x256xf32>
    %283 = tpu.concatenate %251, %282 in 0 : vector<36x256xf32>, vector<36x256xf32> -> vector<72x256xf32>
    %cst_45 = arith.constant dense<0.000000e+00> : vector<4x256xf32>
    %284 = tpu.matmul %220, %283, %cst_45 {dimension_numbers = #tpu.dot_dimension_numbers<[1], [0], [0], [1], [0, 0, 1, 1], [], []>} : vector<4x72xf32>, vector<72x256xf32>, vector<4x256xf32> -> vector<4x256xf32>
    %285 = vector.extract_strided_slice %213 {offsets = [4, 0], sizes = [4, 72], strides = [1, 1]} : vector<16x72xf32> to vector<4x72xf32>
    %cst_46 = arith.constant 0.000000e+00 : f32
    %286 = vector.broadcast %cst_46 : f32 to vector<4x256xf32>
    %287 = arith.maximumf %284, %286 : vector<4x256xf32>
    %cst_47 = arith.constant 0.000000e+00 : f32
    %288 = vector.broadcast %cst_47 : f32 to vector<4x17xf32>
    %289 = tpu.concatenate %288, %287, %288 in 1 : vector<4x17xf32>, vector<4x256xf32>, vector<4x17xf32> -> vector<4x290xf32>
    %290 = vector.extract_strided_slice %289 {offsets = [0, 0], sizes = [4, 256], strides = [1, 1]} : vector<4x290xf32> to vector<4x256xf32>
    %291 = vector.extract_strided_slice %0 {offsets = [0, 0], sizes = [1, 256], strides = [1, 1]} : vector<9x256xf32> to vector<1x256xf32>
    %292 = vector.broadcast %291 : vector<1x256xf32> to vector<4x256xf32>
    %293 = arith.mulf %290, %292 : vector<4x256xf32>
    %294 = vector.extract_strided_slice %289 {offsets = [0, 1], sizes = [4, 256], strides = [1, 1]} : vector<4x290xf32> to vector<4x256xf32>
    %295 = vector.extract_strided_slice %289 {offsets = [0, 2], sizes = [4, 256], strides = [1, 1]} : vector<4x290xf32> to vector<4x256xf32>
    %296 = vector.extract_strided_slice %0 {offsets = [2, 0], sizes = [1, 256], strides = [1, 1]} : vector<9x256xf32> to vector<1x256xf32>
    %297 = vector.broadcast %296 : vector<1x256xf32> to vector<4x256xf32>
    %298 = arith.mulf %295, %297 : vector<4x256xf32>
    %299 = vector.extract_strided_slice %289 {offsets = [0, 16], sizes = [4, 256], strides = [1, 1]} : vector<4x290xf32> to vector<4x256xf32>
    %300 = vector.extract_strided_slice %0 {offsets = [3, 0], sizes = [1, 256], strides = [1, 1]} : vector<9x256xf32> to vector<1x256xf32>
    %301 = vector.broadcast %300 : vector<1x256xf32> to vector<4x256xf32>
    %302 = arith.mulf %299, %301 : vector<4x256xf32>
    %303 = vector.extract_strided_slice %289 {offsets = [0, 18], sizes = [4, 256], strides = [1, 1]} : vector<4x290xf32> to vector<4x256xf32>
    %304 = vector.extract_strided_slice %0 {offsets = [5, 0], sizes = [1, 256], strides = [1, 1]} : vector<9x256xf32> to vector<1x256xf32>
    %305 = vector.broadcast %304 : vector<1x256xf32> to vector<4x256xf32>
    %306 = arith.mulf %303, %305 : vector<4x256xf32>
    %307 = vector.extract_strided_slice %289 {offsets = [0, 32], sizes = [4, 256], strides = [1, 1]} : vector<4x290xf32> to vector<4x256xf32>
    %308 = vector.extract_strided_slice %0 {offsets = [6, 0], sizes = [1, 256], strides = [1, 1]} : vector<9x256xf32> to vector<1x256xf32>
    %309 = vector.broadcast %308 : vector<1x256xf32> to vector<4x256xf32>
    %310 = arith.mulf %307, %309 : vector<4x256xf32>
    %311 = vector.extract_strided_slice %289 {offsets = [0, 33], sizes = [4, 256], strides = [1, 1]} : vector<4x290xf32> to vector<4x256xf32>
    %312 = vector.extract_strided_slice %289 {offsets = [0, 34], sizes = [4, 256], strides = [1, 1]} : vector<4x290xf32> to vector<4x256xf32>
    %313 = vector.extract_strided_slice %0 {offsets = [8, 0], sizes = [1, 256], strides = [1, 1]} : vector<9x256xf32> to vector<1x256xf32>
    %314 = vector.broadcast %313 : vector<1x256xf32> to vector<4x256xf32>
    %315 = arith.mulf %312, %314 : vector<4x256xf32>
    %316 = tpu.concatenate %293, %294, %298, %302, %287, %306, %310, %311, %315 in 0 : vector<4x256xf32>, vector<4x256xf32>, vector<4x256xf32>, vector<4x256xf32>, vector<4x256xf32>, vector<4x256xf32>, vector<4x256xf32>, vector<4x256xf32>, vector<4x256xf32> -> vector<36x256xf32>
    %317 = tpu.concatenate %282, %316 in 0 : vector<36x256xf32>, vector<36x256xf32> -> vector<72x256xf32>
    %cst_48 = arith.constant dense<0.000000e+00> : vector<4x256xf32>
    %318 = tpu.matmul %285, %317, %cst_48 {dimension_numbers = #tpu.dot_dimension_numbers<[1], [0], [0], [1], [0, 0, 1, 1], [], []>} : vector<4x72xf32>, vector<72x256xf32>, vector<4x256xf32> -> vector<4x256xf32>
    %319 = vector.extract_strided_slice %213 {offsets = [8, 0], sizes = [4, 72], strides = [1, 1]} : vector<16x72xf32> to vector<4x72xf32>
    %cst_49 = arith.constant 0.000000e+00 : f32
    %320 = vector.broadcast %cst_49 : f32 to vector<4x256xf32>
    %321 = arith.maximumf %318, %320 : vector<4x256xf32>
    %cst_50 = arith.constant 0.000000e+00 : f32
    %322 = vector.broadcast %cst_50 : f32 to vector<4x17xf32>
    %323 = tpu.concatenate %322, %321, %322 in 1 : vector<4x17xf32>, vector<4x256xf32>, vector<4x17xf32> -> vector<4x290xf32>
    %324 = vector.extract_strided_slice %323 {offsets = [0, 0], sizes = [4, 256], strides = [1, 1]} : vector<4x290xf32> to vector<4x256xf32>
    %325 = vector.extract_strided_slice %0 {offsets = [0, 0], sizes = [1, 256], strides = [1, 1]} : vector<9x256xf32> to vector<1x256xf32>
    %326 = vector.broadcast %325 : vector<1x256xf32> to vector<4x256xf32>
    %327 = arith.mulf %324, %326 : vector<4x256xf32>
    %328 = vector.extract_strided_slice %323 {offsets = [0, 1], sizes = [4, 256], strides = [1, 1]} : vector<4x290xf32> to vector<4x256xf32>
    %329 = vector.extract_strided_slice %323 {offsets = [0, 2], sizes = [4, 256], strides = [1, 1]} : vector<4x290xf32> to vector<4x256xf32>
    %330 = vector.extract_strided_slice %0 {offsets = [2, 0], sizes = [1, 256], strides = [1, 1]} : vector<9x256xf32> to vector<1x256xf32>
    %331 = vector.broadcast %330 : vector<1x256xf32> to vector<4x256xf32>
    %332 = arith.mulf %329, %331 : vector<4x256xf32>
    %333 = vector.extract_strided_slice %323 {offsets = [0, 16], sizes = [4, 256], strides = [1, 1]} : vector<4x290xf32> to vector<4x256xf32>
    %334 = vector.extract_strided_slice %0 {offsets = [3, 0], sizes = [1, 256], strides = [1, 1]} : vector<9x256xf32> to vector<1x256xf32>
    %335 = vector.broadcast %334 : vector<1x256xf32> to vector<4x256xf32>
    %336 = arith.mulf %333, %335 : vector<4x256xf32>
    %337 = vector.extract_strided_slice %323 {offsets = [0, 18], sizes = [4, 256], strides = [1, 1]} : vector<4x290xf32> to vector<4x256xf32>
    %338 = vector.extract_strided_slice %0 {offsets = [5, 0], sizes = [1, 256], strides = [1, 1]} : vector<9x256xf32> to vector<1x256xf32>
    %339 = vector.broadcast %338 : vector<1x256xf32> to vector<4x256xf32>
    %340 = arith.mulf %337, %339 : vector<4x256xf32>
    %341 = vector.extract_strided_slice %323 {offsets = [0, 32], sizes = [4, 256], strides = [1, 1]} : vector<4x290xf32> to vector<4x256xf32>
    %342 = vector.extract_strided_slice %0 {offsets = [6, 0], sizes = [1, 256], strides = [1, 1]} : vector<9x256xf32> to vector<1x256xf32>
    %343 = vector.broadcast %342 : vector<1x256xf32> to vector<4x256xf32>
    %344 = arith.mulf %341, %343 : vector<4x256xf32>
    %345 = vector.extract_strided_slice %323 {offsets = [0, 33], sizes = [4, 256], strides = [1, 1]} : vector<4x290xf32> to vector<4x256xf32>
    %346 = vector.extract_strided_slice %323 {offsets = [0, 34], sizes = [4, 256], strides = [1, 1]} : vector<4x290xf32> to vector<4x256xf32>
    %347 = vector.extract_strided_slice %0 {offsets = [8, 0], sizes = [1, 256], strides = [1, 1]} : vector<9x256xf32> to vector<1x256xf32>
    %348 = vector.broadcast %347 : vector<1x256xf32> to vector<4x256xf32>
    %349 = arith.mulf %346, %348 : vector<4x256xf32>
    %350 = tpu.concatenate %327, %328, %332, %336, %321, %340, %344, %345, %349 in 0 : vector<4x256xf32>, vector<4x256xf32>, vector<4x256xf32>, vector<4x256xf32>, vector<4x256xf32>, vector<4x256xf32>, vector<4x256xf32>, vector<4x256xf32>, vector<4x256xf32> -> vector<36x256xf32>
    %351 = tpu.concatenate %316, %350 in 0 : vector<36x256xf32>, vector<36x256xf32> -> vector<72x256xf32>
    %cst_51 = arith.constant dense<0.000000e+00> : vector<4x256xf32>
    %352 = tpu.matmul %319, %351, %cst_51 {dimension_numbers = #tpu.dot_dimension_numbers<[1], [0], [0], [1], [0, 0, 1, 1], [], []>} : vector<4x72xf32>, vector<72x256xf32>, vector<4x256xf32> -> vector<4x256xf32>
    %353 = vector.extract_strided_slice %213 {offsets = [12, 0], sizes = [4, 72], strides = [1, 1]} : vector<16x72xf32> to vector<4x72xf32>
    %cst_52 = arith.constant 0.000000e+00 : f32
    %354 = vector.broadcast %cst_52 : f32 to vector<4x256xf32>
    %355 = arith.maximumf %352, %354 : vector<4x256xf32>
    %cst_53 = arith.constant 0.000000e+00 : f32
    %356 = vector.broadcast %cst_53 : f32 to vector<4x17xf32>
    %357 = tpu.concatenate %356, %355, %356 in 1 : vector<4x17xf32>, vector<4x256xf32>, vector<4x17xf32> -> vector<4x290xf32>
    %358 = vector.extract_strided_slice %357 {offsets = [0, 0], sizes = [4, 256], strides = [1, 1]} : vector<4x290xf32> to vector<4x256xf32>
    %359 = vector.extract_strided_slice %0 {offsets = [0, 0], sizes = [1, 256], strides = [1, 1]} : vector<9x256xf32> to vector<1x256xf32>
    %360 = vector.broadcast %359 : vector<1x256xf32> to vector<4x256xf32>
    %361 = arith.mulf %358, %360 : vector<4x256xf32>
    %362 = vector.extract_strided_slice %357 {offsets = [0, 1], sizes = [4, 256], strides = [1, 1]} : vector<4x290xf32> to vector<4x256xf32>
    %363 = vector.extract_strided_slice %357 {offsets = [0, 2], sizes = [4, 256], strides = [1, 1]} : vector<4x290xf32> to vector<4x256xf32>
    %364 = vector.extract_strided_slice %0 {offsets = [2, 0], sizes = [1, 256], strides = [1, 1]} : vector<9x256xf32> to vector<1x256xf32>
    %365 = vector.broadcast %364 : vector<1x256xf32> to vector<4x256xf32>
    %366 = arith.mulf %363, %365 : vector<4x256xf32>
    %367 = vector.extract_strided_slice %357 {offsets = [0, 16], sizes = [4, 256], strides = [1, 1]} : vector<4x290xf32> to vector<4x256xf32>
    %368 = vector.extract_strided_slice %0 {offsets = [3, 0], sizes = [1, 256], strides = [1, 1]} : vector<9x256xf32> to vector<1x256xf32>
    %369 = vector.broadcast %368 : vector<1x256xf32> to vector<4x256xf32>
    %370 = arith.mulf %367, %369 : vector<4x256xf32>
    %371 = vector.extract_strided_slice %357 {offsets = [0, 18], sizes = [4, 256], strides = [1, 1]} : vector<4x290xf32> to vector<4x256xf32>
    %372 = vector.extract_strided_slice %0 {offsets = [5, 0], sizes = [1, 256], strides = [1, 1]} : vector<9x256xf32> to vector<1x256xf32>
    %373 = vector.broadcast %372 : vector<1x256xf32> to vector<4x256xf32>
    %374 = arith.mulf %371, %373 : vector<4x256xf32>
    %375 = vector.extract_strided_slice %357 {offsets = [0, 32], sizes = [4, 256], strides = [1, 1]} : vector<4x290xf32> to vector<4x256xf32>
    %376 = vector.extract_strided_slice %0 {offsets = [6, 0], sizes = [1, 256], strides = [1, 1]} : vector<9x256xf32> to vector<1x256xf32>
    %377 = vector.broadcast %376 : vector<1x256xf32> to vector<4x256xf32>
    %378 = arith.mulf %375, %377 : vector<4x256xf32>
    %379 = vector.extract_strided_slice %357 {offsets = [0, 33], sizes = [4, 256], strides = [1, 1]} : vector<4x290xf32> to vector<4x256xf32>
    %380 = vector.extract_strided_slice %357 {offsets = [0, 34], sizes = [4, 256], strides = [1, 1]} : vector<4x290xf32> to vector<4x256xf32>
    %381 = vector.extract_strided_slice %0 {offsets = [8, 0], sizes = [1, 256], strides = [1, 1]} : vector<9x256xf32> to vector<1x256xf32>
    %382 = vector.broadcast %381 : vector<1x256xf32> to vector<4x256xf32>
    %383 = arith.mulf %380, %382 : vector<4x256xf32>
    %384 = tpu.concatenate %361, %362, %366, %370, %355, %374, %378, %379, %383 in 0 : vector<4x256xf32>, vector<4x256xf32>, vector<4x256xf32>, vector<4x256xf32>, vector<4x256xf32>, vector<4x256xf32>, vector<4x256xf32>, vector<4x256xf32>, vector<4x256xf32> -> vector<36x256xf32>
    %385 = tpu.concatenate %350, %384 in 0 : vector<36x256xf32>, vector<36x256xf32> -> vector<72x256xf32>
    %cst_54 = arith.constant dense<0.000000e+00> : vector<4x256xf32>
    %386 = tpu.matmul %353, %385, %cst_54 {dimension_numbers = #tpu.dot_dimension_numbers<[1], [0], [0], [1], [0, 0, 1, 1], [], []>} : vector<4x72xf32>, vector<72x256xf32>, vector<4x256xf32> -> vector<4x256xf32>
    %387 = tpu.concatenate %284, %318, %352, %386 in 0 : vector<4x256xf32>, vector<4x256xf32>, vector<4x256xf32>, vector<4x256xf32> -> vector<16x256xf32>
    %c0_55 = arith.constant 0 : index
    %c0_56 = arith.constant 0 : index
    %388 = vector.load %arg10[%c0_55, %c0_56] : memref<64x144xf32, #tpu.memory_space<vmem>>, vector<64x144xf32>
    %cst_57 = arith.constant 0.000000e+00 : f32
    %389 = vector.broadcast %cst_57 : f32 to vector<16x17xf32>
    %390 = tpu.concatenate %389, %387, %389 in 1 : vector<16x17xf32>, vector<16x256xf32>, vector<16x17xf32> -> vector<16x290xf32>
    %391 = vector.extract_strided_slice %390 {offsets = [0, 0], sizes = [16, 256], strides = [1, 1]} : vector<16x290xf32> to vector<16x256xf32>
    %392 = vector.extract_strided_slice %0 {offsets = [0, 0], sizes = [1, 256], strides = [1, 1]} : vector<9x256xf32> to vector<1x256xf32>
    %393 = vector.broadcast %392 : vector<1x256xf32> to vector<16x256xf32>
    %394 = arith.mulf %391, %393 : vector<16x256xf32>
    %395 = vector.extract_strided_slice %390 {offsets = [0, 1], sizes = [16, 256], strides = [1, 1]} : vector<16x290xf32> to vector<16x256xf32>
    %396 = vector.extract_strided_slice %390 {offsets = [0, 2], sizes = [16, 256], strides = [1, 1]} : vector<16x290xf32> to vector<16x256xf32>
    %397 = vector.extract_strided_slice %0 {offsets = [2, 0], sizes = [1, 256], strides = [1, 1]} : vector<9x256xf32> to vector<1x256xf32>
    %398 = vector.broadcast %397 : vector<1x256xf32> to vector<16x256xf32>
    %399 = arith.mulf %396, %398 : vector<16x256xf32>
    %400 = vector.extract_strided_slice %390 {offsets = [0, 16], sizes = [16, 256], strides = [1, 1]} : vector<16x290xf32> to vector<16x256xf32>
    %401 = vector.extract_strided_slice %0 {offsets = [3, 0], sizes = [1, 256], strides = [1, 1]} : vector<9x256xf32> to vector<1x256xf32>
    %402 = vector.broadcast %401 : vector<1x256xf32> to vector<16x256xf32>
    %403 = arith.mulf %400, %402 : vector<16x256xf32>
    %404 = vector.extract_strided_slice %390 {offsets = [0, 18], sizes = [16, 256], strides = [1, 1]} : vector<16x290xf32> to vector<16x256xf32>
    %405 = vector.extract_strided_slice %0 {offsets = [5, 0], sizes = [1, 256], strides = [1, 1]} : vector<9x256xf32> to vector<1x256xf32>
    %406 = vector.broadcast %405 : vector<1x256xf32> to vector<16x256xf32>
    %407 = arith.mulf %404, %406 : vector<16x256xf32>
    %408 = vector.extract_strided_slice %390 {offsets = [0, 32], sizes = [16, 256], strides = [1, 1]} : vector<16x290xf32> to vector<16x256xf32>
    %409 = vector.extract_strided_slice %0 {offsets = [6, 0], sizes = [1, 256], strides = [1, 1]} : vector<9x256xf32> to vector<1x256xf32>
    %410 = vector.broadcast %409 : vector<1x256xf32> to vector<16x256xf32>
    %411 = arith.mulf %408, %410 : vector<16x256xf32>
    %412 = vector.extract_strided_slice %390 {offsets = [0, 33], sizes = [16, 256], strides = [1, 1]} : vector<16x290xf32> to vector<16x256xf32>
    %413 = vector.extract_strided_slice %390 {offsets = [0, 34], sizes = [16, 256], strides = [1, 1]} : vector<16x290xf32> to vector<16x256xf32>
    %414 = vector.extract_strided_slice %0 {offsets = [8, 0], sizes = [1, 256], strides = [1, 1]} : vector<9x256xf32> to vector<1x256xf32>
    %415 = vector.broadcast %414 : vector<1x256xf32> to vector<16x256xf32>
    %416 = arith.mulf %413, %415 : vector<16x256xf32>
    %417 = tpu.concatenate %394, %395, %399, %403, %387, %407, %411, %412, %416 in 0 : vector<16x256xf32>, vector<16x256xf32>, vector<16x256xf32>, vector<16x256xf32>, vector<16x256xf32>, vector<16x256xf32>, vector<16x256xf32>, vector<16x256xf32>, vector<16x256xf32> -> vector<144x256xf32>
    %cst_58 = arith.constant dense<0.000000e+00> : vector<64x256xf32>
    %418 = tpu.matmul %388, %417, %cst_58 {dimension_numbers = #tpu.dot_dimension_numbers<[1], [0], [0], [1], [0, 0, 1, 1], [], []>} : vector<64x144xf32>, vector<144x256xf32>, vector<64x256xf32> -> vector<64x256xf32>
    %c0_59 = arith.constant 0 : index
    %c0_60 = arith.constant 0 : index
    %419 = vector.load %arg11[%c0_59, %c0_60] : memref<12x576xf32, #tpu.memory_space<vmem>>, vector<12x576xf32>
    %cst_61 = arith.constant 0.000000e+00 : f32
    %420 = vector.broadcast %cst_61 : f32 to vector<64x17xf32>
    %421 = tpu.concatenate %420, %418, %420 in 1 : vector<64x17xf32>, vector<64x256xf32>, vector<64x17xf32> -> vector<64x290xf32>
    %422 = vector.extract_strided_slice %421 {offsets = [0, 0], sizes = [64, 256], strides = [1, 1]} : vector<64x290xf32> to vector<64x256xf32>
    %423 = vector.extract_strided_slice %0 {offsets = [0, 0], sizes = [1, 256], strides = [1, 1]} : vector<9x256xf32> to vector<1x256xf32>
    %424 = vector.broadcast %423 : vector<1x256xf32> to vector<64x256xf32>
    %425 = arith.mulf %422, %424 : vector<64x256xf32>
    %426 = vector.extract_strided_slice %421 {offsets = [0, 1], sizes = [64, 256], strides = [1, 1]} : vector<64x290xf32> to vector<64x256xf32>
    %427 = vector.extract_strided_slice %421 {offsets = [0, 2], sizes = [64, 256], strides = [1, 1]} : vector<64x290xf32> to vector<64x256xf32>
    %428 = vector.extract_strided_slice %0 {offsets = [2, 0], sizes = [1, 256], strides = [1, 1]} : vector<9x256xf32> to vector<1x256xf32>
    %429 = vector.broadcast %428 : vector<1x256xf32> to vector<64x256xf32>
    %430 = arith.mulf %427, %429 : vector<64x256xf32>
    %431 = vector.extract_strided_slice %421 {offsets = [0, 16], sizes = [64, 256], strides = [1, 1]} : vector<64x290xf32> to vector<64x256xf32>
    %432 = vector.extract_strided_slice %0 {offsets = [3, 0], sizes = [1, 256], strides = [1, 1]} : vector<9x256xf32> to vector<1x256xf32>
    %433 = vector.broadcast %432 : vector<1x256xf32> to vector<64x256xf32>
    %434 = arith.mulf %431, %433 : vector<64x256xf32>
    %435 = vector.extract_strided_slice %421 {offsets = [0, 18], sizes = [64, 256], strides = [1, 1]} : vector<64x290xf32> to vector<64x256xf32>
    %436 = vector.extract_strided_slice %0 {offsets = [5, 0], sizes = [1, 256], strides = [1, 1]} : vector<9x256xf32> to vector<1x256xf32>
    %437 = vector.broadcast %436 : vector<1x256xf32> to vector<64x256xf32>
    %438 = arith.mulf %435, %437 : vector<64x256xf32>
    %439 = vector.extract_strided_slice %421 {offsets = [0, 32], sizes = [64, 256], strides = [1, 1]} : vector<64x290xf32> to vector<64x256xf32>
    %440 = vector.extract_strided_slice %0 {offsets = [6, 0], sizes = [1, 256], strides = [1, 1]} : vector<9x256xf32> to vector<1x256xf32>
    %441 = vector.broadcast %440 : vector<1x256xf32> to vector<64x256xf32>
    %442 = arith.mulf %439, %441 : vector<64x256xf32>
    %443 = vector.extract_strided_slice %421 {offsets = [0, 33], sizes = [64, 256], strides = [1, 1]} : vector<64x290xf32> to vector<64x256xf32>
    %444 = vector.extract_strided_slice %421 {offsets = [0, 34], sizes = [64, 256], strides = [1, 1]} : vector<64x290xf32> to vector<64x256xf32>
    %445 = vector.extract_strided_slice %0 {offsets = [8, 0], sizes = [1, 256], strides = [1, 1]} : vector<9x256xf32> to vector<1x256xf32>
    %446 = vector.broadcast %445 : vector<1x256xf32> to vector<64x256xf32>
    %447 = arith.mulf %444, %446 : vector<64x256xf32>
    %448 = tpu.concatenate %425, %426, %430, %434, %418, %438, %442, %443, %447 in 0 : vector<64x256xf32>, vector<64x256xf32>, vector<64x256xf32>, vector<64x256xf32>, vector<64x256xf32>, vector<64x256xf32>, vector<64x256xf32>, vector<64x256xf32>, vector<64x256xf32> -> vector<576x256xf32>
    %cst_62 = arith.constant dense<0.000000e+00> : vector<12x256xf32>
    %449 = tpu.matmul %419, %448, %cst_62 {dimension_numbers = #tpu.dot_dimension_numbers<[1], [0], [0], [1], [0, 0, 1, 1], [], []>} : vector<12x576xf32>, vector<576x256xf32>, vector<12x256xf32> -> vector<12x256xf32>
    %c0_63 = arith.constant 0 : index
    %c0_64 = arith.constant 0 : index
    %c0_65 = arith.constant 0 : index
    %450 = vector.load %arg12[%c0_63, %c0_64, %c0_65] : memref<1x12x256xf32, #tpu.memory_space<vmem>>, vector<1x12x256xf32>
    %451 = vector.shape_cast %450 : vector<1x12x256xf32> to vector<12x256xf32>
    %452 = vector.shape_cast %449 : vector<12x256xf32> to vector<1x12x256xf32>
    tpu.vector_store %arg12[%c0_63, %c0_64, %c0_65], %452 {strides = array<i32>} : memref<1x12x256xf32, #tpu.memory_space<vmem>>, vector<1x12x256xf32>,
    return
  }
  func.func @transform_0(%arg0: i32) -> (i32, i32, i32) {
    %c0_i32 = arith.constant 0 : i32
    %c0_i32_0 = arith.constant 0 : i32
    %c0_i32_1 = arith.constant 0 : i32
    return %arg0, %c0_i32, %c0_i32_0 : i32, i32, i32
  }
  func.func @transform_1(%arg0: i32) -> (i32, i32) {
    %c0_i32 = arith.constant 0 : i32
    %c0_i32_0 = arith.constant 0 : i32
    %c0_i32_1 = arith.constant 0 : i32
    return %c0_i32, %c0_i32_0 : i32, i32
  }
  func.func @transform_2(%arg0: i32) -> (i32, i32) {
    %c0_i32 = arith.constant 0 : i32
    %c0_i32_0 = arith.constant 0 : i32
    %c0_i32_1 = arith.constant 0 : i32
    return %c0_i32, %c0_i32_0 : i32, i32
  }
  func.func @transform_3(%arg0: i32) -> (i32, i32) {
    %c0_i32 = arith.constant 0 : i32
    %c0_i32_0 = arith.constant 0 : i32
    %c0_i32_1 = arith.constant 0 : i32
    return %c0_i32, %c0_i32_0 : i32, i32
  }
  func.func @transform_4(%arg0: i32) -> (i32, i32) {
    %c0_i32 = arith.constant 0 : i32
    %c0_i32_0 = arith.constant 0 : i32
    %c0_i32_1 = arith.constant 0 : i32
    return %c0_i32, %c0_i32_0 : i32, i32
  }
  func.func @transform_5(%arg0: i32) -> (i32, i32) {
    %c0_i32 = arith.constant 0 : i32
    %c0_i32_0 = arith.constant 0 : i32
    %c0_i32_1 = arith.constant 0 : i32
    return %c0_i32, %c0_i32_0 : i32, i32
  }
  func.func @transform_6(%arg0: i32) -> (i32, i32) {
    %c0_i32 = arith.constant 0 : i32
    %c0_i32_0 = arith.constant 0 : i32
    %c0_i32_1 = arith.constant 0 : i32
    return %c0_i32, %c0_i32_0 : i32, i32
  }
  func.func @transform_7(%arg0: i32) -> (i32, i32) {
    %c0_i32 = arith.constant 0 : i32
    %c0_i32_0 = arith.constant 0 : i32
    %c0_i32_1 = arith.constant 0 : i32
    return %c0_i32, %c0_i32_0 : i32, i32
  }
  func.func @transform_8(%arg0: i32) -> (i32, i32) {
    %c0_i32 = arith.constant 0 : i32
    %c0_i32_0 = arith.constant 0 : i32
    %c0_i32_1 = arith.constant 0 : i32
    return %c0_i32, %c0_i32_0 : i32, i32
  }
  func.func @transform_9(%arg0: i32) -> (i32, i32) {
    %c0_i32 = arith.constant 0 : i32
    %c0_i32_0 = arith.constant 0 : i32
    %c0_i32_1 = arith.constant 0 : i32
    return %c0_i32, %c0_i32_0 : i32, i32
  }
  func.func @transform_10(%arg0: i32) -> (i32, i32) {
    %c0_i32 = arith.constant 0 : i32
    %c0_i32_0 = arith.constant 0 : i32
    %c0_i32_1 = arith.constant 0 : i32
    return %c0_i32, %c0_i32_0 : i32, i32
  }
  func.func @transform_11(%arg0: i32) -> (i32, i32, i32) {
    %c0_i32 = arith.constant 0 : i32
    %c0_i32_0 = arith.constant 0 : i32
    %c0_i32_1 = arith.constant 0 : i32
    return %arg0, %c0_i32, %c0_i32_0 : i32, i32, i32
  }
}

</mosaic_0001>

<bundles_post_ra>
// kernel: network_forward.1
= control target key start
LH: loop header
LB: loop body
LE: loop exit
PB: predicated region body
PF: predicated region fallthrough
CT: control target
= control target key end

     0   :  { %s9748_s0 = inlined_call_operand.vmem [shape: f32[2,3,256], index: 0, kind: input, shape index: {}]   ;;  %s9749_s1 = inlined_call_operand.hbm [shape: f32[9,256], index: 1, kind: input, shape index: {}]   ;;  %s9750_s2 = inlined_call_operand.hbm [shape: f32[12,27], index: 2, kind: input, shape index: {}]   ;;  %s9751_s3 = inlined_call_operand.hbm [shape: f32[4,12], index: 3, kind: input, shape index: {}]   ;;  %s9752_s4 = inlined_call_operand.hbm [shape: f32[4,12], index: 4, kind: input, shape index: {}]   ;;  %s9753_s5 = inlined_call_operand.hbm [shape: f32[16,72], index: 5, kind: input, shape index: {}]   ;;  %s9754_s6 = inlined_call_operand.hbm [shape: f32[4,12], index: 6, kind: input, shape index: {}]   ;;  %s9755_s7 = inlined_call_operand.hbm [shape: f32[4,16], index: 7, kind: input, shape index: {}]   ;;  %s9756_s8 = inlined_call_operand.hbm [shape: f32[16,72], index: 8, kind: input, shape index: {}]   ;;  %s9757_s9 = inlined_call_operand.hbm [shape: f32[64,144], index: 9, kind: input, shape index: {}]   ;;  %s9758_s10 = inlined_call_operand.hbm [shape: f32[12,576], index: 10, kind: input, shape index: {}]   ;;  %s9759_s11 = inlined_call_operand.vmem [shape: f32[2,12,256], index: 11, kind: output, shape index: {}]  }
   0x1   :  { %9867 = sst [smem:[#allocation86_spill]] %s9750_s2 }
   0x2   :  { %16 = vsyncpa [#allocation3], 0 }
   0x3   :  { %17 = vsyncpa [#allocation5], 0 }
   0x4   :  { %18 = vsyncpa [#allocation8], 0 }
   0x5   :  { %19 = vsyncpa [#allocation11], 0 }
   0x6   :  { %20 = vsyncpa [#allocation14], 0 }
   0x7   :  { %21 = vsyncpa [#allocation17], 0  ;;  %s6440_s17 = smov 0  }
   0x8 LB: > { %s9868_s2 = sld [smem:[#allocation86_spill]]  ;;  %s6449_s21 = sadd.s32 4294967295, %s6349_s17   ;;  %s6349_s17 = sphi %s6440_s17, %s27_s17  }
   0x9   : > { %p4837_p0 = scmp.ge.s32.totalorder %s6349_s17, 1  ;;  %p294_p1 = scmp.lt.s32.totalorder %s6349_s17, 3 }
   0xa   : > { %p4995_p2 = scmp.eq.s32.totalorder %s6449_s21, 0  ;;  %s6351_s23 = smov [#allocation4]  }
   0xb   : > { %p6454_p3 = pnand %p4837_p0, %p294_p1  ;;  %s321_s24 = sshll.u32 %s6351_s23, 4  ;;  %s322_s24 = int_to_ptr.vmem [resolvable:$true] %s321_s24 }
   0xc   : > { %s346_s27 = sshll.u32 %s9752_s4, 4  ;;  %s6352_s29 = smov [#allocation7]   ;;  %s347_s27 = int_to_ptr.hbm [resolvable:$true] %s346_s27 }
   0xd   : > { %p4964_p4 = pneg %p6454_p3  ;;  %s348_s30 = sshll.u32 %s6352_s29, 4  ;;  %s349_s30 = int_to_ptr.vmem [resolvable:$true] %s348_s30 }
   0xe   : > { %s319_s20 = sshll.u32 %s9868_s2, 4  ;;  %s372_s14 = sshll.u32 %s9754_s6, 4  ;;  %s320_s20 = int_to_ptr.hbm [resolvable:$true] %s319_s20  ;;  %s373_s14 = int_to_ptr.hbm [resolvable:$true] %s372_s14 }
   0xf   : > { %p6465_p5 = pnand %p4995_p2, %p4964_p4  ;;  %s9760_s15 = smov 128  }
  0x10   : > { %s6354_s16 = smov 8   ;;  %s6355_s18 = smov [#allocation10]  }
  0x11   : > { %4970 = dma.hbm_to_vmem [thread:$0]  (!%p6465_p5), %s320_s20, 256, %s322_s24, [#allocation5], %s9760_s15, %s9760_s15, %s6354_s16  }
  0x12   : > { %4976 = dma.hbm_to_vmem [thread:$0]  (!%p6465_p5), %s347_s27, 64, %s349_s30, [#allocation8]  }
  0x13   : > { %s374_s19 = sshll.u32 %s6355_s18, 4  ;;  %s395_s26 = sshll.u32 %s9756_s8, 4  ;;  %s375_s19 = int_to_ptr.vmem [resolvable:$true] %s374_s19  ;;  %s396_s26 = int_to_ptr.hbm [resolvable:$true] %s395_s26 }
  0x14   : > { %4982 = dma.hbm_to_vmem [thread:$0]  (!%p6465_p5), %s373_s14, 64, %s375_s19, [#allocation11]  }
  0x15   : > { %s305_s13 = sshll.u32 %s9749_s1, 4  ;;  %s6356_s2 = smov [#allocation13]   ;;  %s306_s13 = int_to_ptr.hbm [resolvable:$true] %s305_s13 }
  0x16   : > { %s397_s20 = sshll.u32 %s6356_s2, 4  ;;  %s6357_s24 = smov [#allocation2]   ;;  %s398_s20 = int_to_ptr.vmem [resolvable:$true] %s397_s20 }
  0x17   : > { %4988 = dma.hbm_to_vmem [thread:$0]  (!%p6465_p5), %s396_s26, 256, %s398_s20, [#allocation14], %s9760_s15, %s9760_s15, %s6354_s16  }
  0x18   : > { %s307_s27 = sshll.u32 %s6357_s24, 4  ;;  %s9761_s30 = smov 256   ;;  %s308_s27 = int_to_ptr.vmem [resolvable:$true] %s307_s27 }
  0x19   : > { %s6359_s14 = smov 16   ;;  %s334_s19 = sshll.u32 %s9751_s3, 4  ;;  %s335_s19 = int_to_ptr.hbm [resolvable:$true] %s334_s19 }
  0x1a   : > { %4967 = dma.hbm_to_vmem [thread:$0]  (!%p6465_p5), %s306_s13, 512, %s308_s27, [#allocation3], %s9761_s30, %s9761_s30, %s6359_s14  }
  0x1b   : > { %s6360_s23 = smov [#allocation6]   ;;  %s357_s12 = sshll.u32 %s9753_s5, 4  ;;  %s358_s12 = int_to_ptr.hbm [resolvable:$true] %s357_s12 }
  0x1c   : > { %s336_s25 = sshll.u32 %s6360_s23, 4  ;;  %s6361_s20 = smov [#allocation9]   ;;  %s337_s25 = int_to_ptr.vmem [resolvable:$true] %s336_s25 }
  0x1d   : > { %4973 = dma.hbm_to_vmem [thread:$0]  (!%p6465_p5), %s335_s19, 64, %s337_s25, [#allocation5]  }
  0x1e   : > { %s359_s24 = sshll.u32 %s6361_s20, 4  ;;  %s384_s27 = sshll.u32 %s9755_s7, 4  ;;  %s360_s24 = int_to_ptr.vmem [resolvable:$true] %s359_s24  ;;  %s385_s27 = int_to_ptr.hbm [resolvable:$true] %s384_s27 }
  0x1f   : > { %s9871_s2 = smov 128   ;;  %s409_s26 = sshll.u32 %s9757_s9, 4  ;;  %s410_s26 = int_to_ptr.hbm [resolvable:$true] %s409_s26 }
  0x20   : > { %4979 = dma.hbm_to_vmem [thread:$0]  (!%p6465_p5), %s358_s12, 256, %s360_s24, [#allocation8], %s9871_s2, %s9871_s2, %s6354_s16  }
  0x21   : > { %s6362_s19 = smov [#allocation12]   ;;  %s6363_s15 = smov [#allocation15]  }
  0x22   : > { %s386_s25 = sshll.u32 %s6362_s19, 4  ;;  %s411_s29 = sshll.u32 %s6363_s15, 4  ;;  %s387_s25 = int_to_ptr.vmem [resolvable:$true] %s386_s25  ;;  %s412_s29 = int_to_ptr.vmem [resolvable:$true] %s411_s29 }
  0x23   : > { %4985 = dma.hbm_to_vmem [thread:$0]  (!%p6465_p5), %s385_s27, 64, %s387_s25, [#allocation11]  }
  0x24   : > { %s423_s30 = sshll.u32 %s9758_s10, 4  ;;  %s9872_s16 = smov 256   ;;  %s424_s30 = int_to_ptr.hbm [resolvable:$true] %s423_s30 }
  0x25   : > { %4991 = dma.hbm_to_vmem [thread:$0]  (!%p6465_p5), %s410_s26, 2048, %s412_s29, [#allocation14], %s9872_s16, %s9872_s16, %s6359_s14  }
  0x26   : > { %s6364_s12 = smov [#allocation16]   ;;  %s6365_s2 = smov 640  }
  0x27   : > { %s425_s24 = sshll.u32 %s6364_s12, 4  ;;  %s6366_s18 = smov 40   ;;  %s426_s24 = int_to_ptr.vmem [resolvable:$true] %s425_s24 }
  0x28   : > { %4994 = dma.hbm_to_vmem [thread:$0]  (!%p6465_p5), %s424_s30, 1280, %s426_s24, [#allocation17], %s6365_s2, %s6365_s2, %s6366_s18  }
  0x29   : > { %449 = sbr.rel (%p6454_p3) target bundleno = 5177 (0x1439), region = 64 }
  0x2e   : > { %6324 = dma.done.wait (%p4995_p2), [#allocation3], 512  }
  0x2f   : > { %6326 = vsyncadd (%p4995_p2), [#allocation3], 4294966784 }
  0x30   : > { %6328 = dma.done.wait (%p4995_p2), [#allocation5], 320  }
  0x31   : > { %6330 = vsyncadd (%p4995_p2), [#allocation5], 4294966976 }
  0x32   : > { %6332 = dma.done.wait (%p4995_p2), [#allocation8], 320  }
  0x33   : > { %6334 = vsyncadd (%p4995_p2), [#allocation8], 4294966976 }
  0x34   : > { %6336 = dma.done.wait (%p4995_p2), [#allocation11], 128  }
  0x35   : > { %6338 = vsyncadd (%p4995_p2), [#allocation11], 4294967168 }
  0x36   : > { %6340 = dma.done.wait (%p4995_p2), [#allocation14], 2304  }
  0x37   : > { %6342 = vsyncadd (%p4995_p2), [#allocation14], 4294964992 }
  0x38   : > { %6344 = dma.done.wait (%p4995_p2), [#allocation17], 1280  }
  0x39   : > { %6346 = vsyncadd (%p4995_p2), [#allocation17], 4294966016  ;;  %p535_p6 = scmp.lt.s32.totalorder %s6449_s21, 1  ;;  %v6562_v0 = vld [vmem:[#allocation2] sm:$0xff]  ;;  %s6367_s27 = smov 18   ;;  %v6567_v5 = vld [vmem:[#allocation2 + $0x8] sm:$0xff] }
  0x3a   : > { %v603_v2 = vperm.slane %v6562_v0, 5  ;;  %v571_v3 = vperm.slane %v6562_v0, 2  ;;  %v619_v4 = vperm.slane %v6562_v0, 6  ;;  %s6368_s23 = smov 2   ;;  %s6369_s26 = smov 32   ;;  %v604_v6 = vperm.slane %v6567_v5, 5 }
  0x3b   : > { %s10090_s21 = smov (!%p535_p6, %s6449_s21), 1  ;;  %v620_v7 = vperm.slane %v6567_v5, 6  ;;  %s6370_s19 = smov 17   ;;  %v572_v10 = vperm.slane %v6567_v5, 2  ;;  %v587_v11 = vperm.slane %v6562_v0, 3  ;;  %v588_v13 = vperm.slane %v6567_v5, 3 }
  0x3c   : > { %s4922_s22 = sshll.u32 %s10090_s21, 3  ;;  %607 = vrot.lane.b32.xlu1 %v603_v2, %s6367_s27  ;;  %575 = vrot.lane.b32.xlu0 %v571_v3, %s6368_s23  ;;  %s6371_s25 = smov 16   ;;  %v6017_v12 = vld [vmem:[#allocation2 + $0x10] ss:$0 sm:$0xff]  ;;  %v6018_v14 = vld [vmem:[#allocation2 + $0x18] ss:$0 sm:$0xff] }
  0x3d   : > { %s539_s14 = scalar_lea.vmem %s9748_s0, %s4922_s22  ;;  %623 = vrot.lane.b32.xlu2 %v619_v4, %s6369_s26  ;;  %s6372_s15 = smov 34   ;;  %vm560_vm0 = vcmask 138240   ;;  %vm611_vm1 = vcmask 146432   ;;  %vm643_vm2 = vcmask 277504   ;;  %vm579_vm3 = vcmask 15360  }
  0x3e   : > { %v549_v1 = vld [vmem:[%s539_s14] sm:$0x77]  ;;  %s6373_s29 = smov 94   ;;  %s6374_s20 = smov 110   ;;  %vm595_vm4 = vcmask 130048   ;;  %vm627_vm5 = vcmask 261120  }
  0x3f   : > { %553 = vst [vmem:[#allocation1] ss:$2 sm:$0xff] %v549_v1  ;;  %s6375_s13 = smov 95   ;;  %s6376_s16 = smov 96   ;;  %vm764_vm6 = vcmask 769024   ;;  %vm767_vm7 = vcmask 1042432  }
  0x40   : > { %s6377_s12 = smov 126   ;;  %s6378_s24 = smov 112   ;;  %vm736_vm8 = vcmask 785408   ;;  %vm719_vm9 = vcmask 900096   ;;  %vm750_vm10 = vcmask 777216   ;;  %vm782_vm11 = vcmask 1041408  }
  0x41   : > { %s6379_s2 = smov 127   ;;  %vm785_vm12 = vcmask 1044480   ;;  %vm679_vm13 = vcmask 1031168   ;;  %vm696_vm14 = vcmask 916480   ;;  %vm773_vm15 = vcmask 1040384   ;;  %s4923_s18 = sshll.u32 %s10090_s21, 5 }
  0x42   : > { %s544_s30 = scalar_lea.vmem %s9759_s11, %s4923_s18 }
  0x44   : > { %609 = vrot.lane.b32.xlu1 %v604_v6, %s6367_s27 }
  0x45   : > { %625 = vrot.lane.b32.xlu2 %v620_v7, %s6369_s26 }
  0x46   : > { %v554_v8 = vld.sshfl [vmem:[#allocation1] sm:$0xff pattern:$0x75316420]  ;;  %v555_v9 = vld.sshfl [vmem:[#allocation1 + $0x8] sm:$0xff pattern:$0x75316420] }
  0x47   : > { %702 = vst [vmem:[#allocation1 + $0x1] ss:$2 sm:$0xff] %v549_v1  ;;  %556 = vrot.lane.b32.xlu0 %v554_v8, %s6370_s19 }
  0x4c   : > { %577 = vrot.lane.b32.xlu1 %v572_v10, %s6368_s23 }
  0x4d   : > { %591 = vrot.lane.b32.xlu2 %v587_v11, %s6371_s25 }
  0x4f   : > { %558 = vrot.lane.b32.xlu0 %v555_v9, %s6370_s19 }
  0x54   : > { %639 = vrot.lane.b32.xlu1 %v6017_v12, %s6372_s15 }
  0x55   : > { %641 = vrot.lane.b32.xlu2 %v6018_v14, %s6372_s15 }
  0x57   : > { %593 = vrot.lane.b32.xlu0 %v588_v13, %s6371_s25 }
  0x97   : > { %v6576_v15 = vpop.permute.xlu2 %623 }
  0x9f   : > { %v6578_v16 = vpop.permute.xlu2 %625 }
  0xa0   : > { %v6646_v48 = vsel %vm627_vm5, %v6576_v15, %v6578_v16  ;;  %vm770_vm5 = vcmask 1045504  }
  0xa7   : > { %v6584_v19 = vpop.permute.xlu2 %591 }
  0xae   : > { %v6580_v17 = vpop.permute.xlu1 %607  ;;  %v6582_v18 = vpop.permute.xlu0 %575 }
  0xaf   : > { %v6588_v22 = vpop.permute.xlu2 %641 }
  0xb6   : > { %v6586_v20 = vpop.permute.xlu1 %609 }
  0xb7   : > { %v6603_v28 = vsel %vm611_vm1, %v6580_v17, %v6586_v20  ;;  %vm776_vm1 = vcmask 1043456  }
  0xb9   : > { %v557_v21 = vpop.permute.xlu0 %556 }
  0xba   : > { %v6593_v25 = vsel %vm560_vm0, 0.0, %v557_v21 }
  0xbb   : > { %v616_v31 = vmul.f32 %v6580_v17, %v6593_v25  ;;  %v741_v41 = vrot.slane %v6593_v25, 3  ;;  %v584_v53 = vmul.f32 %v6582_v18, %v6593_v25  ;;  %v632_v54 = vmul.f32 %v6576_v15, %v6593_v25 }
  0xbc   : > { %v600_v55 = vmul.f32 %v6584_v19, %v6593_v25  ;;  %v653_v8 = vrot.slane %v6593_v25, 5 }
  0xbd   : > { %v710_v34 = vrot.slane %v616_v31, 1  ;;  %v670_v59 = vrot.slane %v584_v53, 2  ;;  %v727_v60 = vrot.slane %v632_v54, 6 }
  0xbe   : > { %v6590_v23 = vpop.permute.xlu1 %577  ;;  %v687_v61 = vrot.slane %v600_v55, 7 }
  0xbf   : > { %v6635_v44 = vsel %vm579_vm3, %v6582_v18, %v6590_v23  ;;  %vm662_vm3 = vcmask 1039360  }
  0xc1   : > { %v559_v24 = vpop.permute.xlu0 %558 }
  0xc2   : > { %v6596_v26 = vsel %vm560_vm0, %v557_v21, %v559_v24  ;;  %v6599_v27 = vsel %vm560_vm0, %v559_v24, 0.0 }
  0xc3   : > { %v650_v29 = vmul.f32 %v6588_v22, %v6599_v27  ;;  %v617_v30 = vmul.f32 %v6603_v28, %v6596_v26  ;;  %v618_v40 = vmul.f32 %v6586_v20, %v6599_v27  ;;  %v742_v42 = vrot.slane %v6596_v26, 3 }
  0xc4   : > { %v634_v43 = vmul.f32 %v6578_v16, %v6599_v27  ;;  %v585_v47 = vmul.f32 %v6635_v44, %v6596_v26  ;;  %v633_v51 = vmul.f32 %v6646_v48, %v6596_v26  ;;  %v586_v3 = vmul.f32 %v6590_v23, %v6599_v27 }
  0xc5   : > { %762 = vrot.lane.b32.xlu0 %v650_v29, %s6373_s29  ;;  %v711_v32 = vrot.slane %v617_v30, 1  ;;  %v712_v46 = vrot.slane %v618_v40, 1  ;;  %v5052_v49 = vpack.i.bf16 %v742_v42, %v741_v41  ;;  %v743_v7 = vrot.slane %v6599_v27, 3 }
  0xc6   : > { %v6612_v33 = vpop.permute.xlu1 %639  ;;  %v729_v50 = vrot.slane %v634_v43, 6  ;;  %v671_v56 = vrot.slane %v585_v47, 2  ;;  %v728_v57 = vrot.slane %v633_v51, 6  ;;  %v672_v6 = vrot.slane %v586_v3, 2 }
  0xc7   : > { %v648_v35 = vmul.f32 %v6612_v33, %v6593_v25  ;;  %v6618_v36 = vsel %vm643_vm2, %v6612_v33, %v6588_v22  ;;  %v5057_v38 = vpack.i.bf16 %v711_v32, %v710_v34  ;;  %v654_v9 = vrot.slane %v6596_v26, 5  ;;  %v704_v3 = vld.sshfl [vmem:[#allocation1 + $0x8] sm:$0xff pattern:$0x75316420] }
  0xc8   : > { %v649_v37 = vmul.f32 %v6618_v36, %v6596_v26  ;;  %v5067_v62 = vpack.i.bf16 %v671_v56, %v670_v59  ;;  %v5062_v63 = vpack.i.bf16 %v728_v57, %v727_v60  ;;  %v655_v11 = vrot.slane %v6599_v27, 5  ;;  %v703_v57 = vld.sshfl [vmem:[#allocation1] sm:$0xff pattern:$0x75316420] }
  0xc9   : > { %758 = vrot.lane.b32.xlu1 %v648_v35, %s6373_s29  ;;  %v6623_v39 = vpop.permute.xlu0 %593  ;;  %v5077_v10 = vpack.i.bf16 %v654_v9, %v653_v8  ;;  %vm779_vm2 = vcmask 1046528  }
  0xca   : > { %760 = vrot.lane.b32.xlu2 %v649_v37, %s6373_s29  ;;  %v6640_v45 = vsel %vm595_vm4, %v6584_v19, %v6623_v39  ;;  %v602_v2 = vmul.f32 %v6623_v39, %v6599_v27 }
  0xcb   : > { %v601_v52 = vmul.f32 %v6640_v45, %v6596_v26 }
  0xcc   : > { %v689_v4 = vrot.slane %v602_v2, 7 }
  0xcd   : > { %5058 = vrot.lane.b32.xlu0 %v5057_v38, %s6374_s20  ;;  %v688_v58 = vrot.slane %v601_v52, 7 }
  0xcf   : > { %v5072_v1 = vpack.i.bf16 %v688_v58, %v687_v61 }
  0xd1   : > { %717 = vrot.lane.b32.xlu1 %v712_v46, %s6374_s20 }
  0xd2   : > { %5053 = vrot.lane.b32.xlu2 %v5052_v49, %s6375_s13 }
  0xd5   : > { %734 = vrot.lane.b32.xlu0 %v729_v50, %s6376_s16 }
  0xd9   : > { %5068 = vrot.lane.b32.xlu1 %v5067_v62, %s6377_s12 }
  0xda   : > { %5063 = vrot.lane.b32.xlu2 %v5062_v63, %s6376_s16 }
  0xdd   : > { %5073 = vrot.lane.b32.xlu0 %v5072_v1, %s6378_s24 }
  0xe1   : > { %694 = vrot.lane.b32.xlu1 %v689_v4, %s6378_s24 }
  0xe2   : > { %677 = vrot.lane.b32.xlu2 %v672_v6, %s6377_s12 }
  0xe5   : > { %748 = vrot.lane.b32.xlu0 %v743_v7, %s6375_s13 }
  0xe9   : > { %5078 = vrot.lane.b32.xlu1 %v5077_v10, %s6379_s2 }
  0xea   : > { %660 = vrot.lane.b32.xlu2 %v655_v11, %s6379_s2 }
 0x124   : > { %v761_v12 = vpop.permute.xlu2 %760 }
 0x12c   : > { %v5054_v13 = vpop.permute.xlu2 %5053 }
 0x12d   : > { %v5056_v27 = vunpack.i.h.bf16 %v5054_v13  ;;  %v5055_v32 = vunpack.i.l.bf16 %v5054_v13 }
 0x12f   : > { %v751_v42 = vsel %vm750_vm10, %v5055_v32, %v5056_v27 }
 0x134   : > { %v5064_v24 = vpop.permute.xlu2 %5063 }
 0x135   : > { %v5066_v29 = vunpack.i.h.bf16 %v5064_v24  ;;  %v5065_v30 = vunpack.i.l.bf16 %v5064_v24 }
 0x137   : > { %v763_v14 = vpop.permute.xlu0 %762  ;;  %v737_v41 = vsel %vm736_vm8, %v5065_v30, %v5066_v29 }
 0x138   : > { %v766_v21 = vsel %vm764_vm6, %v761_v12, %v763_v14  ;;  %v6702_v14 = vperm.slane %v6562_v0, 0 }
 0x139   : > { %4867 = vmatpush.msk.msra.mxu1 %vm767_vm7, %v766_v21  ;;  %v6705_v21 = vperm.slane %v6567_v5, 0 }
 0x13a   : > { %9873 = vst [vmem:[#allocation24_spill] sm:$0xff] %v6702_v14 }
 0x13b   : > { %v759_v31 = vpop.permute.xlu1 %758  ;;  %9874 = vst [vmem:[#allocation25_spill] sm:$0xff] %v6705_v21  ;;  %v570_v32 = vmul.f32 %v6705_v21, %v6596_v26 }
 0x13c   : > { %v765_v35 = vsel %vm764_vm6, %v759_v31, %v761_v12  ;;  %v678_v1 = vpop.permute.xlu2 %677 }
 0x13d   : > { %4864 = vmatpush.msk.msra.mxu0 %vm767_vm7, %v765_v35 }
 0x13f   : > { %v5059_v34 = vpop.permute.xlu0 %5058 }
 0x140   : > { %v5061_v37 = vunpack.i.h.bf16 %v5059_v34  ;;  %v5060_v38 = vunpack.i.l.bf16 %v5059_v34 }
 0x142   : > { %v720_v40 = vsel %vm719_vm9, %v5060_v38, %v5061_v37 }
 0x143   : > { %v783_v43 = vsel %vm782_vm11, %v720_v40, %v737_v41  ;;  %v718_v47 = vpop.permute.xlu1 %717 }
 0x144   : > { %v786_v46 = vsel %vm785_vm12, %v783_v43, %v751_v42  ;;  %v721_v61 = vsel %vm719_vm9, %v5061_v37, %v718_v47  ;;  %v661_v31 = vpop.permute.xlu2 %660  ;;  %v550_v37 = vld [vmem:[#allocation4] sm:$0xff] }
 0x145   : > { %812 = vmatpush.msra.mxu0 %v786_v46 }
 0x147   : > { %v735_v49 = vpop.permute.xlu0 %734 }
 0x148   : > { %v738_v62 = vsel %vm736_vm8, %v5066_v29, %v735_v49 }
 0x149   : > { %v784_v10 = vsel %vm782_vm11, %v721_v61, %v738_v62  ;;  %vm788_vm11 = vcmask 220160  }
 0x14b   : > { %v5069_v50 = vpop.permute.xlu1 %5068 }
 0x14c   : > { %v5071_v51 = vunpack.i.h.bf16 %v5069_v50  ;;  %v5070_v52 = vunpack.i.l.bf16 %v5069_v50 }
 0x14e   : > { %v680_v56 = vsel %vm679_vm13, %v5070_v52, %v5071_v51  ;;  %v681_v4 = vsel %vm679_vm13, %v5071_v51, %v678_v1  ;;  %v845_v51 = vld [vmem:[#allocation6] sm:$0xf]  ;;  %v846_v52 = vld [vmem:[#allocation7] sm:$0xf] }
 0x14f   : > { %v5074_v53 = vpop.permute.xlu0 %5073 }
 0x150   : > { %v5076_v54 = vunpack.i.h.bf16 %v5074_v53  ;;  %v5075_v55 = vunpack.i.l.bf16 %v5074_v53 }
 0x152   : > { %v697_v58 = vsel %vm696_vm14, %v5075_v55, %v5076_v54 }
 0x153   : > { %v774_v59 = vsel %vm773_vm15, %v680_v56, %v697_v58  ;;  %v695_v2 = vpop.permute.xlu1 %694 }
 0x154   : > { %v777_v60 = vsel %vm776_vm1, %v774_v59, %v703_v57  ;;  %v698_v6 = vsel %vm696_vm14, %v5076_v54, %v695_v2 }
 0x155   : > { %v780_v63 = vsel %vm779_vm2, %v777_v60, %v720_v40  ;;  %v775_v8 = vsel %vm773_vm15, %v681_v4, %v698_v6 }
 0x156   : > { %813 = vmatpush.msra.mxu0 %v780_v63  ;;  %v778_v12 = vsel %vm776_vm1, %v775_v8, %v704_v3 }
 0x157   : > { %v749_v7 = vpop.permute.xlu0 %748  ;;  %v781_v13 = vsel %vm779_vm2, %v778_v12, %v721_v61 }
 0x158   : > { %v752_v9 = vsel %vm750_vm10, %v5056_v27, %v749_v7  ;;  %v569_v27 = vmul.f32 %v6702_v14, %v6593_v25  ;;  %v551_v25 = vld [vmem:[#allocation4 + $0x8] sm:$0xf] }
 0x159   : > { %v787_v11 = vsel %vm785_vm12, %v784_v10, %v752_v9  ;;  %vm1254_vm12 = vcmask 588800  }
 0x15a   : > { %835 = vmatpush.msra.mxu1 %v787_v11 }
 0x15b   : > { %v5079_v24 = vpop.permute.xlu1 %5078 }
 0x15c   : > { %836 = vmatpush.msra.mxu1 %v781_v13  ;;  %v5081_v29 = vunpack.i.h.bf16 %v5079_v24  ;;  %v5080_v30 = vunpack.i.l.bf16 %v5079_v24 }
 0x15e   : > { %v663_v34 = vsel %vm662_vm3, %v5080_v30, %v5081_v29  ;;  %v664_v0 = vsel %vm662_vm3, %v5081_v29, %v661_v31 }
 0x15f   : > { %v768_v5 = vsel %vm767_vm7, %v569_v27, %v663_v34  ;;  %v769_v35 = vsel %vm767_vm7, %v570_v32, %v664_v0  ;;  %vm853_vm7 = vcmask 97280  }
 0x160   : > { %v771_v38 = vsel %vm770_vm5, %v768_v5, %v680_v56  ;;  %v772_v40 = vsel %vm770_vm5, %v769_v35, %v681_v4 }
 0x161   : > { %814 = vmatpush.msra.mxu0 %v771_v38  ;;  %837 = vmatpush.msra.mxu1 %v772_v40 }
 0x162   : > { %4865 = vmatmul.msk.f32.vlgmr.msra.gmra.mxu0 %vm788_vm11, %v550_v37  ;;  %4868 = vmatmul.msk.f32.vlgmr.msra.gmra.mxu1 %vm788_vm11, %v550_v37 }
 0x16a   : > { %4866 = vmatmul.msk.f32.gmra.mxu0 %vm788_vm11, %v551_v25  ;;  %4869 = vmatmul.msk.f32.gmra.mxu1 %vm788_vm11, %v551_v25 }
 0x1df   : > { %v816_v26 = vpop.f32.mrf.mxu0  ;;  %v839_v41 = vpop.f32.mrf.mxu1 }
 0x1e0   : > { %v6719_v49 = vmax.f32 %v816_v26, 0.0  ;;  %v6721_v50 = vmax.f32 %v839_v41, 0.0 }
 0x1e7   : > { %v819_v42 = vpop.f32.mrf.mxu0  ;;  %v842_v43 = vpop.f32.mrf.mxu1 }
 0x1e8   : > { %v6715_v46 = vmax.f32 %v819_v42, 0.0  ;;  %v6717_v47 = vmax.f32 %v842_v43, 0.0 }
 0x1ea   : > { %4870 = vmatpush.msk.msra.mxu2 %vm776_vm1, %v6715_v46  ;;  %4872 = vmatpush.msk.msra.mxu3 %vm776_vm1, %v6717_v47 }
 0x1ec   : > { %878 = vmatpush.msra.mxu2 %v6719_v49  ;;  %898 = vmatpush.msra.mxu3 %v6721_v50 }
 0x1ed   : > { %4871 = vmatmul.msk.f32.vlgmr.msra.gmra.mxu2 %vm853_vm7, %v845_v51  ;;  %4873 = vmatmul.msk.f32.vlgmr.msra.gmra.mxu3 %vm853_vm7, %v845_v51 }
 0x1ee   : > { %4874 = vmatpush.msk.msrb.mxu2 %vm776_vm1, %v6715_v46  ;;  %4876 = vmatpush.msk.msrb.mxu3 %vm776_vm1, %v6717_v47 }
 0x1f0   : > { %921 = vmatpush.msrb.mxu2 %v6719_v49  ;;  %941 = vmatpush.msrb.mxu3 %v6721_v50 }
 0x1f5   : > { %4875 = vmatmul.msk.f32.vlgmr.msrb.gmra.mxu2 %vm853_vm7, %v846_v52  ;;  %4877 = vmatmul.msk.f32.vlgmr.msrb.gmra.mxu3 %vm853_vm7, %v846_v52 }
 0x270   : > { %v6739_v53 = vpop.f32.mrf.mxu2  ;;  %v6741_v54 = vpop.f32.mrf.mxu3 }
 0x271   : > { %v9763_v55 = vmax.f32 %v6739_v53, 0.0  ;;  %v9762_v60 = vmax.f32 %v6741_v54, 0.0 }
 0x273   : > { %950 = vrot.lane.b32.xlu2 %v9763_v55, %s6370_s19 }
 0x278   : > { %v6747_v56 = vpop.f32.mrf.mxu2  ;;  %v6749_v57 = vpop.f32.mrf.mxu3 }
 0x279   : > { %v1081_v58 = vmax.f32 %v6747_v56, 0.0  ;;  %v1082_v59 = vmax.f32 %v6749_v57, 0.0 }
 0x27b   : > { %1087 = vrot.lane.b32.xlu1 %v1082_v59, %s6370_s19  ;;  %1085 = vrot.lane.b32.xlu0 %v1081_v58, %s6370_s19 }
 0x283   : > { %952 = vrot.lane.b32.xlu0 %v9762_v60, %s6370_s19 }
 0x2cd   : > { %v951_v61 = vpop.permute.xlu2 %950 }
 0x2ce   : > { %v6764_v62 = vsel %vm560_vm0, 0.0, %v951_v61 }
 0x2cf   : > { %v971_v6 = vmul.f32 %v6764_v62, %v6576_v15  ;;  %v979_v27 = vrot.slane %v6764_v62, 4  ;;  %v962_v25 = vmul.f32 %v6764_v62, %v6582_v18  ;;  %v968_v43 = vmul.f32 %v6764_v62, %v6580_v17 }
 0x2ed   : > { %v1088_v63 = vpop.permute.xlu1 %1087  ;;  %v1086_v1 = vpop.permute.xlu0 %1085 }
 0x2ee   : > { %v1094_v2 = vsel %vm560_vm0, %v1088_v63, 0.0  ;;  %v6768_v3 = vsel %vm560_vm0, %v1086_v1, %v1088_v63  ;;  %v6771_v4 = vsel %vm560_vm0, 0.0, %v1086_v1  ;;  %v974_v63 = vmul.f32 %v6764_v62, %v6612_v33 }
 0x2ef   : > { %v1108_v7 = vmul.f32 %v1094_v2, %v6578_v16  ;;  %v1106_v8 = vmul.f32 %v6771_v4, %v6576_v15  ;;  %v1107_v9 = vmul.f32 %v6768_v3, %v6646_v48  ;;  %v1109_v13 = vmul.f32 %v6771_v4, %v6612_v33 }
 0x2f0   : > { %v1110_v24 = vmul.f32 %v6768_v3, %v6618_v36  ;;  %v1116_v29 = vrot.slane %v1094_v2, 4  ;;  %v1099_v37 = vmul.f32 %v1094_v2, %v6590_v23  ;;  %v1114_v38 = vrot.slane %v6771_v4, 4 }
 0x2f1   : > { %v5092_v10 = vpack.i.bf16 %v971_v6, %v1108_v7  ;;  %v5087_v11 = vpack.i.bf16 %v1107_v9, %v1106_v8  ;;  %v1115_v40 = vrot.slane %v6768_v3, 4  ;;  %v1105_v41 = vmul.f32 %v1094_v2, %v6586_v20 }
 0x2f2   : > { %v5107_v0 = vpack.i.bf16 %v1110_v24, %v1109_v13  ;;  %v5102_v5 = vpack.i.bf16 %v979_v27, %v1116_v29  ;;  %v5122_v26 = vpack.i.bf16 %v962_v25, %v1099_v37  ;;  %v1111_v52 = vmul.f32 %v1094_v2, %v6588_v22 }
 0x2f3   : > { %5093 = vrot.lane.b32.xlu2 %v5092_v10, %s6376_s16  ;;  %5088 = vrot.lane.b32.xlu1 %v5087_v11, %s6376_s16  ;;  %v5097_v42 = vpack.i.bf16 %v1115_v40, %v1114_v38  ;;  %v1161_v51 = vrot.slane %v1105_v41, 4  ;;  %v1103_v1 = vmul.f32 %v6771_v4, %v6580_v17  ;;  %v1104_v7 = vmul.f32 %v6768_v3, %v6603_v28 }
 0x2f4   : > { %v1100_v8 = vmul.f32 %v6771_v4, %v6584_v19  ;;  %v1101_v9 = vmul.f32 %v6768_v3, %v6640_v45  ;;  %v5112_v10 = vpack.i.bf16 %v974_v63, %v1111_v52  ;;  %v965_v37 = vmul.f32 %v6764_v62, %v6584_v19 }
 0x2f5   : > { %v953_v12 = vpop.permute.xlu0 %952  ;;  %v1159_v11 = vrot.slane %v1103_v1, 4 }
 0x2f6   : > { %v6787_v30 = vsel %vm560_vm0, %v951_v61, %v953_v12  ;;  %v6790_v31 = vsel %vm560_vm0, %v953_v12, 0.0  ;;  %v1024_v61 = vrot.slane %v968_v43, 4  ;;  %v1160_v12 = vrot.slane %v1104_v7, 4 }
 0x2f7   : > { %v975_v32 = vmul.f32 %v6787_v30, %v6618_v36  ;;  %v976_v34 = vmul.f32 %v6790_v31, %v6588_v22  ;;  %v1143_v13 = vrot.slane %v1100_v8, 4  ;;  %v1144_v24 = vrot.slane %v1101_v9, 4 }
 0x2f8   : > { %v5142_v6 = vpack.i.bf16 %v1024_v61, %v1161_v51  ;;  %v980_v38 = vrot.slane %v6787_v30, 4  ;;  %v981_v40 = vrot.slane %v6790_v31, 4  ;;  %v972_v25 = vmul.f32 %v6787_v30, %v6646_v48 }
 0x2f9   : > { %v5082_v35 = vpack.i.bf16 %v976_v34, %v975_v32  ;;  %v1098_v32 = vmul.f32 %v6768_v3, %v6635_v44  ;;  %v5132_v34 = vpack.i.bf16 %v1160_v12, %v1159_v11  ;;  %v1008_v41 = vrot.slane %v965_v37, 4 }
 0x2fa   : > { %v966_v51 = vmul.f32 %v6787_v30, %v6640_v45  ;;  %v967_v52 = vmul.f32 %v6790_v31, %v6623_v39  ;;  %v969_v63 = vmul.f32 %v6787_v30, %v6603_v28  ;;  %v970_v1 = vmul.f32 %v6790_v31, %v6586_v20 }
 0x2fb   : > { %5108 = vrot.lane.b32.xlu2 %v5107_v0, %s6373_s29  ;;  %5103 = vrot.lane.b32.xlu1 %v5102_v5, %s6375_s13  ;;  %v5147_v0 = vpack.i.bf16 %v1144_v24, %v1143_v13  ;;  %v963_v8 = vmul.f32 %v6787_v30, %v6635_v44  ;;  %v964_v9 = vmul.f32 %v6790_v31, %v6590_v23 }
 0x2fc   : > { %5083 = vrot.lane.b32.xlu0 %v5082_v35, %s6373_s29  ;;  %v1102_v35 = vmul.f32 %v1094_v2, %v6623_v39  ;;  %v1010_v7 = vrot.slane %v967_v52, 4  ;;  %v1026_v11 = vrot.slane %v970_v1, 4 }
 0x2fd   : > { %v5167_v13 = vpack.i.bf16 %v964_v9, %v963_v8 }
 0x2fe   : > { %v1145_v2 = vrot.slane %v1102_v35, 4 }
 0x300   : > { %v5157_v61 = vpack.i.bf16 %v1008_v41, %v1145_v2 }
 0x303   : > { %1121 = vrot.lane.b32.xlu2 %v1116_v29, %s6379_s2  ;;  %5123 = vrot.lane.b32.xlu1 %v5122_v26, %s6377_s12  ;;  %v1097_v29 = vmul.f32 %v6771_v4, %v6582_v18  ;;  %v973_v26 = vmul.f32 %v6790_v31, %v6578_v16 }
 0x304   : > { %5098 = vrot.lane.b32.xlu0 %v5097_v42, %s6375_s13 }
 0x305   : > { %v5117_v5 = vpack.i.bf16 %v1098_v32, %v1097_v29  ;;  %v5137_v43 = vpack.i.bf16 %v973_v26, %v972_v25  ;;  %v5177_v29 = vpack.i.bf16 %v980_v38, %v979_v27 }
 0x30b   : > { %5143 = vrot.lane.b32.xlu2 %v5142_v6, %s6374_s20  ;;  %5128 = vrot.lane.b32.xlu1 %v5097_v42, %s6379_s2  ;;  %v5152_v42 = vpack.i.bf16 %v981_v40, %v980_v38  ;;  %v1009_v6 = vrot.slane %v966_v51, 4 }
 0x30c   : > { %5113 = vrot.lane.b32.xlu0 %v5112_v10, %s6373_s29  ;;  %v1025_v10 = vrot.slane %v969_v63, 4 }
 0x30d   : > { %v5172_v12 = vpack.i.bf16 %v1010_v7, %v1009_v6 }
 0x30e   : > { %v5162_v24 = vpack.i.bf16 %v1026_v11, %v1025_v10 }
 0x313   : > { %5133 = vrot.lane.b32.xlu1 %v5132_v34, %s6374_s20  ;;  %5148 = vrot.lane.b32.xlu2 %v5147_v0, %s6378_s24 }
 0x314   : > { %5118 = vrot.lane.b32.xlu0 %v5117_v5, %s6377_s12 }
 0x31b   : > { %5153 = vrot.lane.b32.xlu2 %v5152_v42, %s6375_s13  ;;  %5138 = vrot.lane.b32.xlu1 %v5137_v43, %s6376_s16 }
 0x31c   : > { %5158 = vrot.lane.b32.xlu0 %v5157_v61, %s6378_s24 }
 0x323   : > { %5173 = vrot.lane.b32.xlu2 %v5172_v12, %s6378_s24  ;;  %5168 = vrot.lane.b32.xlu1 %v5167_v13, %s6377_s12 }
 0x324   : > { %5163 = vrot.lane.b32.xlu0 %v5162_v24, %s6374_s20 }
 0x32b   : > { %986 = vrot.lane.b32.xlu1 %v981_v40, %s6379_s2 }
 0x32c   : > { %5178 = vrot.lane.b32.xlu0 %v5177_v29, %s6379_s2 }
 0x34d   : > { %v6865_v32 = vpop.permute.xlu2 %5093 }
 0x34e   : > { %v5095_v7 = vunpack.i.l.bf16 %v6865_v32 }
 0x355   : > { %v5109_v31 = vpop.permute.xlu2 %5108 }
 0x356   : > { %v5111_v37 = vunpack.i.h.bf16 %v5109_v31  ;;  %v5110_v25 = vunpack.i.l.bf16 %v5109_v31 }
 0x358   : > { %v6878_v43 = vsel %vm764_vm6, %v5110_v25, %v5111_v37 }
 0x359   : > { %v1238_v6 = vrot.slane %v6878_v43, 4 }
 0x35d   : > { %v6869_v5 = vpop.permute.xlu2 %1121 }
 0x365   : > { %v5089_v34 = vpop.permute.xlu1 %5088  ;;  %v6875_v42 = vpop.permute.xlu2 %5143 }
 0x366   : > { %v5091_v26 = vunpack.i.h.bf16 %v5089_v34  ;;  %v5090_v2 = vunpack.i.l.bf16 %v5089_v34 }
 0x368   : > { %v1181_v51 = vsel %vm736_vm8, %v5090_v2, %v5091_v26  ;;  %v1182_v11 = vsel %vm736_vm8, %v5091_v26, %v5095_v7 }
 0x36d   : > { %v6867_v0 = vpop.permute.xlu1 %5103  ;;  %v5149_v31 = vpop.permute.xlu2 %5148 }
 0x36e   : > { %v6871_v35 = vpop.permute.xlu0 %5083  ;;  %v5105_v61 = vunpack.i.l.bf16 %v6867_v0  ;;  %v5150_v26 = vunpack.i.l.bf16 %v5149_v31 }
 0x375   : > { %v6873_v41 = vpop.permute.xlu1 %5123  ;;  %v6928_v56 = vpop.permute.xlu2 %5153 }
 0x376   : > { %v5099_v27 = vpop.permute.xlu0 %5098 }
 0x377   : > { %v5101_v38 = vunpack.i.h.bf16 %v5099_v27  ;;  %v5100_v40 = vunpack.i.l.bf16 %v5099_v27 }
 0x379   : > { %v1191_v52 = vsel %vm750_vm10, %v5100_v40, %v5101_v38  ;;  %v1192_v8 = vsel %vm750_vm10, %v5101_v38, %v5105_v61  ;;  %v5151_v40 = vunpack.i.h.bf16 %v5149_v31 }
 0x37a   : > { %v6884_v63 = vsel %vm776_vm1, %v1181_v51, %v1191_v52  ;;  %v6893_v24 = vsel %vm776_vm1, %v1182_v11, %v1192_v8  ;;  %v5145_v52 = vunpack.i.l.bf16 %v6875_v42 }
 0x37b   : > { %v1234_v1 = vrot.slane %v6884_v63, 4  ;;  %v1236_v34 = vrot.slane %v6893_v24, 4  ;;  %v1152_v31 = vsel %vm696_vm14, %v5150_v26, %v5151_v40 }
 0x37d   : > { %v5129_v9 = vpop.permute.xlu1 %5128  ;;  %v1239_v10 = vsel %vm776_vm1, %v1234_v1, %v1238_v6 }
 0x37e   : > { %v5114_v12 = vpop.permute.xlu0 %5113  ;;  %1265 = vmatpush.msrb.mxu0 %v1239_v10  ;;  %v5131_v2 = vunpack.i.h.bf16 %v5129_v9  ;;  %v5130_v27 = vunpack.i.l.bf16 %v5129_v9  ;;  %v1095_v9 = vmul.f32 %v6771_v4, %v6702_v14 }
 0x37f   : > { %v5115_v13 = vunpack.i.l.bf16 %v5114_v12 }
 0x380   : > { %v1123_v10 = vsel %vm662_vm3, %v5130_v27, %v5131_v2 }
 0x381   : > { %v6896_v29 = vsel %vm764_vm6, %v5111_v37, %v5115_v13 }
 0x382   : > { %v1240_v25 = vrot.slane %v6896_v29, 4 }
 0x384   : > { %v1241_v38 = vsel %vm776_vm1, %v1236_v34, %v1240_v25 }
 0x385   : > { %1285 = vmatpush.msrb.mxu1 %v1241_v38  ;;  %v5134_v51 = vpop.permute.xlu1 %5133 }
 0x386   : > { %v5136_v61 = vunpack.i.h.bf16 %v5134_v51  ;;  %v5135_v6 = vunpack.i.l.bf16 %v5134_v51  ;;  %v5119_v7 = vpop.permute.xlu0 %5118 }
 0x387   : > { %v5121_v37 = vunpack.i.h.bf16 %v5119_v7  ;;  %v5120_v8 = vunpack.i.l.bf16 %v5119_v7 }
 0x388   : > { %v1169_v11 = vsel %vm719_vm9, %v5136_v61, %v5145_v52  ;;  %v1168_v13 = vsel %vm719_vm9, %v5135_v6, %v5136_v61  ;;  %v6926_v61 = vsel %vm776_vm1, %v1095_v9, %v1123_v10  ;;  %v5116_v6 = vunpack.i.h.bf16 %v5114_v12 }
 0x389   : > { %v1136_v25 = vsel %vm679_vm13, %v5120_v8, %v5121_v37  ;;  %v6912_v38 = vsel %vm776_vm1, %v1081_v58, %v1168_v13  ;;  %v6917_v27 = vsel %vm776_vm1, %v1082_v59, %v1169_v11  ;;  %v5096_v59 = vunpack.i.h.bf16 %v6865_v32 }
 0x38a   : > { %v1230_v51 = vrot.slane %v6912_v38, 4  ;;  %v1232_v52 = vrot.slane %v6917_v27, 4  ;;  %v6922_v4 = vsel %vm776_vm1, %v1136_v25, %v1152_v31  ;;  %v5085_v8 = vunpack.i.l.bf16 %v6871_v35 }
 0x38b   : > { %v1226_v26 = vrot.slane %v6922_v4, 4  ;;  %v1224_v10 = vrot.slane %v6926_v61, 4  ;;  %v5125_v9 = vunpack.i.l.bf16 %v6873_v41  ;;  %v5106_v12 = vunpack.i.h.bf16 %v6867_v0 }
 0x38c   : > { %v1235_v58 = vsel %vm776_vm1, %v1230_v51, %v1234_v1  ;;  %v1237_v57 = vsel %vm776_vm1, %v1232_v52, %v1236_v34  ;;  %v5155_v1 = vunpack.i.l.bf16 %v6928_v56  ;;  %v1124_v34 = vsel %vm662_vm3, %v5131_v2, %v6869_v5 }
 0x38d   : > { %1266 = vmatpush.msrb.mxu0 %v1235_v58  ;;  %1286 = vmatpush.msrb.mxu1 %v1237_v57  ;;  %v5139_v7 = vpop.permute.xlu1 %5138  ;;  %v1231_v31 = vsel %vm776_vm1, %v1226_v26, %v1230_v51  ;;  %v1227_v25 = vsel %vm776_vm1, %v1224_v10, %v1226_v26  ;;  %v1096_v58 = vmul.f32 %v6768_v3, %v6705_v21 }
 0x38e   : > { %v5159_v11 = vpop.permute.xlu0 %5158  ;;  %v5140_v13 = vunpack.i.l.bf16 %v5139_v7  ;;  %v1137_v51 = vsel %vm679_vm13, %v5121_v37, %v5125_v9  ;;  %v1069_v60 = vsel %vm764_vm6, %v5116_v6, %v5085_v8  ;;  %v1056_v3 = vsel %vm750_vm10, %v5106_v12, %v5155_v1 }
 0x38f   : > { %v5160_v32 = vunpack.i.l.bf16 %v5159_v11  ;;  %1267 = vmatpush.msrb.mxu0 %v1231_v31  ;;  %v1252_v5 = vsel %vm776_vm1, %v1069_v60, %v1224_v10  ;;  %v6953_v0 = vsel %vm776_vm1, %v1096_v58, %v1124_v34  ;;  %v5141_v26 = vunpack.i.h.bf16 %v5139_v7 }
 0x390   : > { %v1046_v55 = vsel %vm736_vm8, %v5096_v59, %v5140_v13  ;;  %v1225_v31 = vrot.slane %v6953_v0, 4  ;;  %v5146_v10 = vunpack.i.h.bf16 %v6875_v42  ;;  %v5126_v9 = vunpack.i.h.bf16 %v6873_v41 }
 0x391   : > { %v1153_v57 = vsel %vm696_vm14, %v5151_v40, %v5160_v32  ;;  %1268 = vmatpush.msrb.mxu0 %v1227_v25  ;;  %v5086_v40 = vunpack.i.h.bf16 %v6871_v35  ;;  %v1079_v6 = vsel %vm776_vm1, %v1046_v55, %v1056_v3  ;;  %v5156_v34 = vunpack.i.h.bf16 %v6928_v56  ;;  %v5174_v32 = vpop.permute.xlu2 %5173 }
 0x392   : > { %v6950_v2 = vsel %vm776_vm1, %v1137_v51, %v1153_v57  ;;  %v5161_v35 = vunpack.i.h.bf16 %v5159_v11  ;;  %v1047_v57 = vsel %vm736_vm8, %v5140_v13, %v5141_v26  ;;  %v5175_v42 = vunpack.i.l.bf16 %v5174_v32 }
 0x393   : > { %1269 = vmatpush.msrb.mxu0 %v1252_v5  ;;  %v1228_v37 = vrot.slane %v6950_v2, 4  ;;  %v5176_v3 = vunpack.i.h.bf16 %v5174_v32  ;;  %v9875_v11 = vmax.f32 %v6739_v53, 0.0 }
 0x394   : > { %v1017_v13 = vsel %vm696_vm14, %v5161_v35, %v5175_v42 }
 0x395   : > { %1270 = vmatpush.msrb.mxu0 %v1079_v6  ;;  %v1233_v59 = vsel %vm776_vm1, %v1228_v37, %v1232_v52  ;;  %v5169_v60 = vpop.permute.xlu1 %5168  ;;  %v1229_v55 = vsel %vm776_vm1, %v1225_v31, %v1228_v37  ;;  %v1070_v52 = vsel %vm764_vm6, %v5085_v8, %v5086_v40  ;;  %v1057_v37 = vsel %vm750_vm10, %v5155_v1, %v5156_v34 }
 0x396   : > { %1287 = vmatpush.msrb.mxu1 %v1233_v59  ;;  %v5164_v12 = vpop.permute.xlu0 %5163  ;;  %v5170_v25 = vunpack.i.l.bf16 %v5169_v60  ;;  %v5171_v51 = vunpack.i.h.bf16 %v5169_v60  ;;  %v1253_v41 = vsel %vm776_vm1, %v1070_v52, %v1225_v31  ;;  %v1080_v8 = vsel %vm776_vm1, %v1047_v57, %v1057_v37 }
 0x397   : > { %v5166_v7 = vunpack.i.h.bf16 %v5164_v12  ;;  %v5165_v58 = vunpack.i.l.bf16 %v5164_v12  ;;  %v9876_v60 = vmax.f32 %v6741_v54, 0.0  ;;  %v1018_v1 = vsel %vm696_vm14, %v5175_v42, %v5176_v3 }
 0x398   : > { %1288 = vmatpush.msrb.mxu1 %v1229_v55  ;;  %v1001_v5 = vsel %vm679_vm13, %v5126_v9, %v5170_v25  ;;  %v1002_v26 = vsel %vm679_vm13, %v5170_v25, %v5171_v51  ;;  %v960_v12 = vmul.f32 %v6764_v62, %v6702_v14  ;;  %v961_v25 = vmul.f32 %v6787_v30, %v6705_v21 }
 0x399   : > { %v1033_v56 = vsel %vm719_vm9, %v5146_v10, %v5165_v58  ;;  %v1034_v59 = vsel %vm719_vm9, %v5165_v58, %v5166_v7  ;;  %v1075_v40 = vsel %vm776_vm1, %v1001_v5, %v1017_v13  ;;  %v1076_v34 = vsel %vm776_vm1, %v1002_v26, %v1018_v1  ;;  %v6990_v7 = vld [vmem:[#allocation9] sm:$0xff] }
 0x39a   : > { %1289 = vmatpush.msrb.mxu1 %v1253_v41  ;;  %v1077_v6 = vsel %vm776_vm1, %v9875_v11, %v1033_v56  ;;  %v1078_v53 = vsel %vm776_vm1, %v9876_v60, %v1034_v59 }
 0x39b   : > { %1271 = vmatpush.msrb.mxu0 %v1077_v6 }
 0x39c   : > { %1290 = vmatpush.msrb.mxu1 %v1080_v8 }
 0x39d   : > { %1272 = vmatpush.msrb.mxu0 %v1075_v40  ;;  %v987_v32 = vpop.permute.xlu1 %986 }
 0x39e   : > { %v5179_v31 = vpop.permute.xlu0 %5178  ;;  %1291 = vmatpush.msrb.mxu1 %v1078_v53 }
 0x39f   : > { %v5181_v10 = vunpack.i.h.bf16 %v5179_v31  ;;  %v5180_v9 = vunpack.i.l.bf16 %v5179_v31 }
 0x3a0   : > { %1292 = vmatpush.msrb.mxu1 %v1076_v34 }
 0x3a1   : > { %v989_v54 = vsel %vm662_vm3, %v5181_v10, %v987_v32  ;;  %v988_v35 = vsel %vm662_vm3, %v5180_v9, %v5181_v10 }
 0x3a2   : > { %v1073_v58 = vsel %vm776_vm1, %v960_v12, %v988_v35  ;;  %v1074_v55 = vsel %vm776_vm1, %v961_v25, %v989_v54 }
 0x3a3   : > { %1273 = vmatpush.msrb.mxu0 %v1073_v58  ;;  %1293 = vmatpush.msrb.mxu1 %v1074_v55 }
 0x3a4   : > { %4878 = vmatmul.msk.f32.vlgmr.msrb.gmra.mxu0 %vm1254_vm12, %v6990_v7  ;;  %4879 = vmatmul.msk.f32.vlgmr.msrb.gmra.mxu1 %vm1254_vm12, %v6990_v7 }
 0x421   : > { %v6998_v62 = vpop.f32.mrf.mxu0  ;;  %v7000_v30 = vpop.f32.mrf.mxu1 }
 0x422   : > { %v1298_v51 = vmax.f32 %v6998_v62, 0.0  ;;  %v1299_v52 = vmax.f32 %v7000_v30, 0.0 }
 0x424   : > { %1302 = vrot.lane.b32.xlu2 %v1298_v51, %s6370_s19  ;;  %1304 = vrot.lane.b32.xlu0 %v1299_v52, %s6370_s19 }
 0x47e   : > { %v1303_v57 = vpop.permute.xlu2 %1302 }
 0x47f   : > { %v7011_v42 = vsel %vm560_vm0, 0.0, %v1303_v57 }
 0x480   : > { %v1331_v56 = vrot.slane %v7011_v42, 4  ;;  %v1323_v37 = vmul.f32 %v7011_v42, %v6576_v15  ;;  %v1326_v26 = vmul.f32 %v7011_v42, %v6612_v33  ;;  %v1314_v34 = vmul.f32 %v7011_v42, %v6582_v18 }
 0x481   : > { %v1317_v54 = vmul.f32 %v7011_v42, %v6584_v19  ;;  %v1320_v55 = vmul.f32 %v7011_v42, %v6580_v17 }
 0x496   : > { %v1305_v41 = vpop.permute.xlu0 %1304 }
 0x497   : > { %v7015_v5 = vsel %vm560_vm0, %v1303_v57, %v1305_v41  ;;  %v1311_v3 = vsel %vm560_vm0, %v1305_v41, 0.0  ;;  %v1360_v57 = vrot.slane %v1317_v54, 4 }
 0x498   : > { %v1325_v11 = vmul.f32 %v1311_v3, %v6578_v16  ;;  %v1332_v6 = vrot.slane %v7015_v5, 4  ;;  %v1324_v59 = vmul.f32 %v7015_v5, %v6646_v48  ;;  %v1327_v40 = vmul.f32 %v7015_v5, %v6618_v36 }
 0x499   : > { %v1328_v53 = vmul.f32 %v1311_v3, %v6588_v22  ;;  %v1333_v31 = vrot.slane %v1311_v3, 4  ;;  %v1322_v1 = vmul.f32 %v1311_v3, %v6586_v20  ;;  %v1315_v10 = vmul.f32 %v7015_v5, %v6635_v44 }
 0x49a   : > { %1396 = vrot.lane.b32.xlu2 %v1325_v11, %s6376_s16  ;;  %v5187_v8 = vpack.i.bf16 %v1332_v6, %v1331_v56  ;;  %v5182_v13 = vpack.i.bf16 %v1324_v59, %v1323_v37  ;;  %v5192_v60 = vpack.i.bf16 %v1327_v40, %v1326_v26  ;;  %v1318_v32 = vmul.f32 %v7015_v5, %v6640_v45 }
 0x49b   : > { %v1378_v9 = vrot.slane %v1322_v1, 4  ;;  %v1316_v12 = vmul.f32 %v1311_v3, %v6590_v23  ;;  %v5197_v25 = vpack.i.bf16 %v1315_v10, %v1314_v34  ;;  %v1321_v35 = vmul.f32 %v7015_v5, %v6603_v28 }
 0x49c   : > { %5188 = vrot.lane.b32.xlu0 %v5187_v8, %s6375_s13  ;;  %5183 = vrot.lane.b32.xlu1 %v5182_v13, %s6376_s16  ;;  %v1361_v58 = vrot.slane %v1318_v32, 4  ;;  %v1319_v56 = vmul.f32 %v1311_v3, %v6623_v39  ;;  %v1376_v6 = vrot.slane %v1320_v55, 4 }
 0x49d   : > { %v1377_v41 = vrot.slane %v1321_v35, 4 }
 0x49e   : > { %v5207_v11 = vpack.i.bf16 %v1361_v58, %v1360_v57  ;;  %v1362_v59 = vrot.slane %v1319_v56, 4 }
 0x49f   : > { %v5202_v37 = vpack.i.bf16 %v1377_v41, %v1376_v6 }
 0x4a2   : > { %5193 = vrot.lane.b32.xlu2 %v5192_v60, %s6373_s29 }
 0x4a4   : > { %1419 = vrot.lane.b32.xlu0 %v1328_v53, %s6373_s29  ;;  %1406 = vrot.lane.b32.xlu1 %v1333_v31, %s6375_s13 }
 0x4aa   : > { %1383 = vrot.lane.b32.xlu2 %v1378_v9, %s6374_s20 }
 0x4ac   : > { %1351 = vrot.lane.b32.xlu1 %v1316_v12, %s6377_s12  ;;  %5198 = vrot.lane.b32.xlu0 %v5197_v25, %s6377_s12 }
 0x4b2   : > { %5208 = vrot.lane.b32.xlu2 %v5207_v11, %s6378_s24 }
 0x4b4   : > { %5203 = vrot.lane.b32.xlu1 %v5202_v37, %s6374_s20  ;;  %1367 = vrot.lane.b32.xlu0 %v1362_v59, %s6378_s24 }
 0x4ba   : > { %1338 = vrot.lane.b32.xlu2 %v1333_v31, %s6379_s2 }
 0x4bc   : > { %5213 = vrot.lane.b32.xlu1 %v5187_v8, %s6379_s2 }
 0x4f4   : > { %v1397_v13 = vpop.permute.xlu2 %1396 }
 0x4fc   : > { %v5194_v40 = vpop.permute.xlu2 %5193 }
 0x4fd   : > { %v5196_v26 = vunpack.i.h.bf16 %v5194_v40  ;;  %v5195_v60 = vunpack.i.l.bf16 %v5194_v40 }
 0x4ff   : > { %v7059_v32 = vsel %vm764_vm6, %v5195_v60, %v5196_v26 }
 0x500   : > { %v1455_v54 = vrot.slane %v7059_v32, 4 }
 0x504   : > { %v1384_v11 = vpop.permute.xlu2 %1383 }
 0x50e   : > { %v5189_v53 = vpop.permute.xlu0 %5188  ;;  %v5184_v3 = vpop.permute.xlu1 %5183 }
 0x50f   : > { %v5191_v1 = vunpack.i.h.bf16 %v5189_v53  ;;  %v5190_v10 = vunpack.i.l.bf16 %v5189_v53  ;;  %v5186_v9 = vunpack.i.h.bf16 %v5184_v3  ;;  %v5185_v34 = vunpack.i.l.bf16 %v5184_v3 }
 0x511   : > { %v1408_v12 = vsel %vm750_vm10, %v5190_v10, %v5191_v1  ;;  %v1398_v25 = vsel %vm736_vm8, %v5185_v34, %v5186_v9  ;;  %v1399_v41 = vsel %vm736_vm8, %v5186_v9, %v1397_v13 }
 0x512   : > { %v7064_v31 = vsel %vm776_vm1, %v1398_v25, %v1408_v12 }
 0x513   : > { %v1451_v8 = vrot.slane %v7064_v31, 4 }
 0x515   : > { %v1456_v55 = vsel %vm776_vm1, %v1451_v8, %v1455_v54 }
 0x516   : > { %v1420_v35 = vpop.permute.xlu0 %1419  ;;  %v1407_v58 = vpop.permute.xlu1 %1406  ;;  %1481 = vmatpush.msra.mxu2 %v1456_v55 }
 0x517   : > { %v7070_v57 = vsel %vm764_vm6, %v5196_v26, %v1420_v35  ;;  %v1409_v56 = vsel %vm750_vm10, %v5191_v1, %v1407_v58  ;;  %v5209_v26 = vpop.permute.xlu2 %5208 }
 0x518   : > { %v1457_v6 = vrot.slane %v7070_v57, 4  ;;  %v7076_v37 = vsel %vm776_vm1, %v1399_v41, %v1409_v56  ;;  %v5211_v13 = vunpack.i.h.bf16 %v5209_v26  ;;  %v5210_v9 = vunpack.i.l.bf16 %v5209_v26 }
 0x519   : > { %v1453_v59 = vrot.slane %v7076_v37, 4 }
 0x51a   : > { %v1369_v58 = vsel %vm696_vm14, %v5210_v9, %v5211_v13 }
 0x51b   : > { %v1458_v40 = vsel %vm776_vm1, %v1453_v59, %v1457_v6 }
 0x51c   : > { %1501 = vmatpush.msra.mxu3 %v1458_v40 }
 0x51e   : > { %v1352_v60 = vpop.permute.xlu1 %1351  ;;  %v5199_v53 = vpop.permute.xlu0 %5198 }
 0x51f   : > { %v5201_v3 = vunpack.i.h.bf16 %v5199_v53  ;;  %v5200_v10 = vunpack.i.l.bf16 %v5199_v53 }
 0x521   : > { %v1353_v12 = vsel %vm679_vm13, %v5200_v10, %v5201_v3  ;;  %v1354_v56 = vsel %vm679_vm13, %v5201_v3, %v1352_v60 }
 0x522   : > { %v7100_v26 = vsel %vm776_vm1, %v1353_v12, %v1369_v58 }
 0x526   : > { %v5204_v1 = vpop.permute.xlu1 %5203  ;;  %v1368_v34 = vpop.permute.xlu0 %1367 }
 0x527   : > { %v5206_v25 = vunpack.i.h.bf16 %v5204_v1  ;;  %v5205_v54 = vunpack.i.l.bf16 %v5204_v1  ;;  %v1370_v35 = vsel %vm696_vm14, %v5211_v13, %v1368_v34 }
 0x528   : > { %v7087_v6 = vsel %vm776_vm1, %v1354_v56, %v1370_v35 }
 0x529   : > { %v1386_v55 = vsel %vm719_vm9, %v5206_v25, %v1384_v11  ;;  %v1385_v41 = vsel %vm719_vm9, %v5205_v54, %v5206_v25  ;;  %v1445_v3 = vrot.slane %v7087_v6, 4  ;;  %v1339_v25 = vpop.permute.xlu2 %1338  ;;  %v1312_v54 = vmul.f32 %v7011_v42, %v6702_v14 }
 0x52a   : > { %v7092_v40 = vsel %vm776_vm1, %v1298_v51, %v1385_v41  ;;  %v7097_v53 = vsel %vm776_vm1, %v1299_v52, %v1386_v55  ;;  %v1443_v51 = vrot.slane %v7100_v26, 4 }
 0x52b   : > { %v1447_v11 = vrot.slane %v7092_v40, 4  ;;  %v1449_v60 = vrot.slane %v7097_v53, 4 }
 0x52d   : > { %v1452_v10 = vsel %vm776_vm1, %v1447_v11, %v1451_v8  ;;  %v1454_v13 = vsel %vm776_vm1, %v1449_v60, %v1453_v59  ;;  %v1448_v34 = vsel %vm776_vm1, %v1443_v51, %v1447_v11  ;;  %v1450_v12 = vsel %vm776_vm1, %v1445_v3, %v1449_v60 }
 0x52e   : > { %v5214_v9 = vpop.permute.xlu1 %5213  ;;  %1482 = vmatpush.msra.mxu2 %v1452_v10  ;;  %1502 = vmatpush.msra.mxu3 %v1454_v13  ;;  %v1313_v8 = vmul.f32 %v7015_v5, %v6705_v21 }
 0x52f   : > { %v5216_v52 = vunpack.i.h.bf16 %v5214_v9  ;;  %v5215_v1 = vunpack.i.l.bf16 %v5214_v9 }
 0x530   : > { %1483 = vmatpush.msra.mxu2 %v1448_v34  ;;  %1503 = vmatpush.msra.mxu3 %v1450_v12 }
 0x531   : > { %v1340_v59 = vsel %vm662_vm3, %v5215_v1, %v5216_v52  ;;  %v1341_v35 = vsel %vm662_vm3, %v5216_v52, %v1339_v25 }
 0x532   : > { %v7117_v58 = vsel %vm776_vm1, %v1312_v54, %v1340_v59  ;;  %v7120_v55 = vsel %vm776_vm1, %v1313_v8, %v1341_v35 }
 0x533   : > { %v1441_v41 = vrot.slane %v7117_v58, 4  ;;  %v1442_v56 = vrot.slane %v7120_v55, 4 }
 0x535   : > { %v1444_v11 = vsel %vm776_vm1, %v1441_v41, %v1443_v51  ;;  %v1446_v42 = vsel %vm776_vm1, %v1442_v56, %v1445_v3  ;;  %v1469_v5 = vsel %vm776_vm1, %v6878_v43, %v1441_v41  ;;  %v1470_v60 = vsel %vm776_vm1, %v6896_v29, %v1442_v56 }
 0x536   : > { %1484 = vmatpush.msra.mxu2 %v1444_v11  ;;  %1504 = vmatpush.msra.mxu3 %v1446_v42  ;;  %v1471_v3 = vrot.slane %v6990_v7, 4 }
 0x538   : > { %1485 = vmatpush.msra.mxu2 %v1469_v5  ;;  %1505 = vmatpush.msra.mxu3 %v1470_v60 }
 0x53a   : > { %1486 = vmatpush.msra.mxu2 %v6884_v63  ;;  %1506 = vmatpush.msra.mxu3 %v6893_v24 }
 0x53c   : > { %1487 = vmatpush.msra.mxu2 %v6912_v38  ;;  %1507 = vmatpush.msra.mxu3 %v6917_v27 }
 0x53e   : > { %1488 = vmatpush.msra.mxu2 %v6922_v4  ;;  %1508 = vmatpush.msra.mxu3 %v6950_v2 }
 0x540   : > { %1489 = vmatpush.msra.mxu2 %v6926_v61  ;;  %1509 = vmatpush.msra.mxu3 %v6953_v0 }
 0x541   : > { %4880 = vmatmul.msk.f32.vlgmr.msra.gmra.mxu2 %vm1254_vm12, %v1471_v3  ;;  %4881 = vmatmul.msk.f32.vlgmr.msra.gmra.mxu3 %vm1254_vm12, %v1471_v3 }
 0x5c4   : > { %v7141_v43 = vpop.f32.mrf.mxu2  ;;  %v7143_v63 = vpop.f32.mrf.mxu3 }
 0x5c5   : > { %v1514_v24 = vmax.f32 %v7141_v43, 0.0  ;;  %v1515_v29 = vmax.f32 %v7143_v63, 0.0 }
 0x5c7   : > { %1518 = vrot.lane.b32.xlu0 %v1514_v24, %s6370_s19  ;;  %1520 = vrot.lane.b32.xlu1 %v1515_v29, %s6370_s19 }
 0x639   : > { %v1519_v38 = vpop.permute.xlu0 %1518  ;;  %v1521_v27 = vpop.permute.xlu1 %1520 }
 0x63a   : > { %v7154_v4 = vsel %vm560_vm0, 0.0, %v1519_v38  ;;  %v7157_v61 = vsel %vm560_vm0, %v1519_v38, %v1521_v27  ;;  %v1527_v2 = vsel %vm560_vm0, %v1521_v27, 0.0 }
 0x63b   : > { %v1541_v0 = vmul.f32 %v1527_v2, %v6578_v16  ;;  %v1547_v7 = vrot.slane %v7154_v4, 4  ;;  %v1548_v10 = vrot.slane %v7157_v61, 4  ;;  %v1539_v13 = vmul.f32 %v7154_v4, %v6576_v15 }
 0x63c   : > { %v1540_v51 = vmul.f32 %v7157_v61, %v6646_v48  ;;  %v1542_v1 = vmul.f32 %v7154_v4, %v6612_v33  ;;  %v1543_v34 = vmul.f32 %v7157_v61, %v6618_v36  ;;  %v1544_v25 = vmul.f32 %v1527_v2, %v6588_v22 }
 0x63d   : > { %1612 = vrot.lane.b32.xlu0 %v1541_v0, %s6376_s16  ;;  %v5222_v9 = vpack.i.bf16 %v1548_v10, %v1547_v7  ;;  %v1549_v54 = vrot.slane %v1527_v2, 4  ;;  %v1538_v8 = vmul.f32 %v1527_v2, %v6586_v20  ;;  %v1530_v59 = vmul.f32 %v7154_v4, %v6582_v18 }
 0x63e   : > { %v5217_v52 = vpack.i.bf16 %v1540_v51, %v1539_v13  ;;  %v5227_v12 = vpack.i.bf16 %v1543_v34, %v1542_v1  ;;  %v1531_v35 = vmul.f32 %v7157_v61, %v6635_v44  ;;  %v1533_v56 = vmul.f32 %v7154_v4, %v6584_v19 }
 0x63f   : > { %5223 = vrot.lane.b32.xlu1 %v5222_v9, %s6375_s13  ;;  %v1594_v41 = vrot.slane %v1538_v8, 4  ;;  %v1534_v11 = vmul.f32 %v7157_v61, %v6640_v45  ;;  %v1532_v5 = vmul.f32 %v1527_v2, %v6590_v23  ;;  %v1536_v60 = vmul.f32 %v7154_v4, %v6580_v17 }
 0x640   : > { %5218 = vrot.lane.b32.xlu2 %v5217_v52, %s6376_s16  ;;  %v5232_v42 = vpack.i.bf16 %v1531_v35, %v1530_v59  ;;  %v1537_v3 = vmul.f32 %v7157_v61, %v6603_v28  ;;  %v1576_v38 = vrot.slane %v1533_v56, 4  ;;  %v1535_v0 = vmul.f32 %v1527_v2, %v6623_v39 }
 0x641   : > { %v1577_v27 = vrot.slane %v1534_v11, 4  ;;  %v1592_v7 = vrot.slane %v1536_v60, 4 }
 0x642   : > { %v1593_v10 = vrot.slane %v1537_v3, 4  ;;  %v1578_v51 = vrot.slane %v1535_v0, 4 }
 0x643   : > { %v5242_v13 = vpack.i.bf16 %v1577_v27, %v1576_v38 }
 0x644   : > { %v5237_v52 = vpack.i.bf16 %v1593_v10, %v1592_v7 }
 0x645   : > { %5228 = vrot.lane.b32.xlu0 %v5227_v12, %s6373_s29 }
 0x647   : > { %1635 = vrot.lane.b32.xlu1 %v1544_v25, %s6373_s29 }
 0x648   : > { %1622 = vrot.lane.b32.xlu2 %v1549_v54, %s6375_s13 }
 0x64d   : > { %1599 = vrot.lane.b32.xlu0 %v1594_v41, %s6374_s20 }
 0x64f   : > { %5233 = vrot.lane.b32.xlu1 %v5232_v42, %s6377_s12 }
 0x650   : > { %1567 = vrot.lane.b32.xlu2 %v1532_v5, %s6377_s12 }
 0x655   : > { %5243 = vrot.lane.b32.xlu0 %v5242_v13, %s6378_s24 }
 0x657   : > { %1583 = vrot.lane.b32.xlu1 %v1578_v51, %s6378_s24 }
 0x658   : > { %5238 = vrot.lane.b32.xlu2 %v5237_v52, %s6374_s20 }
 0x65d   : > { %1554 = vrot.lane.b32.xlu0 %v1549_v54, %s6379_s2 }
 0x660   : > { %5248 = vrot.lane.b32.xlu2 %v5222_v9, %s6379_s2 }
 0x69a   : > { %v5219_v1 = vpop.permute.xlu2 %5218 }
 0x69b   : > { %v5221_v8 = vunpack.i.h.bf16 %v5219_v1  ;;  %v5220_v59 = vunpack.i.l.bf16 %v5219_v1 }
 0x69d   : > { %v1614_v9 = vsel %vm736_vm8, %v5220_v59, %v5221_v8 }
 0x6a2   : > { %v1623_v34 = vpop.permute.xlu2 %1622 }
 0x6aa   : > { %v1568_v12 = vpop.permute.xlu2 %1567 }
 0x6af   : > { %v1613_v25 = vpop.permute.xlu0 %1612 }
 0x6b0   : > { %v1615_v3 = vsel %vm736_vm8, %v5221_v8, %v1613_v25 }
 0x6b1   : > { %v5224_v2 = vpop.permute.xlu1 %5223 }
 0x6b2   : > { %v5226_v35 = vunpack.i.h.bf16 %v5224_v2  ;;  %v5225_v41 = vunpack.i.l.bf16 %v5224_v2  ;;  %v5239_v56 = vpop.permute.xlu2 %5238 }
 0x6b3   : > { %v5241_v11 = vunpack.i.h.bf16 %v5239_v56  ;;  %v5240_v42 = vunpack.i.l.bf16 %v5239_v56 }
 0x6b4   : > { %v1624_v5 = vsel %vm750_vm10, %v5225_v41, %v5226_v35  ;;  %v1625_v60 = vsel %vm750_vm10, %v5226_v35, %v1623_v34 }
 0x6b5   : > { %v1601_v54 = vsel %vm719_vm9, %v5240_v42, %v5241_v11  ;;  %v7207_v27 = vsel %vm776_vm1, %v1614_v9, %v1624_v5  ;;  %v7210_v10 = vsel %vm776_vm1, %v1615_v3, %v1625_v60 }
 0x6b6   : > { %v7215_v13 = vsel %vm776_vm1, %v1514_v24, %v1601_v54  ;;  %v1667_v34 = vrot.slane %v7207_v27, 4  ;;  %v1669_v8 = vrot.slane %v7210_v10, 4 }
 0x6b7   : > { %v5229_v38 = vpop.permute.xlu0 %5228  ;;  %v1663_v59 = vrot.slane %v7215_v13, 4 }
 0x6b8   : > { %v5231_v0 = vunpack.i.h.bf16 %v5229_v38  ;;  %v5230_v7 = vunpack.i.l.bf16 %v5229_v38 }
 0x6b9   : > { %v1636_v51 = vpop.permute.xlu1 %1635  ;;  %v1668_v56 = vsel %vm776_vm1, %v1663_v59, %v1667_v34 }
 0x6ba   : > { %v7218_v52 = vsel %vm764_vm6, %v5230_v7, %v5231_v0  ;;  %v7221_v1 = vsel %vm764_vm6, %v5231_v0, %v1636_v51  ;;  %v5249_v5 = vpop.permute.xlu2 %5248 }
 0x6bb   : > { %v1673_v25 = vrot.slane %v7221_v1, 4  ;;  %v1671_v2 = vrot.slane %v7218_v52, 4  ;;  %v5251_v3 = vunpack.i.h.bf16 %v5249_v5  ;;  %v5250_v38 = vunpack.i.l.bf16 %v5249_v5 }
 0x6bd   : > { %v1672_v24 = vsel %vm776_vm1, %v1667_v34, %v1671_v2  ;;  %v1674_v35 = vsel %vm776_vm1, %v1669_v8, %v1673_v25 }
 0x6be   : > { %1697 = vmatpush.msra.mxu0 %v1672_v24  ;;  %1717 = vmatpush.msra.mxu1 %v1674_v35 }
 0x6bf   : > { %v1600_v41 = vpop.permute.xlu0 %1599 }
 0x6c0   : > { %v1602_v42 = vsel %vm719_vm9, %v5241_v11, %v1600_v41  ;;  %1698 = vmatpush.msra.mxu0 %v1668_v56  ;;  %v1556_v11 = vsel %vm662_vm3, %v5250_v38, %v5251_v3 }
 0x6c1   : > { %v7235_v60 = vsel %vm776_vm1, %v1515_v29, %v1602_v42  ;;  %v5234_v54 = vpop.permute.xlu1 %5233  ;;  %v1528_v29 = vmul.f32 %v7154_v4, %v6702_v14 }
 0x6c2   : > { %v1665_v9 = vrot.slane %v7235_v60, 4  ;;  %v5236_v7 = vunpack.i.h.bf16 %v5234_v54  ;;  %v5235_v51 = vunpack.i.l.bf16 %v5234_v54 }
 0x6c3   : > { %v7253_v54 = vsel %vm776_vm1, %v1528_v29, %v1556_v11 }
 0x6c4   : > { %v1670_v0 = vsel %vm776_vm1, %v1665_v9, %v1669_v8  ;;  %v1569_v35 = vsel %vm679_vm13, %v5235_v51, %v5236_v7  ;;  %v1570_v56 = vsel %vm679_vm13, %v5236_v7, %v1568_v12  ;;  %v1657_v12 = vrot.slane %v7253_v54, 4 }
 0x6c5   : > { %1718 = vmatpush.msra.mxu1 %v1670_v0 }
 0x6c7   : > { %v5244_v34 = vpop.permute.xlu0 %5243 }
 0x6c8   : > { %v5246_v25 = vunpack.i.h.bf16 %v5244_v34  ;;  %v5245_v2 = vunpack.i.l.bf16 %v5244_v34  ;;  %v1529_v34 = vmul.f32 %v7157_v61, %v6705_v21 }
 0x6c9   : > { %v1584_v24 = vpop.permute.xlu1 %1583 }
 0x6ca   : > { %v1585_v41 = vsel %vm696_vm14, %v5245_v2, %v5246_v25  ;;  %v1586_v8 = vsel %vm696_vm14, %v5246_v25, %v1584_v24 }
 0x6cb   : > { %v7247_v42 = vsel %vm776_vm1, %v1570_v56, %v1586_v8  ;;  %v7250_v5 = vsel %vm776_vm1, %v1569_v35, %v1585_v41 }
 0x6cc   : > { %v1661_v38 = vrot.slane %v7247_v42, 4  ;;  %v1659_v4 = vrot.slane %v7250_v5, 4 }
 0x6ce   : > { %v1664_v0 = vsel %vm776_vm1, %v1659_v4, %v1663_v59  ;;  %v1666_v51 = vsel %vm776_vm1, %v1661_v38, %v1665_v9  ;;  %v1660_v11 = vsel %vm776_vm1, %v1657_v12, %v1659_v4  ;;  %v1685_v9 = vsel %vm776_vm1, %v7059_v32, %v1657_v12  ;;  %v1960_v32 = vld [vmem:[#allocation10] sm:$0xf] }
 0x6cf   : > { %v1555_v7 = vpop.permute.xlu0 %1554  ;;  %1699 = vmatpush.msra.mxu0 %v1664_v0  ;;  %1719 = vmatpush.msra.mxu1 %v1666_v51 }
 0x6d0   : > { %v1557_v25 = vsel %vm662_vm3, %v5251_v3, %v1555_v7  ;;  %v7277_v3 = vld [vmem:[#allocation9 + $0x8] sm:$0xff] }
 0x6d1   : > { %v7265_v2 = vsel %vm776_vm1, %v1529_v34, %v1557_v25  ;;  %1700 = vmatpush.msra.mxu0 %v1660_v11 }
 0x6d2   : > { %v1658_v59 = vrot.slane %v7265_v2, 4 }
 0x6d3   : > { %1701 = vmatpush.msra.mxu0 %v1685_v9 }
 0x6d4   : > { %v1662_v24 = vsel %vm776_vm1, %v1658_v59, %v1661_v38  ;;  %v1686_v61 = vsel %vm776_vm1, %v7070_v57, %v1658_v59 }
 0x6d5   : > { %1702 = vmatpush.msra.mxu0 %v7064_v31  ;;  %1720 = vmatpush.msra.mxu1 %v1662_v24 }
 0x6d7   : > { %1703 = vmatpush.msra.mxu0 %v7092_v40  ;;  %1721 = vmatpush.msra.mxu1 %v1686_v61 }
 0x6d9   : > { %1704 = vmatpush.msra.mxu0 %v7100_v26  ;;  %1722 = vmatpush.msra.mxu1 %v7076_v37 }
 0x6db   : > { %1705 = vmatpush.msra.mxu0 %v7117_v58  ;;  %1723 = vmatpush.msra.mxu1 %v7097_v53 }
 0x6dc   : > { %4882 = vmatmul.msk.f32.vlgmr.msra.gmra.mxu0 %vm1254_vm12, %v7277_v3 }
 0x6dd   : > { %4886 = vmatpush.msk.msrb.mxu0 %vm776_vm1, %v6715_v46  ;;  %1724 = vmatpush.msra.mxu1 %v7087_v6 }
 0x6df   : > { %1982 = vmatpush.msrb.mxu0 %v6719_v49  ;;  %1725 = vmatpush.msra.mxu1 %v7120_v55 }
 0x6e0   : > { %4883 = vmatmul.msk.f32.vlgmr.msra.gmra.mxu1 %vm1254_vm12, %v7277_v3 }
 0x6e1   : > { %4888 = vmatpush.msk.msrb.mxu1 %vm776_vm1, %v6717_v47 }
 0x6e3   : > { %2002 = vmatpush.msrb.mxu1 %v6721_v50 }
 0x6e4   : > { %4887 = vmatmul.msk.f32.vlgmr.msrb.gmra.mxu0 %vm853_vm7, %v1960_v32 }
 0x6e8   : > { %4889 = vmatmul.msk.f32.vlgmr.msrb.gmra.mxu1 %vm853_vm7, %v1960_v32 }
 0x759   : > { %v7295_v46 = vpop.f32.mrf.mxu0 }
 0x75a   : > { %v1730_v31 = vmax.f32 %v7295_v46, 0.0 }
 0x75c   : > { %1734 = vrot.lane.b32.xlu1 %v1730_v31, %s6370_s19 }
 0x75d   : > { %v7301_v49 = vpop.f32.mrf.mxu1 }
 0x75e   : > { %v1731_v57 = vmax.f32 %v7301_v49, 0.0 }
 0x760   : > { %1736 = vrot.lane.b32.xlu2 %v1731_v57, %s6370_s19 }
 0x7ba   : > { %v1737_v47 = vpop.permute.xlu2 %1736 }
 0x7bb   : > { %v1743_v50 = vsel %vm560_vm0, %v1737_v47, 0.0 }
 0x7bc   : > { %v1765_v6 = vrot.slane %v1743_v50, 4  ;;  %v1760_v53 = vmul.f32 %v1743_v50, %v6588_v22  ;;  %v1757_v29 = vmul.f32 %v1743_v50, %v6578_v16  ;;  %v1748_v4 = vmul.f32 %v1743_v50, %v6590_v23 }
 0x7bd   : > { %v1751_v7 = vmul.f32 %v1743_v50, %v6623_v39  ;;  %v1754_v61 = vmul.f32 %v1743_v50, %v6586_v20 }
 0x7bf   : > { %v1794_v25 = vrot.slane %v1751_v7, 4 }
 0x7ce   : > { %v1735_v37 = vpop.permute.xlu1 %1734 }
 0x7cf   : > { %v7309_v40 = vsel %vm560_vm0, %v1735_v37, %v1737_v47  ;;  %v7324_v38 = vsel %vm560_vm0, 0.0, %v1735_v37  ;;  %v1810_v37 = vrot.slane %v1754_v61, 4 }
 0x7d0   : > { %v1764_v26 = vrot.slane %v7309_v40, 4  ;;  %v1759_v58 = vmul.f32 %v7309_v40, %v6618_v36  ;;  %v1756_v55 = vmul.f32 %v7309_v40, %v6646_v48  ;;  %v1747_v8 = vmul.f32 %v7309_v40, %v6635_v44 }
 0x7d1   : > { %v1763_v0 = vrot.slane %v7324_v38, 4  ;;  %v1750_v12 = vmul.f32 %v7309_v40, %v6640_v45  ;;  %v1755_v59 = vmul.f32 %v7324_v38, %v6576_v15  ;;  %v1758_v9 = vmul.f32 %v7324_v38, %v6612_v33 }
 0x7d2   : > { %v5257_v35 = vpack.i.bf16 %v1765_v6, %v1764_v26  ;;  %v5262_v41 = vpack.i.bf16 %v1760_v53, %v1759_v58  ;;  %v5252_v56 = vpack.i.bf16 %v1757_v29, %v1756_v55  ;;  %v5267_v51 = vpack.i.bf16 %v1748_v4, %v1747_v8  ;;  %v7355_v55 = vpop.f32.mrf.mxu0 }
 0x7d3   : > { %v1793_v34 = vrot.slane %v1750_v12, 4  ;;  %v1753_v24 = vmul.f32 %v7309_v40, %v6603_v28  ;;  %v1752_v32 = vmul.f32 %v7324_v38, %v6580_v17  ;;  %v1746_v6 = vmul.f32 %v7324_v38, %v6582_v18 }
 0x7d4   : > { %5258 = vrot.lane.b32.xlu1 %v5257_v35, %s6375_s13  ;;  %5263 = vrot.lane.b32.xlu2 %v5262_v41, %s6373_s29  ;;  %v1749_v58 = vmul.f32 %v7324_v38, %v6584_v19  ;;  %v9764_v29 = vmax.f32 %v7355_v55, 0.0 }
 0x7d5   : > { %5253 = vrot.lane.b32.xlu0 %v5252_v56, %s6376_s16  ;;  %v5282_v11 = vpack.i.bf16 %v1794_v25, %v1793_v34  ;;  %v1809_v47 = vrot.slane %v1753_v24, 4  ;;  %v1808_v53 = vrot.slane %v1752_v32, 4 }
 0x7d6   : > { %v1792_v50 = vrot.slane %v1749_v58, 4 }
 0x7d7   : > { %v5277_v26 = vpack.i.bf16 %v1810_v37, %v1809_v47 }
 0x7dc   : > { %1834 = vrot.lane.b32.xlu2 %v1763_v0, %s6375_s13  ;;  %5268 = vrot.lane.b32.xlu1 %v5267_v51, %s6377_s12 }
 0x7dd   : > { %5273 = vrot.lane.b32.xlu0 %v5257_v35, %s6379_s2 }
 0x7e4   : > { %5283 = vrot.lane.b32.xlu2 %v5282_v11, %s6378_s24  ;;  %1824 = vrot.lane.b32.xlu1 %v1755_v59, %s6376_s16 }
 0x7e5   : > { %1847 = vrot.lane.b32.xlu0 %v1758_v9, %s6373_s29 }
 0x7ec   : > { %1779 = vrot.lane.b32.xlu2 %v1746_v6, %s6377_s12  ;;  %1811 = vrot.lane.b32.xlu1 %v1808_v53, %s6374_s20 }
 0x7ed   : > { %5278 = vrot.lane.b32.xlu0 %v5277_v26, %s6374_s20 }
 0x7f4   : > { %1766 = vrot.lane.b32.xlu1 %v1763_v0, %s6379_s2 }
 0x7f5   : > { %1795 = vrot.lane.b32.xlu0 %v1792_v50, %s6378_s24 }
 0x7fc   : > { %2058 = vrot.lane.b32.xlu1 %v9764_v29, %s6370_s19 }
 0x82e   : > { %v5264_v35 = vpop.permute.xlu2 %5263 }
 0x82f   : > { %v5266_v41 = vunpack.i.h.bf16 %v5264_v35  ;;  %v5265_v56 = vunpack.i.l.bf16 %v5264_v35 }
 0x831   : > { %v1854_v0 = vsel %vm764_vm6, %v5265_v56, %v5266_v41 }
 0x832   : > { %v1887_v24 = vrot.slane %v1854_v0, 4 }
 0x836   : > { %v1835_v37 = vpop.permute.xlu2 %1834 }
 0x846   : > { %v5259_v8 = vpop.permute.xlu1 %5258 }
 0x847   : > { %v5261_v4 = vunpack.i.h.bf16 %v5259_v8  ;;  %v5260_v51 = vunpack.i.l.bf16 %v5259_v8  ;;  %v5254_v12 = vpop.permute.xlu0 %5253 }
 0x848   : > { %v5256_v7 = vunpack.i.h.bf16 %v5254_v12  ;;  %v5255_v34 = vunpack.i.l.bf16 %v5254_v12 }
 0x849   : > { %v1841_v25 = vsel %vm750_vm10, %v5260_v51, %v5261_v4  ;;  %v1840_v26 = vsel %vm750_vm10, %v1835_v37, %v5260_v51  ;;  %v5284_v4 = vpop.permute.xlu2 %5283 }
 0x84a   : > { %v1831_v11 = vsel %vm736_vm8, %v5255_v34, %v5256_v7 }
 0x84b   : > { %v1862_v59 = vsel %vm776_vm1, %v1831_v11, %v1841_v25 }
 0x84c   : > { %v1883_v9 = vrot.slane %v1862_v59, 4  ;;  %v5286_v59 = vunpack.i.h.bf16 %v5284_v4 }
 0x84e   : > { %v1888_v61 = vsel %vm776_vm1, %v1883_v9, %v1887_v24  ;;  %v5269_v32 = vpop.permute.xlu1 %5268  ;;  %v5285_v24 = vunpack.i.l.bf16 %v5284_v4 }
 0x84f   : > { %v5274_v47 = vpop.permute.xlu0 %5273  ;;  %1931 = vmatpush.msrb.mxu3 %v1888_v61  ;;  %v5271_v25 = vunpack.i.h.bf16 %v5269_v32  ;;  %v5270_v11 = vunpack.i.l.bf16 %v5269_v32 }
 0x850   : > { %v5276_v7 = vunpack.i.h.bf16 %v5274_v47  ;;  %v5275_v0 = vunpack.i.l.bf16 %v5274_v47 }
 0x856   : > { %v1825_v6 = vpop.permute.xlu1 %1824 }
 0x857   : > { %v1848_v53 = vpop.permute.xlu0 %1847  ;;  %v1830_v58 = vsel %vm736_vm8, %v1825_v6, %v5255_v34  ;;  %v1773_v34 = vsel %vm662_vm3, %v5275_v0, %v5276_v7 }
 0x858   : > { %v1853_v50 = vsel %vm764_vm6, %v1848_v53, %v5265_v56  ;;  %v1861_v35 = vsel %vm776_vm1, %v1830_v58, %v1840_v26  ;;  %v1786_v56 = vsel %vm679_vm13, %v5270_v11, %v5271_v25  ;;  %v1745_v53 = vmul.f32 %v7309_v40, %v6705_v21 }
 0x859   : > { %v1885_v41 = vrot.slane %v1853_v50, 4  ;;  %v1881_v8 = vrot.slane %v1861_v35, 4  ;;  %v1802_v26 = vsel %vm696_vm14, %v5285_v24, %v5286_v59 }
 0x85a   : > { %v1858_v35 = vsel %vm776_vm1, %v1786_v56, %v1802_v26 }
 0x85b   : > { %v1886_v12 = vsel %vm776_vm1, %v1881_v8, %v1885_v41  ;;  %v1856_v41 = vsel %vm776_vm1, %v1745_v53, %v1773_v34 }
 0x85c   : > { %1911 = vmatpush.msrb.mxu2 %v1886_v12  ;;  %v1744_v12 = vmul.f32 %v7324_v38, %v6702_v14 }
 0x85e   : > { %v1812_v61 = vpop.permute.xlu1 %1811 }
 0x85f   : > { %v5279_v51 = vpop.permute.xlu0 %5278 }
 0x860   : > { %v5281_v37 = vunpack.i.h.bf16 %v5279_v51  ;;  %v5280_v6 = vunpack.i.l.bf16 %v5279_v51  ;;  %v1780_v51 = vpop.permute.xlu2 %1779 }
 0x861   : > { %v1785_v34 = vsel %vm679_vm13, %v1780_v51, %v5270_v11 }
 0x862   : > { %v1818_v47 = vsel %vm719_vm9, %v5280_v6, %v5281_v37  ;;  %v1817_v32 = vsel %vm719_vm9, %v1812_v61, %v5280_v6  ;;  %v1875_v61 = vrot.slane %v1858_v35, 4 }
 0x863   : > { %v1859_v58 = vsel %vm776_vm1, %v1730_v31, %v1817_v32  ;;  %v1860_v50 = vsel %vm776_vm1, %v1731_v57, %v1818_v47  ;;  %v1872_v31 = vrot.slane %v1856_v41, 4  ;;  %v1901_v32 = vrot.slane %v7277_v3, 4 }
 0x864   : > { %v1877_v4 = vrot.slane %v1859_v58, 4  ;;  %v1879_v40 = vrot.slane %v1860_v50, 4 }
 0x865   : > { %v1876_v26 = vsel %vm776_vm1, %v1872_v31, %v1875_v61 }
 0x866   : > { %v1882_v7 = vsel %vm776_vm1, %v1877_v4, %v1881_v8  ;;  %v1884_v25 = vsel %vm776_vm1, %v1879_v40, %v1883_v9  ;;  %v1767_v59 = vpop.permute.xlu1 %1766  ;;  %v1880_v38 = vsel %vm776_vm1, %v1875_v61, %v1879_v40 }
 0x867   : > { %v1796_v37 = vpop.permute.xlu0 %1795  ;;  %1912 = vmatpush.msrb.mxu2 %v1882_v7  ;;  %1932 = vmatpush.msrb.mxu3 %v1884_v25  ;;  %v1772_v57 = vsel %vm662_vm3, %v1767_v59, %v5275_v0  ;;  %v1900_v0 = vsel %vm776_vm1, %v7221_v1, %v1872_v31 }
 0x868   : > { %v1801_v56 = vsel %vm696_vm14, %v1796_v37, %v5285_v24  ;;  %v1855_v6 = vsel %vm776_vm1, %v1744_v12, %v1772_v57 }
 0x869   : > { %v1857_v8 = vsel %vm776_vm1, %v1785_v34, %v1801_v56  ;;  %1933 = vmatpush.msrb.mxu3 %v1880_v38  ;;  %v1871_v53 = vrot.slane %v1855_v6, 4 }
 0x86a   : > { %v1873_v9 = vrot.slane %v1857_v8, 4 }
 0x86b   : > { %1934 = vmatpush.msrb.mxu3 %v1876_v26  ;;  %v1899_v24 = vsel %vm776_vm1, %v7218_v52, %v1871_v53 }
 0x86c   : > { %v1878_v47 = vsel %vm776_vm1, %v1873_v9, %v1877_v4  ;;  %v1874_v11 = vsel %vm776_vm1, %v1871_v53, %v1873_v9 }
 0x86d   : > { %1913 = vmatpush.msrb.mxu2 %v1878_v47  ;;  %1935 = vmatpush.msrb.mxu3 %v1900_v0 }
 0x86e   : > { %v2059_v40 = vpop.permute.xlu1 %2058 }
 0x86f   : > { %1914 = vmatpush.msrb.mxu2 %v1874_v11  ;;  %1936 = vmatpush.msrb.mxu3 %v7210_v10  ;;  %v1947_v10 = vrot.slane %v7143_v63, 4  ;;  %v7472_v9 = vsel %vm560_vm0, 0.0, %v2059_v40 }
 0x871   : > { %1915 = vmatpush.msrb.mxu2 %v1899_v24  ;;  %1937 = vmatpush.msrb.mxu3 %v7235_v60  ;;  %v2079_v24 = vmul.f32 %v7472_v9, %v6576_v15 }
 0x873   : > { %1916 = vmatpush.msrb.mxu2 %v7207_v27  ;;  %1938 = vmatpush.msrb.mxu3 %v7247_v42  ;;  %v1946_v27 = vrot.slane %v7141_v43, 4 }
 0x875   : > { %1917 = vmatpush.msrb.mxu2 %v7215_v13  ;;  %1939 = vmatpush.msrb.mxu3 %v7265_v2  ;;  %v1957_v13 = vsel %vm776_vm1, %v7000_v30, %v1947_v10  ;;  %v1956_v63 = vsel %vm776_vm1, %v6998_v62, %v1946_v27  ;;  %v7426_v30 = vpop.f32.mrf.mxu1 }
 0x876   : > { %4885 = vmatmul.msk.f32.vlgmr.msrb.gmra.mxu3 %vm1254_vm12, %v1901_v32  ;;  %v2007_v43 = vmax.f32 %v1956_v63, 0.0  ;;  %v2055_v62 = vmax.f32 %v7426_v30, 0.0 }
 0x877   : > { %1918 = vmatpush.msrb.mxu2 %v7250_v5  ;;  %v2008_v5 = vmax.f32 %v1957_v13, 0.0 }
 0x879   : > { %1919 = vmatpush.msrb.mxu2 %v7253_v54  ;;  %v1961_v54 = vld [vmem:[#allocation12] sm:$0xf] }
 0x87a   : > { %4884 = vmatmul.msk.f32.vlgmr.msrb.gmra.mxu2 %vm1254_vm12, %v1901_v32 }
 0x8f9   : > { %v1941_v52 = vpop.f32.mrf.mxu3 }
 0x8fa   : > { %v1953_v1 = vrot.slane %v1941_v52, 4 }
 0x8fc   : > { %v1959_v60 = vsel %vm776_vm1, %v7301_v49, %v1953_v1 }
 0x8fd   : > { %v2010_v42 = vmax.f32 %v1959_v60, 0.0  ;;  %v1921_v2 = vpop.f32.mrf.mxu2 }
 0x8fe   : > { %v1952_v3 = vrot.slane %v1921_v2, 4 }
 0x8ff   : > { %2048 = vmatpush.msra.mxu3 %v2010_v42 }
 0x900   : > { %v1958_v58 = vsel %vm776_vm1, %v7295_v46, %v1952_v3 }
 0x901   : > { %v2009_v50 = vmax.f32 %v1958_v58, 0.0  ;;  %2049 = vmatpush.msra.mxu3 %v2008_v5  ;;  %v2082_v5 = vmul.f32 %v7472_v9, %v6612_v33  ;;  %v2087_v58 = vrot.slane %v7472_v9, 4 }
 0x902   : > { %4891 = vmatmul.msk.f32.vlgmr.msra.gmra.mxu3 %vm595_vm4, %v1961_v54 }
 0x903   : > { %2028 = vmatpush.msra.mxu1 %v2009_v50 }
 0x905   : > { %2029 = vmatpush.msra.mxu1 %v2007_v43 }
 0x906   : > { %4890 = vmatmul.msk.f32.vlgmr.msra.gmra.mxu1 %vm595_vm4, %v1961_v54 }
 0x983   : > { %v7428_v49 = vpop.f32.mrf.mxu1 }
 0x984   : > { %v2189_v35 = vmax.f32 %v7428_v49, 0.0 }
 0x985   : > { %v7431_v41 = vpop.f32.mrf.mxu3 }
 0x986   : > { %v2190_v46 = vmax.f32 %v7431_v41, 0.0  ;;  %2193 = vrot.lane.b32.xlu2 %v2189_v35, %s6370_s19 }
 0x988   : > { %2195 = vrot.lane.b32.xlu0 %v2190_v46, %s6370_s19 }
 0x98e   : > { %2060 = vrot.lane.b32.xlu2 %v2055_v62, %s6370_s19 }
 0x9e0   : > { %v2194_v4 = vpop.permute.xlu2 %2193 }
 0x9e1   : > { %v7475_v53 = vsel %vm560_vm0, 0.0, %v2194_v4 }
 0x9e2   : > { %v2222_v47 = vrot.slane %v7475_v53, 4  ;;  %v2214_v52 = vmul.f32 %v7475_v53, %v6576_v15  ;;  %v2217_v54 = vmul.f32 %v7475_v53, %v6612_v33 }
 0x9e8   : > { %v2061_v12 = vpop.permute.xlu2 %2060 }
 0x9e9   : > { %v7445_v7 = vsel %vm560_vm0, %v2059_v40, %v2061_v12  ;;  %v7448_v25 = vsel %vm560_vm0, %v2061_v12, 0.0  ;;  %v2205_v12 = vmul.f32 %v7475_v53, %v6582_v18 }
 0x9ea   : > { %v2083_v59 = vmul.f32 %v7445_v7, %v6618_v36  ;;  %v2084_v61 = vmul.f32 %v7448_v25, %v6588_v22  ;;  %v7456_v51 = vmul.f32 %v7445_v7, %v6635_v44  ;;  %v7460_v37 = vmul.f32 %v7448_v25, %v6590_v23 }
 0x9eb   : > { %v2074_v57 = vmul.f32 %v7445_v7, %v6640_v45  ;;  %v2075_v34 = vmul.f32 %v7448_v25, %v6623_v39 }
 0x9ec   : > { %v5287_v31 = vpack.i.bf16 %v2084_v61, %v2083_v59  ;;  %v5372_v56 = vpack.i.bf16 %v7460_v37, %v7456_v51  ;;  %v2070_v59 = vmul.f32 %v7472_v9, %v6582_v18 }
 0x9ed   : > { %v2117_v6 = vrot.slane %v2074_v57, 4  ;;  %v2118_v38 = vrot.slane %v2075_v34, 4 }
 0x9ee   : > { %5288 = vrot.lane.b32.xlu2 %v5287_v31, %s6373_s29 }
 0x9ef   : > { %v7469_v8 = vpack.i.bf16 %v2118_v38, %v2117_v6  ;;  %v2076_v6 = vmul.f32 %v7472_v9, %v6580_v17  ;;  %v2073_v38 = vmul.f32 %v7472_v9, %v6584_v19 }
 0x9fa   : > { %v2196_v26 = vpop.permute.xlu0 %2195 }
 0x9fb   : > { %v7479_v0 = vsel %vm560_vm0, %v2194_v4, %v2196_v26  ;;  %v2202_v11 = vsel %vm560_vm0, %v2196_v26, 0.0 }
 0x9fc   : > { %v2216_v32 = vmul.f32 %v2202_v11, %v6578_v16  ;;  %v2223_v10 = vrot.slane %v7479_v0, 4  ;;  %v2215_v1 = vmul.f32 %v7479_v0, %v6646_v48  ;;  %v2219_v42 = vmul.f32 %v2202_v11, %v6588_v22 }
 0x9fd   : > { %v2218_v2 = vmul.f32 %v7479_v0, %v6618_v36  ;;  %v2224_v3 = vrot.slane %v2202_v11, 4  ;;  %v2206_v4 = vmul.f32 %v7479_v0, %v6635_v44  ;;  %v2207_v40 = vmul.f32 %v2202_v11, %v6590_v23 }
 0x9fe   : > { %v5297_v27 = vpack.i.bf16 %v2079_v24, %v2216_v32  ;;  %v5302_v60 = vpack.i.bf16 %v2223_v10, %v2222_v47  ;;  %v5292_v13 = vpack.i.bf16 %v2215_v1, %v2214_v52  ;;  %v5317_v63 = vpack.i.bf16 %v2082_v5, %v2219_v42 }
 0x9ff   : > { %v5312_v50 = vpack.i.bf16 %v2218_v2, %v2217_v54  ;;  %v5307_v43 = vpack.i.bf16 %v2087_v58, %v2224_v3  ;;  %v5322_v61 = vpack.i.bf16 %v2206_v4, %v2205_v12  ;;  %v2213_v31 = vmul.f32 %v2202_v11, %v6586_v20 }
 0xa00   : > { %5298 = vrot.lane.b32.xlu1 %v5297_v27, %s6376_s16  ;;  %5303 = vrot.lane.b32.xlu2 %v5302_v60, %s6375_s13  ;;  %v2210_v57 = vmul.f32 %v2202_v11, %v6623_v39  ;;  %v5327_v34 = vpack.i.bf16 %v2070_v59, %v2207_v40  ;;  %v2132_v24 = vrot.slane %v2076_v6, 4  ;;  %v2116_v32 = vrot.slane %v2073_v38, 4 }
 0xa01   : > { %5293 = vrot.lane.b32.xlu0 %v5292_v13, %s6376_s16  ;;  %v2269_v26 = vrot.slane %v2213_v31, 4  ;;  %v2077_v11 = vmul.f32 %v7445_v7, %v6603_v28  ;;  %v2209_v1 = vmul.f32 %v7479_v0, %v6640_v45  ;;  %v2078_v27 = vmul.f32 %v7448_v25, %v6586_v20 }
 0xa02   : > { %v2253_v47 = vrot.slane %v2210_v57, 4  ;;  %v2212_v13 = vmul.f32 %v7479_v0, %v6603_v28  ;;  %v2208_v42 = vmul.f32 %v7475_v53, %v6584_v19  ;;  %v2211_v2 = vmul.f32 %v7475_v53, %v6580_v17 }
 0xa03   : > { %v5347_v10 = vpack.i.bf16 %v2132_v24, %v2269_v26  ;;  %v2133_v5 = vrot.slane %v2077_v11, 4  ;;  %v2134_v54 = vrot.slane %v2078_v27, 4  ;;  %v2089_v59 = vrot.slane %v7448_v25, 4 }
 0xa04   : > { %v5362_v52 = vpack.i.bf16 %v2116_v32, %v2253_v47  ;;  %v2081_v31 = vmul.f32 %v7448_v25, %v6578_v16 }
 0xa05   : > { %v5367_v40 = vpack.i.bf16 %v2134_v54, %v2133_v5 }
 0xa08   : > { %5318 = vrot.lane.b32.xlu2 %v5317_v63, %s6373_s29  ;;  %5313 = vrot.lane.b32.xlu1 %v5312_v50, %s6373_s29  ;;  %v2268_v63 = vrot.slane %v2212_v13, 4  ;;  %v2251_v50 = vrot.slane %v2208_v42, 4 }
 0xa09   : > { %5308 = vrot.lane.b32.xlu0 %v5307_v43, %s6375_s13  ;;  %v2267_v43 = vrot.slane %v2211_v2, 4 }
 0xa0b   : > { %v5337_v12 = vpack.i.bf16 %v2268_v63, %v2267_v43 }
 0xa10   : > { %2229 = vrot.lane.b32.xlu1 %v2224_v3, %s6379_s2  ;;  %5323 = vrot.lane.b32.xlu2 %v5322_v61, %s6377_s12  ;;  %v2252_v3 = vrot.slane %v2209_v1, 4  ;;  %v2080_v61 = vmul.f32 %v7445_v7, %v6646_v48 }
 0xa11   : > { %5328 = vrot.lane.b32.xlu0 %v5327_v34, %s6377_s12 }
 0xa12   : > { %v5352_v4 = vpack.i.bf16 %v2252_v3, %v2251_v50  ;;  %v5342_v6 = vpack.i.bf16 %v2081_v31, %v2080_v61 }
 0xa18   : > { %5348 = vrot.lane.b32.xlu1 %v5347_v10, %s6374_s20  ;;  %5363 = vrot.lane.b32.xlu2 %v5362_v52, %s6378_s24 }
 0xa19   : > { %5333 = vrot.lane.b32.xlu0 %v5302_v60, %s6379_s2  ;;  %v2088_v60 = vrot.slane %v7445_v7, 4 }
 0xa1b   : > { %v5357_v57 = vpack.i.bf16 %v2089_v59, %v2088_v60  ;;  %v5382_v34 = vpack.i.bf16 %v2088_v60, %v2087_v58 }
 0xa20   : > { %5353 = vrot.lane.b32.xlu1 %v5352_v4, %s6378_s24  ;;  %5368 = vrot.lane.b32.xlu2 %v5367_v40, %s6374_s20 }
 0xa21   : > { %5338 = vrot.lane.b32.xlu0 %v5337_v12, %s6374_s20 }
 0xa28   : > { %5358 = vrot.lane.b32.xlu1 %v5357_v57, %s6375_s13  ;;  %5383 = vrot.lane.b32.xlu2 %v5382_v34, %s6379_s2 }
 0xa29   : > { %5343 = vrot.lane.b32.xlu0 %v5342_v6, %s6376_s16 }
 0xa30   : > { %5378 = vrot.lane.b32.xlu1 %v7469_v8, %s6378_s24 }
 0xa31   : > { %5373 = vrot.lane.b32.xlu0 %v5372_v56, %s6377_s12 }
 0xa39   : > { %2094 = vrot.lane.b32.xlu0 %v2089_v59, %s6379_s2 }
 0xa48   : > { %v7554_v25 = vpop.permute.xlu2 %5288 }
 0xa49   : > { %v5290_v41 = vunpack.i.l.bf16 %v7554_v25 }
 0xa5a   : > { %v5304_v58 = vpop.permute.xlu2 %5303 }
 0xa5b   : > { %v5306_v32 = vunpack.i.h.bf16 %v5304_v58  ;;  %v5305_v11 = vunpack.i.l.bf16 %v5304_v58 }
 0xa5d   : > { %v2299_v51 = vsel %vm750_vm10, %v5305_v11, %v5306_v32 }
 0xa62   : > { %v7558_v10 = vpop.permute.xlu2 %5318 }
 0xa63   : > { %v5320_v56 = vunpack.i.l.bf16 %v7558_v10 }
 0xa6a   : > { %v5324_v59 = vpop.permute.xlu2 %5323 }
 0xa72   : > { %v7556_v38 = vpop.permute.xlu1 %5298  ;;  %v7591_v6 = vpop.permute.xlu2 %5363 }
 0xa73   : > { %v5294_v26 = vpop.permute.xlu0 %5293  ;;  %v5300_v52 = vunpack.i.l.bf16 %v7556_v38 }
 0xa74   : > { %v5296_v47 = vunpack.i.h.bf16 %v5294_v26  ;;  %v5295_v24 = vunpack.i.l.bf16 %v5294_v26 }
 0xa76   : > { %v2289_v8 = vsel %vm736_vm8, %v5295_v24, %v5296_v47  ;;  %v2290_v3 = vsel %vm736_vm8, %v5296_v47, %v5300_v52  ;;  %v5326_v24 = vunpack.i.h.bf16 %v5324_v59  ;;  %v2203_v52 = vmul.f32 %v7475_v53, %v6702_v14 }
 0xa77   : > { %v7567_v42 = vsel %vm776_vm1, %v2289_v8, %v2299_v51  ;;  %v2204_v51 = vmul.f32 %v7479_v0, %v6705_v21 }
 0xa78   : > { %v2342_v50 = vrot.slane %v7567_v42, 4 }
 0xa7a   : > { %v5314_v37 = vpop.permute.xlu1 %5313 }
 0xa7b   : > { %v5316_v1 = vunpack.i.h.bf16 %v5314_v37  ;;  %v5315_v27 = vunpack.i.l.bf16 %v5314_v37  ;;  %v7564_v13 = vpop.permute.xlu0 %5308  ;;  %v5365_v37 = vunpack.i.l.bf16 %v7591_v6 }
 0xa7c   : > { %v5310_v2 = vunpack.i.l.bf16 %v7564_v13 }
 0xa7d   : > { %v7572_v5 = vsel %vm764_vm6, %v5316_v1, %v5320_v56  ;;  %v7575_v54 = vsel %vm764_vm6, %v5315_v27, %v5316_v1 }
 0xa7e   : > { %v2300_v63 = vsel %vm750_vm10, %v5306_v32, %v5310_v2  ;;  %v2346_v43 = vrot.slane %v7575_v54, 4  ;;  %v2348_v4 = vrot.slane %v7572_v5, 4  ;;  %v5325_v32 = vunpack.i.l.bf16 %v5324_v59  ;;  %v5369_v59 = vpop.permute.xlu2 %5368 }
 0xa7f   : > { %v7582_v40 = vsel %vm776_vm1, %v2290_v3, %v2300_v63 }
 0xa80   : > { %v2347_v12 = vsel %vm776_vm1, %v2342_v50, %v2346_v43  ;;  %v2344_v60 = vrot.slane %v7582_v40, 4 }
 0xa81   : > { %2372 = vmatpush.msra.mxu0 %v2347_v12  ;;  %v2244_v12 = vsel %vm679_vm13, %v5325_v32, %v5326_v24 }
 0xa82   : > { %v2230_v61 = vpop.permute.xlu1 %2229  ;;  %v2349_v31 = vsel %vm776_vm1, %v2344_v60, %v2348_v4 }
 0xa83   : > { %v7587_v57 = vpop.permute.xlu0 %5328  ;;  %2392 = vmatpush.msrb.mxu1 %v2349_v31 }
 0xa84   : > { %v5330_v11 = vunpack.i.l.bf16 %v7587_v57 }
 0xa86   : > { %v2245_v53 = vsel %vm679_vm13, %v5326_v24, %v5330_v11 }
 0xa8a   : > { %v7589_v34 = vpop.permute.xlu1 %5348 }
 0xa8b   : > { %v5334_v58 = vpop.permute.xlu0 %5333  ;;  %v5350_v56 = vunpack.i.l.bf16 %v7589_v34 }
 0xa8c   : > { %v5336_v26 = vunpack.i.h.bf16 %v5334_v58  ;;  %v5335_v47 = vunpack.i.l.bf16 %v5334_v58 }
 0xa8e   : > { %v2232_v3 = vsel %vm662_vm3, %v5336_v26, %v2230_v61  ;;  %v2231_v63 = vsel %vm662_vm3, %v5335_v47, %v5336_v26 }
 0xa8f   : > { %v7625_v24 = vsel %vm776_vm1, %v2203_v52, %v2231_v63  ;;  %v7628_v32 = vsel %vm776_vm1, %v2204_v51, %v2232_v3  ;;  %v5311_v52 = vunpack.i.h.bf16 %v7564_v13 }
 0xa92   : > { %v5354_v8 = vpop.permute.xlu1 %5353 }
 0xa93   : > { %v5339_v1 = vpop.permute.xlu0 %5338  ;;  %v5356_v27 = vunpack.i.h.bf16 %v5354_v8  ;;  %v5355_v2 = vunpack.i.l.bf16 %v5354_v8 }
 0xa94   : > { %v5341_v43 = vunpack.i.h.bf16 %v5339_v1  ;;  %v5340_v4 = vunpack.i.l.bf16 %v5339_v1  ;;  %v5370_v1 = vunpack.i.l.bf16 %v5369_v59 }
 0xa95   : > { %v2260_v0 = vsel %vm696_vm14, %v5355_v2, %v5356_v27  ;;  %v2261_v31 = vsel %vm696_vm14, %v5356_v27, %v5365_v37 }
 0xa96   : > { %v2277_v58 = vsel %vm719_vm9, %v5341_v43, %v5350_v56  ;;  %v2276_v29 = vsel %vm719_vm9, %v5340_v4, %v5341_v43  ;;  %v7609_v8 = vsel %vm776_vm1, %v2244_v12, %v2260_v0  ;;  %v7612_v61 = vsel %vm776_vm1, %v2245_v53, %v2261_v31 }
 0xa97   : > { %v7617_v26 = vsel %vm776_vm1, %v2189_v35, %v2276_v29  ;;  %v7622_v47 = vsel %vm776_vm1, %v2190_v46, %v2277_v58  ;;  %v2334_v49 = vrot.slane %v7609_v8, 4  ;;  %v2336_v29 = vrot.slane %v7612_v61, 4 }
 0xa98   : > { %v2338_v11 = vrot.slane %v7617_v26, 4  ;;  %v2340_v37 = vrot.slane %v7622_v47, 4  ;;  %v5291_v35 = vunpack.i.h.bf16 %v7554_v25  ;;  %v5321_v46 = vunpack.i.h.bf16 %v7558_v10 }
 0xa99   : > { %v5371_v56 = vunpack.i.h.bf16 %v5369_v59  ;;  %v2332_v4 = vrot.slane %v7625_v24, 4  ;;  %v2333_v25 = vrot.slane %v7628_v32, 4 }
 0xa9a   : > { %v2343_v51 = vsel %vm776_vm1, %v2338_v11, %v2342_v50  ;;  %v2345_v27 = vsel %vm776_vm1, %v2340_v37, %v2344_v60  ;;  %v5359_v2 = vpop.permute.xlu1 %5358  ;;  %v2339_v53 = vsel %vm776_vm1, %v2334_v49, %v2338_v11  ;;  %v2341_v13 = vsel %vm776_vm1, %v2336_v29, %v2340_v37 }
 0xa9b   : > { %v5344_v3 = vpop.permute.xlu0 %5343  ;;  %2373 = vmatpush.msra.mxu0 %v2343_v51  ;;  %2393 = vmatpush.msrb.mxu1 %v2345_v27  ;;  %v5361_v63 = vunpack.i.h.bf16 %v5359_v2  ;;  %v5360_v43 = vunpack.i.l.bf16 %v5359_v2  ;;  %v5301_v50 = vunpack.i.h.bf16 %v7556_v38  ;;  %v5351_v60 = vunpack.i.h.bf16 %v7589_v34  ;;  %v5384_v27 = vpop.permute.xlu2 %5383 }
 0xa9c   : > { %v5346_v12 = vunpack.i.h.bf16 %v5344_v3  ;;  %v5345_v10 = vunpack.i.l.bf16 %v5344_v3  ;;  %v2178_v59 = vsel %vm764_vm6, %v5290_v41, %v5291_v35  ;;  %v2335_v0 = vsel %vm776_vm1, %v2332_v4, %v2334_v49 }
 0xa9d   : > { %2374 = vmatpush.msra.mxu0 %v2339_v53  ;;  %2394 = vmatpush.msrb.mxu1 %v2341_v13  ;;  %v2337_v31 = vsel %vm776_vm1, %v2333_v25, %v2336_v29  ;;  %v2177_v58 = vsel %vm764_vm6, %v5321_v46, %v5290_v41  ;;  %v2164_v51 = vsel %vm750_vm10, %v5311_v52, %v5360_v43  ;;  %v5386_v41 = vunpack.i.h.bf16 %v5384_v27 }
 0xa9e   : > { %v2154_v11 = vsel %vm736_vm8, %v5301_v50, %v5345_v10  ;;  %v2155_v38 = vsel %vm736_vm8, %v5345_v10, %v5346_v12  ;;  %v2165_v34 = vsel %vm750_vm10, %v5360_v43, %v5361_v63  ;;  %v2360_v37 = vsel %vm776_vm1, %v2177_v58, %v2332_v4 }
 0xa9f   : > { %2375 = vmatpush.msra.mxu0 %v2335_v0  ;;  %2395 = vmatpush.msrb.mxu1 %v2337_v31  ;;  %v2361_v35 = vsel %vm776_vm1, %v2178_v59, %v2333_v25  ;;  %v2142_v49 = vsel %vm719_vm9, %v5370_v1, %v5371_v56  ;;  %v2141_v29 = vsel %vm719_vm9, %v5351_v60, %v5370_v1  ;;  %v5385_v46 = vunpack.i.l.bf16 %v5384_v27  ;;  %v7677_v0 = vld [vmem:[#allocation13] sm:$0xff] }
 0xaa0   : > { %v2187_v2 = vsel %vm776_vm1, %v2154_v11, %v2164_v51  ;;  %v2188_v3 = vsel %vm776_vm1, %v2155_v38, %v2165_v34  ;;  %v5366_v12 = vunpack.i.h.bf16 %v7591_v6  ;;  %v2186_v56 = vsel %vm776_vm1, %v2055_v62, %v2142_v49 }
 0xaa1   : > { %2376 = vmatpush.msra.mxu0 %v2360_v37  ;;  %2396 = vmatpush.msrb.mxu1 %v2361_v35  ;;  %v5331_v1 = vunpack.i.h.bf16 %v7587_v57  ;;  %v9877_v53 = vmax.f32 %v7355_v55, 0.0  ;;  %v2096_v62 = vsel %vm662_vm3, %v5385_v46, %v5386_v41  ;;  %v2068_v55 = vmul.f32 %v7472_v9, %v6702_v14 }
 0xaa2   : > { %v5379_v52 = vpop.permute.xlu1 %5378  ;;  %v2069_v51 = vmul.f32 %v7445_v7, %v6705_v21 }
 0xaa3   : > { %v5374_v63 = vpop.permute.xlu0 %5373  ;;  %v5381_v43 = vunpack.i.h.bf16 %v5379_v52  ;;  %v5380_v4 = vunpack.i.l.bf16 %v5379_v52  ;;  %2377 = vmatpush.msra.mxu0 %v2187_v2  ;;  %2397 = vmatpush.msrb.mxu1 %v2188_v3  ;;  %v2185_v13 = vsel %vm776_vm1, %v9877_v53, %v2141_v29  ;;  %v2181_v31 = vsel %vm776_vm1, %v2068_v55, %v2096_v62 }
 0xaa4   : > { %v5376_v25 = vunpack.i.h.bf16 %v5374_v63  ;;  %v5375_v10 = vunpack.i.l.bf16 %v5374_v63 }
 0xaa5   : > { %2378 = vmatpush.msra.mxu0 %v2185_v13  ;;  %2398 = vmatpush.msrb.mxu1 %v2186_v56  ;;  %v2125_v6 = vsel %vm696_vm14, %v5366_v12, %v5380_v4  ;;  %v2126_v50 = vsel %vm696_vm14, %v5380_v4, %v5381_v43 }
 0xaa6   : > { %v2109_v60 = vsel %vm679_vm13, %v5331_v1, %v5375_v10  ;;  %v2110_v30 = vsel %vm679_vm13, %v5375_v10, %v5376_v25 }
 0xaa7   : > { %v2183_v57 = vsel %vm776_vm1, %v2109_v60, %v2125_v6  ;;  %v2184_v59 = vsel %vm776_vm1, %v2110_v30, %v2126_v50 }
 0xaa8   : > { %2379 = vmatpush.msra.mxu0 %v2183_v57  ;;  %2399 = vmatpush.msrb.mxu1 %v2184_v59 }
 0xaaa   : > { %2380 = vmatpush.msra.mxu0 %v2181_v31 }
 0xaab   : > { %v2095_v58 = vpop.permute.xlu0 %2094  ;;  %4892 = vmatmul.msk.f32.vlgmr.msra.gmra.mxu0 %vm1254_vm12, %v7677_v0 }
 0xaac   : > { %v2097_v27 = vsel %vm662_vm3, %v5386_v41, %v2095_v58 }
 0xaad   : > { %v2182_v11 = vsel %vm776_vm1, %v2069_v51, %v2097_v27 }
 0xaae   : > { %2400 = vmatpush.msrb.mxu1 %v2182_v11 }
 0xaaf   : > { %4893 = vmatmul.msk.f32.vlgmr.msrb.gmra.mxu1 %vm1254_vm12, %v7677_v0 }
 0xb28   : > { %v7688_v9 = vpop.f32.mrf.mxu0 }
 0xb29   : > { %v2405_v38 = vmax.f32 %v7688_v9, 0.0 }
 0xb2b   : > { %2409 = vrot.lane.b32.xlu1 %v2405_v38, %s6370_s19 }
 0xb2c   : > { %v7694_v34 = vpop.f32.mrf.mxu1 }
 0xb2d   : > { %v2406_v7 = vmax.f32 %v7694_v34, 0.0 }
 0xb2f   : > { %2411 = vrot.lane.b32.xlu2 %v2406_v7, %s6370_s19 }
 0xb89   : > { %v2412_v37 = vpop.permute.xlu2 %2411 }
 0xb8a   : > { %v2418_v35 = vsel %vm560_vm0, %v2412_v37, 0.0 }
 0xb8b   : > { %v2432_v49 = vmul.f32 %v2418_v35, %v6578_v16  ;;  %v2429_v25 = vmul.f32 %v2418_v35, %v6586_v20  ;;  %v2435_v10 = vmul.f32 %v2418_v35, %v6588_v22  ;;  %v2440_v50 = vrot.slane %v2418_v35, 4 }
 0xb8c   : > { %v2423_v31 = vmul.f32 %v2418_v35, %v6590_v23  ;;  %v2426_v27 = vmul.f32 %v2418_v35, %v6623_v39 }
 0xb8d   : > { %2503 = vrot.lane.b32.xlu1 %v2432_v49, %s6376_s16  ;;  %v2485_v53 = vrot.slane %v2429_v25, 4 }
 0xb8e   : > { %v2469_v49 = vrot.slane %v2426_v27, 4 }
 0xb9d   : > { %v2410_v29 = vpop.permute.xlu1 %2409 }
 0xb9e   : > { %v7704_v41 = vsel %vm560_vm0, %v2410_v29, %v2412_v37  ;;  %v7707_v46 = vsel %vm560_vm0, 0.0, %v2410_v29 }
 0xb9f   : > { %v2438_v52 = vrot.slane %v7707_v46, 4  ;;  %v2439_v2 = vrot.slane %v7704_v41, 4  ;;  %v2433_v3 = vmul.f32 %v7707_v46, %v6612_v33  ;;  %v2434_v12 = vmul.f32 %v7704_v41, %v6618_v36 }
 0xba0   : > { %v2430_v63 = vmul.f32 %v7707_v46, %v6576_v15  ;;  %v2431_v43 = vmul.f32 %v7704_v41, %v6646_v48  ;;  %v2424_v13 = vmul.f32 %v7707_v46, %v6584_v19  ;;  %v2425_v6 = vmul.f32 %v7704_v41, %v6640_v45 }
 0xba1   : > { %v5392_v4 = vpack.i.bf16 %v2439_v2, %v2438_v52  ;;  %v5397_v56 = vpack.i.bf16 %v2434_v12, %v2433_v3  ;;  %v2421_v62 = vmul.f32 %v7707_v46, %v6582_v18  ;;  %v2422_v57 = vmul.f32 %v7704_v41, %v6635_v44 }
 0xba2   : > { %v5387_v1 = vpack.i.bf16 %v2431_v43, %v2430_v63  ;;  %v2467_v60 = vrot.slane %v2424_v13, 4  ;;  %v2468_v30 = vrot.slane %v2425_v6, 4  ;;  %v2427_v58 = vmul.f32 %v7707_v46, %v6580_v17 }
 0xba3   : > { %5393 = vrot.lane.b32.xlu2 %v5392_v4, %s6375_s13  ;;  %5398 = vrot.lane.b32.xlu1 %v5397_v56, %s6373_s29  ;;  %v5402_v55 = vpack.i.bf16 %v2422_v57, %v2421_v62  ;;  %v2428_v51 = vmul.f32 %v7704_v41, %v6603_v28 }
 0xba4   : > { %5388 = vrot.lane.b32.xlu0 %v5387_v1, %s6376_s16  ;;  %v5412_v59 = vpack.i.bf16 %v2468_v30, %v2467_v60  ;;  %v2483_v11 = vrot.slane %v2427_v58, 4 }
 0xba5   : > { %v2484_v37 = vrot.slane %v2428_v51, 4 }
 0xba7   : > { %v5407_v29 = vpack.i.bf16 %v2484_v37, %v2483_v11 }
 0xbab   : > { %2526 = vrot.lane.b32.xlu2 %v2435_v10, %s6373_s29  ;;  %2490 = vrot.lane.b32.xlu1 %v2485_v53, %s6374_s20 }
 0xbac   : > { %2513 = vrot.lane.b32.xlu0 %v2440_v50, %s6375_s13 }
 0xbb3   : > { %5413 = vrot.lane.b32.xlu1 %v5412_v59, %s6378_s24  ;;  %5403 = vrot.lane.b32.xlu2 %v5402_v55, %s6377_s12 }
 0xbb4   : > { %2458 = vrot.lane.b32.xlu0 %v2423_v31, %s6377_s12 }
 0xbbb   : > { %2445 = vrot.lane.b32.xlu1 %v2440_v50, %s6379_s2  ;;  %2474 = vrot.lane.b32.xlu2 %v2469_v49, %s6378_s24 }
 0xbbc   : > { %5408 = vrot.lane.b32.xlu0 %v5407_v29, %s6374_s20 }
 0xbc4   : > { %5418 = vrot.lane.b32.xlu0 %v5392_v4, %s6379_s2 }
 0xbfd   : > { %v5394_v2 = vpop.permute.xlu2 %5393 }
 0xbfe   : > { %v5396_v3 = vunpack.i.h.bf16 %v5394_v2  ;;  %v5395_v12 = vunpack.i.l.bf16 %v5394_v2 }
 0xbff   : > { %v2504_v52 = vpop.permute.xlu1 %2503 }
 0xc00   : > { %v2515_v53 = vsel %vm750_vm10, %v5395_v12, %v5396_v3 }
 0xc05   : > { %v2527_v4 = vpop.permute.xlu2 %2526 }
 0xc0d   : > { %v5404_v37 = vpop.permute.xlu2 %5403 }
 0xc15   : > { %v5399_v63 = vpop.permute.xlu1 %5398 }
 0xc16   : > { %v5401_v43 = vunpack.i.h.bf16 %v5399_v63  ;;  %v5400_v56 = vunpack.i.l.bf16 %v5399_v63  ;;  %v5389_v35 = vpop.permute.xlu0 %5388  ;;  %v5406_v63 = vunpack.i.h.bf16 %v5404_v37 }
 0xc17   : > { %v5391_v1 = vunpack.i.h.bf16 %v5389_v35  ;;  %v5390_v25 = vunpack.i.l.bf16 %v5389_v35 }
 0xc18   : > { %v7749_v10 = vsel %vm764_vm6, %v5400_v56, %v5401_v43  ;;  %v7760_v62 = vsel %vm764_vm6, %v5401_v43, %v2527_v4  ;;  %v5405_v43 = vunpack.i.l.bf16 %v5404_v37 }
 0xc19   : > { %v2505_v13 = vsel %vm736_vm8, %v5390_v25, %v5391_v1  ;;  %v2562_v6 = vrot.slane %v7749_v10, 4  ;;  %v2506_v55 = vsel %vm736_vm8, %v5391_v1, %v2504_v52  ;;  %v2564_v27 = vrot.slane %v7760_v62, 4  ;;  %v2475_v52 = vpop.permute.xlu2 %2474 }
 0xc1a   : > { %v7755_v50 = vsel %vm776_vm1, %v2505_v13, %v2515_v53  ;;  %v2460_v53 = vsel %vm679_vm13, %v5405_v43, %v5406_v63 }
 0xc1b   : > { %v2558_v60 = vrot.slane %v7755_v50, 4 }
 0xc1d   : > { %v2563_v30 = vsel %vm776_vm1, %v2558_v60, %v2562_v6  ;;  %v2491_v57 = vpop.permute.xlu1 %2490 }
 0xc1e   : > { %v2514_v59 = vpop.permute.xlu0 %2513  ;;  %2588 = vmatpush.msra.mxu2 %v2563_v30 }
 0xc1f   : > { %v2516_v31 = vsel %vm750_vm10, %v5396_v3, %v2514_v59 }
 0xc20   : > { %v7765_v58 = vsel %vm776_vm1, %v2506_v55, %v2516_v31 }
 0xc21   : > { %v2560_v51 = vrot.slane %v7765_v58, 4 }
 0xc23   : > { %v2565_v11 = vsel %vm776_vm1, %v2560_v51, %v2564_v27 }
 0xc24   : > { %2608 = vmatpush.msrb.mxu3 %v2565_v11 }
 0xc25   : > { %v5414_v29 = vpop.permute.xlu1 %5413 }
 0xc26   : > { %v2459_v49 = vpop.permute.xlu0 %2458  ;;  %v5416_v2 = vunpack.i.h.bf16 %v5414_v29  ;;  %v5415_v12 = vunpack.i.l.bf16 %v5414_v29 }
 0xc27   : > { %v2461_v13 = vsel %vm679_vm13, %v5406_v63, %v2459_v49 }
 0xc28   : > { %v2476_v3 = vsel %vm696_vm14, %v5415_v12, %v5416_v2  ;;  %v2477_v35 = vsel %vm696_vm14, %v5416_v2, %v2475_v52 }
 0xc29   : > { %v7787_v55 = vsel %vm776_vm1, %v2460_v53, %v2476_v3  ;;  %v7790_v31 = vsel %vm776_vm1, %v2461_v13, %v2477_v35 }
 0xc2a   : > { %v2550_v37 = vrot.slane %v7787_v55, 4  ;;  %v2552_v49 = vrot.slane %v7790_v31, 4 }
 0xc2d   : > { %v2446_v43 = vpop.permute.xlu1 %2445 }
 0xc2e   : > { %v5409_v56 = vpop.permute.xlu0 %5408 }
 0xc2f   : > { %v5411_v1 = vunpack.i.h.bf16 %v5409_v56  ;;  %v5410_v25 = vunpack.i.l.bf16 %v5409_v56 }
 0xc31   : > { %v2493_v6 = vsel %vm719_vm9, %v5411_v1, %v2491_v57  ;;  %v2492_v4 = vsel %vm719_vm9, %v5410_v25, %v5411_v1 }
 0xc32   : > { %v7779_v30 = vsel %vm776_vm1, %v2405_v38, %v2492_v4  ;;  %v7784_v59 = vsel %vm776_vm1, %v2406_v7, %v2493_v6  ;;  %v2578_v6 = vrot.slane %v7677_v0, 4 }
 0xc33   : > { %v2554_v57 = vrot.slane %v7779_v30, 4  ;;  %v2556_v27 = vrot.slane %v7784_v59, 4 }
 0xc35   : > { %v2559_v11 = vsel %vm776_vm1, %v2554_v57, %v2558_v60  ;;  %v2561_v38 = vsel %vm776_vm1, %v2556_v27, %v2560_v51  ;;  %v2555_v12 = vsel %vm776_vm1, %v2550_v37, %v2554_v57  ;;  %v2557_v63 = vsel %vm776_vm1, %v2552_v49, %v2556_v27 }
 0xc36   : > { %v5419_v7 = vpop.permute.xlu0 %5418  ;;  %2589 = vmatpush.msra.mxu2 %v2559_v11  ;;  %2609 = vmatpush.msrb.mxu3 %v2561_v38  ;;  %v2419_v60 = vmul.f32 %v7707_v46, %v6702_v14  ;;  %v2420_v51 = vmul.f32 %v7704_v41, %v6705_v21 }
 0xc37   : > { %v5421_v29 = vunpack.i.h.bf16 %v5419_v7  ;;  %v5420_v2 = vunpack.i.l.bf16 %v5419_v7 }
 0xc38   : > { %2590 = vmatpush.msra.mxu2 %v2555_v12  ;;  %2610 = vmatpush.msrb.mxu3 %v2557_v63 }
 0xc39   : > { %v2447_v52 = vsel %vm662_vm3, %v5420_v2, %v5421_v29  ;;  %v2448_v56 = vsel %vm662_vm3, %v5421_v29, %v2446_v43 }
 0xc3a   : > { %v7807_v3 = vsel %vm776_vm1, %v2419_v60, %v2447_v52  ;;  %v7810_v35 = vsel %vm776_vm1, %v2420_v51, %v2448_v56 }
 0xc3b   : > { %v2548_v1 = vrot.slane %v7807_v3, 4  ;;  %v2549_v25 = vrot.slane %v7810_v35, 4 }
 0xc3d   : > { %v2551_v53 = vsel %vm776_vm1, %v2548_v1, %v2550_v37  ;;  %v2553_v46 = vsel %vm776_vm1, %v2549_v25, %v2552_v49  ;;  %v2576_v41 = vsel %vm776_vm1, %v7575_v54, %v2548_v1  ;;  %v2577_v13 = vsel %vm776_vm1, %v7572_v5, %v2549_v25 }
 0xc3e   : > { %2591 = vmatpush.msra.mxu2 %v2551_v53  ;;  %2611 = vmatpush.msrb.mxu3 %v2553_v46 }
 0xc40   : > { %2592 = vmatpush.msra.mxu2 %v2576_v41  ;;  %2612 = vmatpush.msrb.mxu3 %v2577_v13 }
 0xc42   : > { %2593 = vmatpush.msra.mxu2 %v7567_v42  ;;  %2613 = vmatpush.msrb.mxu3 %v7582_v40 }
 0xc44   : > { %2594 = vmatpush.msra.mxu2 %v7617_v26  ;;  %2614 = vmatpush.msrb.mxu3 %v7622_v47 }
 0xc46   : > { %2595 = vmatpush.msra.mxu2 %v7609_v8  ;;  %2615 = vmatpush.msrb.mxu3 %v7612_v61 }
 0xc48   : > { %2596 = vmatpush.msra.mxu2 %v7625_v24  ;;  %2616 = vmatpush.msrb.mxu3 %v7628_v32 }
 0xc49   : > { %4894 = vmatmul.msk.f32.vlgmr.msra.gmra.mxu2 %vm1254_vm12, %v2578_v6  ;;  %4895 = vmatmul.msk.f32.vlgmr.msrb.gmra.mxu3 %vm1254_vm12, %v2578_v6 }
 0xccc   : > { %v7831_v42 = vpop.f32.mrf.mxu2  ;;  %v7833_v5 = vpop.f32.mrf.mxu3 }
 0xccd   : > { %v2621_v54 = vmax.f32 %v7831_v42, 0.0  ;;  %v2622_v40 = vmax.f32 %v7833_v5, 0.0 }
 0xccf   : > { %2625 = vrot.lane.b32.xlu2 %v2621_v54, %s6370_s19  ;;  %2627 = vrot.lane.b32.xlu0 %v2622_v40, %s6370_s19 }
 0xd29   : > { %v2626_v8 = vpop.permute.xlu2 %2625 }
 0xd2a   : > { %v7844_v61 = vsel %vm560_vm0, 0.0, %v2626_v8 }
 0xd2b   : > { %v2654_v47 = vrot.slane %v7844_v61, 4  ;;  %v2646_v57 = vmul.f32 %v7844_v61, %v6576_v15  ;;  %v2649_v49 = vmul.f32 %v7844_v61, %v6612_v33  ;;  %v2637_v60 = vmul.f32 %v7844_v61, %v6582_v18 }
 0xd2c   : > { %v2640_v1 = vmul.f32 %v7844_v61, %v6584_v19  ;;  %v2643_v46 = vmul.f32 %v7844_v61, %v6580_v17 }
 0xd2e   : > { %v2683_v41 = vrot.slane %v2640_v1, 4 }
 0xd41   : > { %v2628_v26 = vpop.permute.xlu0 %2627 }
 0xd42   : > { %v7848_v24 = vsel %vm560_vm0, %v2626_v8, %v2628_v26  ;;  %v2634_v32 = vsel %vm560_vm0, %v2628_v26, 0.0  ;;  %v2699_v26 = vrot.slane %v2643_v46, 4 }
 0xd43   : > { %v2648_v0 = vmul.f32 %v2634_v32, %v6578_v16  ;;  %v2655_v4 = vrot.slane %v7848_v24, 4  ;;  %v2647_v27 = vmul.f32 %v7848_v24, %v6646_v48  ;;  %v2650_v37 = vmul.f32 %v7848_v24, %v6618_v36 }
 0xd44   : > { %v2651_v29 = vmul.f32 %v2634_v32, %v6588_v22  ;;  %v2656_v2 = vrot.slane %v2634_v32, 4  ;;  %v2645_v12 = vmul.f32 %v2634_v32, %v6586_v20  ;;  %v2638_v63 = vmul.f32 %v7848_v24, %v6635_v44 }
 0xd45   : > { %2719 = vrot.lane.b32.xlu2 %v2648_v0, %s6376_s16  ;;  %v5427_v11 = vpack.i.bf16 %v2655_v4, %v2654_v47  ;;  %v5422_v38 = vpack.i.bf16 %v2647_v27, %v2646_v57  ;;  %v5432_v7 = vpack.i.bf16 %v2650_v37, %v2649_v49  ;;  %v2641_v51 = vmul.f32 %v7848_v24, %v6640_v45 }
 0xd46   : > { %v2701_v43 = vrot.slane %v2645_v12, 4  ;;  %v2639_v52 = vmul.f32 %v2634_v32, %v6590_v23  ;;  %v5437_v56 = vpack.i.bf16 %v2638_v63, %v2637_v60  ;;  %v2644_v25 = vmul.f32 %v7848_v24, %v6603_v28 }
 0xd47   : > { %5428 = vrot.lane.b32.xlu0 %v5427_v11, %s6375_s13  ;;  %5423 = vrot.lane.b32.xlu1 %v5422_v38, %s6376_s16  ;;  %v2684_v53 = vrot.slane %v2641_v51, 4  ;;  %v2642_v6 = vmul.f32 %v2634_v32, %v6623_v39 }
 0xd48   : > { %v2700_v13 = vrot.slane %v2644_v25, 4 }
 0xd49   : > { %v5447_v8 = vpack.i.bf16 %v2684_v53, %v2683_v41  ;;  %v2685_v0 = vrot.slane %v2642_v6, 4 }
 0xd4a   : > { %v5442_v47 = vpack.i.bf16 %v2700_v13, %v2699_v26 }
 0xd4d   : > { %5433 = vrot.lane.b32.xlu2 %v5432_v7, %s6373_s29 }
 0xd4f   : > { %2742 = vrot.lane.b32.xlu0 %v2651_v29, %s6373_s29  ;;  %2729 = vrot.lane.b32.xlu1 %v2656_v2, %s6375_s13 }
 0xd55   : > { %2706 = vrot.lane.b32.xlu2 %v2701_v43, %s6374_s20 }
 0xd57   : > { %2674 = vrot.lane.b32.xlu1 %v2639_v52, %s6377_s12  ;;  %5438 = vrot.lane.b32.xlu0 %v5437_v56, %s6377_s12 }
 0xd5d   : > { %5448 = vrot.lane.b32.xlu2 %v5447_v8, %s6378_s24 }
 0xd5f   : > { %5443 = vrot.lane.b32.xlu1 %v5442_v47, %s6374_s20  ;;  %2690 = vrot.lane.b32.xlu0 %v2685_v0, %s6378_s24 }
 0xd65   : > { %2661 = vrot.lane.b32.xlu2 %v2656_v2, %s6379_s2 }
 0xd67   : > { %5453 = vrot.lane.b32.xlu1 %v5427_v11, %s6379_s2 }
 0xd9f   : > { %v2720_v4 = vpop.permute.xlu2 %2719 }
 0xda7   : > { %v5434_v57 = vpop.permute.xlu2 %5433 }
 0xda8   : > { %v5436_v27 = vunpack.i.h.bf16 %v5434_v57  ;;  %v5435_v38 = vunpack.i.l.bf16 %v5434_v57 }
 0xdaa   : > { %v7892_v63 = vsel %vm764_vm6, %v5435_v38, %v5436_v27 }
 0xdab   : > { %v2778_v51 = vrot.slane %v7892_v63, 4 }
 0xdaf   : > { %v2707_v41 = vpop.permute.xlu2 %2706 }
 0xdb7   : > { %v5449_v57 = vpop.permute.xlu2 %5448 }
 0xdb9   : > { %v5429_v37 = vpop.permute.xlu0 %5428  ;;  %v5424_v32 = vpop.permute.xlu1 %5423 }
 0xdba   : > { %v5431_v49 = vunpack.i.h.bf16 %v5429_v37  ;;  %v5430_v7 = vunpack.i.l.bf16 %v5429_v37  ;;  %v5426_v29 = vunpack.i.h.bf16 %v5424_v32  ;;  %v5425_v12 = vunpack.i.l.bf16 %v5424_v32 }
 0xdbb   : > { %v5450_v37 = vunpack.i.l.bf16 %v5449_v57 }
 0xdbc   : > { %v2731_v43 = vsel %vm750_vm10, %v5430_v7, %v5431_v49  ;;  %v2721_v60 = vsel %vm736_vm8, %v5425_v12, %v5426_v29  ;;  %v2722_v53 = vsel %vm736_vm8, %v5426_v29, %v2720_v4  ;;  %v5451_v4 = vunpack.i.h.bf16 %v5449_v57 }
 0xdbd   : > { %v7897_v2 = vsel %vm776_vm1, %v2721_v60, %v2731_v43 }
 0xdbe   : > { %v2774_v11 = vrot.slane %v7897_v2, 4  ;;  %v2692_v60 = vsel %vm696_vm14, %v5450_v37, %v5451_v4 }
 0xdc0   : > { %v2779_v1 = vsel %vm776_vm1, %v2774_v11, %v2778_v51 }
 0xdc1   : > { %v2743_v52 = vpop.permute.xlu0 %2742  ;;  %v2730_v56 = vpop.permute.xlu1 %2729  ;;  %2804 = vmatpush.msrb.mxu0 %v2779_v1 }
 0xdc2   : > { %v7903_v25 = vsel %vm764_vm6, %v5436_v27, %v2743_v52  ;;  %v2732_v46 = vsel %vm750_vm10, %v5431_v49, %v2730_v56 }
 0xdc3   : > { %v2780_v13 = vrot.slane %v7903_v25, 4  ;;  %v7909_v6 = vsel %vm776_vm1, %v2722_v53, %v2732_v46 }
 0xdc4   : > { %v2776_v8 = vrot.slane %v7909_v6, 4 }
 0xdc6   : > { %v2781_v26 = vsel %vm776_vm1, %v2776_v8, %v2780_v13 }
 0xdc7   : > { %2824 = vmatpush.msra.mxu1 %v2781_v26 }
 0xdc9   : > { %v2675_v47 = vpop.permute.xlu1 %2674  ;;  %v5439_v0 = vpop.permute.xlu0 %5438 }
 0xdca   : > { %v5441_v27 = vunpack.i.h.bf16 %v5439_v0  ;;  %v5440_v38 = vunpack.i.l.bf16 %v5439_v0 }
 0xdcc   : > { %v2676_v7 = vsel %vm679_vm13, %v5440_v38, %v5441_v27  ;;  %v2677_v56 = vsel %vm679_vm13, %v5441_v27, %v2675_v47 }
 0xdcd   : > { %v7933_v13 = vsel %vm776_vm1, %v2676_v7, %v2692_v60 }
 0xdd1   : > { %v5444_v32 = vpop.permute.xlu1 %5443  ;;  %v2691_v49 = vpop.permute.xlu0 %2690 }
 0xdd2   : > { %v5446_v29 = vunpack.i.h.bf16 %v5444_v32  ;;  %v5445_v12 = vunpack.i.l.bf16 %v5444_v32  ;;  %v2693_v43 = vsel %vm696_vm14, %v5451_v4, %v2691_v49  ;;  %v2662_v32 = vpop.permute.xlu2 %2661  ;;  %v2635_v49 = vmul.f32 %v7844_v61, %v6702_v14 }
 0xdd3   : > { %v7920_v1 = vsel %vm776_vm1, %v2677_v56, %v2693_v43  ;;  %v7969_v56 = vld [vmem:[#allocation13 + $0x8] sm:$0xff] }
 0xdd4   : > { %v2709_v51 = vsel %vm719_vm9, %v5446_v29, %v2707_v41  ;;  %v2708_v52 = vsel %vm719_vm9, %v5445_v12, %v5446_v29  ;;  %v2768_v47 = vrot.slane %v7920_v1, 4 }
 0xdd5   : > { %v7925_v53 = vsel %vm776_vm1, %v2621_v54, %v2708_v52  ;;  %v7930_v46 = vsel %vm776_vm1, %v2622_v40, %v2709_v51  ;;  %v2766_v54 = vrot.slane %v7933_v13, 4 }
 0xdd6   : > { %v2770_v41 = vrot.slane %v7925_v53, 4  ;;  %v2772_v26 = vrot.slane %v7930_v46, 4 }
 0xdd8   : > { %v2775_v0 = vsel %vm776_vm1, %v2770_v41, %v2774_v11  ;;  %v2777_v57 = vsel %vm776_vm1, %v2772_v26, %v2776_v8  ;;  %v2771_v4 = vsel %vm776_vm1, %v2766_v54, %v2770_v41  ;;  %v2773_v37 = vsel %vm776_vm1, %v2768_v47, %v2772_v26 }
 0xdd9   : > { %v5454_v27 = vpop.permute.xlu1 %5453  ;;  %2805 = vmatpush.msrb.mxu0 %v2775_v0  ;;  %2825 = vmatpush.msra.mxu1 %v2777_v57  ;;  %v2636_v11 = vmul.f32 %v7848_v24, %v6705_v21 }
 0xdda   : > { %v5456_v40 = vunpack.i.h.bf16 %v5454_v27  ;;  %v5455_v38 = vunpack.i.l.bf16 %v5454_v27 }
 0xddb   : > { %2806 = vmatpush.msrb.mxu0 %v2771_v4  ;;  %2826 = vmatpush.msra.mxu1 %v2773_v37 }
 0xddc   : > { %v2663_v8 = vsel %vm662_vm3, %v5455_v38, %v5456_v40  ;;  %v2664_v7 = vsel %vm662_vm3, %v5456_v40, %v2662_v32 }
 0xddd   : > { %v7950_v29 = vsel %vm776_vm1, %v2635_v49, %v2663_v8  ;;  %v7953_v12 = vsel %vm776_vm1, %v2636_v11, %v2664_v7 }
 0xdde   : > { %v2764_v43 = vrot.slane %v7950_v29, 4  ;;  %v2765_v60 = vrot.slane %v7953_v12, 4 }
 0xde0   : > { %v2767_v51 = vsel %vm776_vm1, %v2764_v43, %v2766_v54  ;;  %v2769_v61 = vsel %vm776_vm1, %v2765_v60, %v2768_v47  ;;  %v2792_v24 = vsel %vm776_vm1, %v7749_v10, %v2764_v43  ;;  %v2793_v52 = vsel %vm776_vm1, %v7760_v62, %v2765_v60 }
 0xde1   : > { %2807 = vmatpush.msrb.mxu0 %v2767_v51  ;;  %2827 = vmatpush.msra.mxu1 %v2769_v61 }
 0xde3   : > { %2808 = vmatpush.msrb.mxu0 %v2792_v24  ;;  %2828 = vmatpush.msra.mxu1 %v2793_v52 }
 0xde5   : > { %2809 = vmatpush.msrb.mxu0 %v7755_v50  ;;  %2829 = vmatpush.msra.mxu1 %v7765_v58 }
 0xde7   : > { %2810 = vmatpush.msrb.mxu0 %v7779_v30  ;;  %2830 = vmatpush.msra.mxu1 %v7784_v59 }
 0xde9   : > { %2811 = vmatpush.msrb.mxu0 %v7787_v55  ;;  %2831 = vmatpush.msra.mxu1 %v7790_v31 }
 0xdeb   : > { %2812 = vmatpush.msrb.mxu0 %v7807_v3  ;;  %2832 = vmatpush.msra.mxu1 %v7810_v35 }
 0xdec   : > { %4896 = vmatmul.msk.f32.vlgmr.msrb.gmra.mxu0 %vm1254_vm12, %v7969_v56  ;;  %4897 = vmatmul.msk.f32.vlgmr.msra.gmra.mxu1 %vm1254_vm12, %v7969_v56 }
 0xe69   : > { %v7977_v10 = vpop.f32.mrf.mxu0  ;;  %v7979_v50 = vpop.f32.mrf.mxu1 }
 0xe6a   : > { %v2837_v62 = vmax.f32 %v7977_v10, 0.0  ;;  %v2838_v58 = vmax.f32 %v7979_v50, 0.0 }
 0xe6c   : > { %2841 = vrot.lane.b32.xlu0 %v2837_v62, %s6370_s19  ;;  %2843 = vrot.lane.b32.xlu1 %v2838_v58, %s6370_s19 }
 0xede   : > { %v2842_v30 = vpop.permute.xlu0 %2841  ;;  %v2844_v59 = vpop.permute.xlu1 %2843 }
 0xedf   : > { %v7990_v55 = vsel %vm560_vm0, 0.0, %v2842_v30  ;;  %v7993_v31 = vsel %vm560_vm0, %v2842_v30, %v2844_v59  ;;  %v2850_v3 = vsel %vm560_vm0, %v2844_v59, 0.0 }
 0xee0   : > { %v2864_v35 = vmul.f32 %v2850_v3, %v6578_v16  ;;  %v2870_v41 = vrot.slane %v7990_v55, 4  ;;  %v2871_v26 = vrot.slane %v7993_v31, 4  ;;  %v2862_v47 = vmul.f32 %v7990_v55, %v6576_v15 }
 0xee1   : > { %v2863_v0 = vmul.f32 %v7993_v31, %v6646_v48  ;;  %v2865_v27 = vmul.f32 %v7990_v55, %v6612_v33  ;;  %v2866_v40 = vmul.f32 %v7993_v31, %v6618_v36  ;;  %v2867_v4 = vmul.f32 %v2850_v3, %v6588_v22 }
 0xee2   : > { %2935 = vrot.lane.b32.xlu0 %v2864_v35, %s6376_s16  ;;  %v5462_v57 = vpack.i.bf16 %v2871_v26, %v2870_v41  ;;  %v2872_v37 = vrot.slane %v2850_v3, 4  ;;  %v2861_v32 = vmul.f32 %v2850_v3, %v6586_v20  ;;  %v2853_v49 = vmul.f32 %v7990_v55, %v6582_v18 }
 0xee3   : > { %v5457_v54 = vpack.i.bf16 %v2863_v0, %v2862_v47  ;;  %v5467_v38 = vpack.i.bf16 %v2866_v40, %v2865_v27  ;;  %v2854_v11 = vmul.f32 %v7993_v31, %v6635_v44  ;;  %v2856_v7 = vmul.f32 %v7990_v55, %v6584_v19 }
 0xee4   : > { %5463 = vrot.lane.b32.xlu1 %v5462_v57, %s6375_s13  ;;  %v2917_v8 = vrot.slane %v2861_v32, 4  ;;  %v2857_v43 = vmul.f32 %v7993_v31, %v6640_v45  ;;  %v2855_v51 = vmul.f32 %v2850_v3, %v6590_v23  ;;  %v2859_v61 = vmul.f32 %v7990_v55, %v6580_v17 }
 0xee5   : > { %5458 = vrot.lane.b32.xlu2 %v5457_v54, %s6376_s16  ;;  %v5472_v60 = vpack.i.bf16 %v2854_v11, %v2853_v49  ;;  %v2860_v24 = vmul.f32 %v7993_v31, %v6603_v28  ;;  %v2899_v52 = vrot.slane %v2856_v7, 4  ;;  %v2858_v59 = vmul.f32 %v2850_v3, %v6623_v39 }
 0xee6   : > { %v2900_v30 = vrot.slane %v2857_v43, 4  ;;  %v2915_v35 = vrot.slane %v2859_v61, 4  ;;  %v3053_v54 = vrot.slane %v7831_v42, 4  ;;  %v3054_v3 = vrot.slane %v7833_v5, 4 }
 0xee7   : > { %v2916_v41 = vrot.slane %v2860_v24, 4  ;;  %v2901_v47 = vrot.slane %v2858_v59, 4 }
 0xee8   : > { %v5482_v26 = vpack.i.bf16 %v2900_v30, %v2899_v52  ;;  %v8039_v27 = vsel %vm776_vm1, %v7688_v9, %v3053_v54  ;;  %v8047_v40 = vsel %vm776_vm1, %v7694_v34, %v3054_v3 }
 0xee9   : > { %v5477_v0 = vpack.i.bf16 %v2916_v41, %v2915_v35 }
 0xeea   : > { %5468 = vrot.lane.b32.xlu0 %v5467_v38, %s6373_s29 }
 0xeec   : > { %2958 = vrot.lane.b32.xlu1 %v2867_v4, %s6373_s29 }
 0xeed   : > { %2945 = vrot.lane.b32.xlu2 %v2872_v37, %s6375_s13 }
 0xef2   : > { %2922 = vrot.lane.b32.xlu0 %v2917_v8, %s6374_s20 }
 0xef4   : > { %5473 = vrot.lane.b32.xlu1 %v5472_v60, %s6377_s12 }
 0xef5   : > { %2890 = vrot.lane.b32.xlu2 %v2855_v51, %s6377_s12 }
 0xefa   : > { %5483 = vrot.lane.b32.xlu0 %v5482_v26, %s6378_s24 }
 0xefc   : > { %2906 = vrot.lane.b32.xlu1 %v2901_v47, %s6378_s24 }
 0xefd   : > { %5478 = vrot.lane.b32.xlu2 %v5477_v0, %s6374_s20 }
 0xf02   : > { %2877 = vrot.lane.b32.xlu0 %v2872_v37, %s6379_s2 }
 0xf04   : > { %3087 = vrot.lane.b32.xlu1 %v8039_v27, %s6370_s19 }
 0xf05   : > { %5488 = vrot.lane.b32.xlu2 %v5462_v57, %s6379_s2 }
 0xf0d   : > { %3089 = vrot.lane.b32.xlu2 %v8047_v40, %s6370_s19 }
 0xf3f   : > { %v5459_v42 = vpop.permute.xlu2 %5458 }
 0xf40   : > { %v5461_v32 = vunpack.i.h.bf16 %v5459_v42  ;;  %v5460_v49 = vunpack.i.l.bf16 %v5459_v42 }
 0xf42   : > { %v2937_v51 = vsel %vm736_vm8, %v5460_v49, %v5461_v32 }
 0xf47   : > { %v2946_v38 = vpop.permute.xlu2 %2945 }
 0xf4f   : > { %v2891_v4 = vpop.permute.xlu2 %2890 }
 0xf54   : > { %v2936_v37 = vpop.permute.xlu0 %2935 }
 0xf55   : > { %v2938_v61 = vsel %vm736_vm8, %v5461_v32, %v2936_v37 }
 0xf56   : > { %v5464_v9 = vpop.permute.xlu1 %5463 }
 0xf57   : > { %v5466_v11 = vunpack.i.h.bf16 %v5464_v9  ;;  %v5465_v8 = vunpack.i.l.bf16 %v5464_v9  ;;  %v5479_v7 = vpop.permute.xlu2 %5478 }
 0xf58   : > { %v5481_v57 = vunpack.i.h.bf16 %v5479_v7  ;;  %v5480_v43 = vunpack.i.l.bf16 %v5479_v7 }
 0xf59   : > { %v2947_v5 = vsel %vm750_vm10, %v5465_v8, %v5466_v11  ;;  %v2948_v34 = vsel %vm750_vm10, %v5466_v11, %v2946_v38 }
 0xf5a   : > { %v2924_v60 = vsel %vm719_vm9, %v5480_v43, %v5481_v57  ;;  %v2968_v52 = vsel %vm776_vm1, %v2937_v51, %v2947_v5  ;;  %v2969_v35 = vsel %vm776_vm1, %v2938_v61, %v2948_v34 }
 0xf5b   : > { %v2966_v41 = vsel %vm776_vm1, %v2837_v62, %v2924_v60  ;;  %v2988_v54 = vrot.slane %v2968_v52, 4  ;;  %v2990_v38 = vrot.slane %v2969_v35, 4 }
 0xf5c   : > { %v5469_v24 = vpop.permute.xlu0 %5468  ;;  %v2984_v37 = vrot.slane %v2966_v41, 4  ;;  %v2851_v41 = vmul.f32 %v7990_v55, %v6702_v14 }
 0xf5d   : > { %v5471_v30 = vunpack.i.h.bf16 %v5469_v24  ;;  %v5470_v59 = vunpack.i.l.bf16 %v5469_v24 }
 0xf5e   : > { %v2959_v26 = vpop.permute.xlu1 %2958  ;;  %v2989_v11 = vsel %vm776_vm1, %v2984_v37, %v2988_v54 }
 0xf5f   : > { %v2960_v47 = vsel %vm764_vm6, %v5470_v59, %v5471_v30  ;;  %v2961_v0 = vsel %vm764_vm6, %v5471_v30, %v2959_v26  ;;  %v5489_v8 = vpop.permute.xlu2 %5488 }
 0xf60   : > { %v2992_v3 = vrot.slane %v2960_v47, 4  ;;  %v2994_v42 = vrot.slane %v2961_v0, 4  ;;  %v5491_v34 = vunpack.i.h.bf16 %v5489_v8  ;;  %v5490_v60 = vunpack.i.l.bf16 %v5489_v8 }
 0xf62   : > { %v2993_v9 = vsel %vm776_vm1, %v2988_v54, %v2992_v3  ;;  %v2995_v32 = vsel %vm776_vm1, %v2990_v38, %v2994_v42  ;;  %v2879_v30 = vsel %vm662_vm3, %v5490_v60, %v5491_v34 }
 0xf63   : > { %3018 = vmatpush.msrb.mxu2 %v2993_v9  ;;  %3038 = vmatpush.msra.mxu3 %v2995_v32  ;;  %v2962_v42 = vsel %vm776_vm1, %v2851_v41, %v2879_v30  ;;  %v3008_v30 = vrot.slane %v7969_v56, 4 }
 0xf64   : > { %v2923_v49 = vpop.permute.xlu0 %2922 }
 0xf65   : > { %v2925_v62 = vsel %vm719_vm9, %v5481_v57, %v2923_v49  ;;  %3019 = vmatpush.msrb.mxu2 %v2989_v11  ;;  %v2978_v49 = vrot.slane %v2962_v42, 4 }
 0xf66   : > { %v2967_v7 = vsel %vm776_vm1, %v2838_v58, %v2925_v62  ;;  %v5474_v43 = vpop.permute.xlu1 %5473  ;;  %v2852_v62 = vmul.f32 %v7993_v31, %v6705_v21 }
 0xf67   : > { %v2986_v5 = vrot.slane %v2967_v7, 4  ;;  %v5476_v61 = vunpack.i.h.bf16 %v5474_v43  ;;  %v5475_v24 = vunpack.i.l.bf16 %v5474_v43  ;;  %v3090_v7 = vpop.permute.xlu2 %3089  ;;  %v3006_v31 = vsel %vm776_vm1, %v7892_v63, %v2978_v49 }
 0xf68   : > { %v3105_v42 = vsel %vm560_vm0, %v3090_v7, 0.0 }
 0xf69   : > { %v2991_v51 = vsel %vm776_vm1, %v2986_v5, %v2990_v38  ;;  %v2892_v58 = vsel %vm679_vm13, %v5475_v24, %v5476_v61  ;;  %v2893_v47 = vsel %vm679_vm13, %v5476_v61, %v2891_v4 }
 0xf6a   : > { %3039 = vmatpush.msra.mxu3 %v2991_v51 }
 0xf6c   : > { %v5484_v52 = vpop.permute.xlu0 %5483 }
 0xf6d   : > { %v5486_v59 = vunpack.i.h.bf16 %v5484_v52  ;;  %v5485_v57 = vunpack.i.l.bf16 %v5484_v52 }
 0xf6e   : > { %v2907_v35 = vpop.permute.xlu1 %2906 }
 0xf6f   : > { %v2908_v26 = vsel %vm696_vm14, %v5485_v57, %v5486_v59  ;;  %v2909_v0 = vsel %vm696_vm14, %v5486_v59, %v2907_v35 }
 0xf70   : > { %v2965_v54 = vsel %vm776_vm1, %v2893_v47, %v2909_v0  ;;  %v2964_v3 = vsel %vm776_vm1, %v2892_v58, %v2908_v26 }
 0xf71   : > { %v2982_v38 = vrot.slane %v2965_v54, 4  ;;  %v2980_v9 = vrot.slane %v2964_v3, 4 }
 0xf73   : > { %v2985_v32 = vsel %vm776_vm1, %v2980_v9, %v2984_v37  ;;  %v2987_v55 = vsel %vm776_vm1, %v2982_v38, %v2986_v5  ;;  %v2981_v8 = vsel %vm776_vm1, %v2978_v49, %v2980_v9 }
 0xf74   : > { %v2878_v11 = vpop.permute.xlu0 %2877  ;;  %3020 = vmatpush.msrb.mxu2 %v2985_v32  ;;  %3040 = vmatpush.msra.mxu3 %v2987_v55 }
 0xf75   : > { %v2880_v4 = vsel %vm662_vm3, %v5491_v34, %v2878_v11  ;;  %v3113_v11 = vmul.f32 %v3105_v42, %v6590_v23 }
 0xf76   : > { %v2963_v43 = vsel %vm776_vm1, %v2852_v62, %v2880_v4  ;;  %v3088_v60 = vpop.permute.xlu1 %3087  ;;  %3021 = vmatpush.msrb.mxu2 %v2981_v8 }
 0xf77   : > { %v2979_v51 = vrot.slane %v2963_v43, 4  ;;  %v8089_v37 = vsel %vm560_vm0, %v3088_v60, %v3090_v7  ;;  %v8092_v5 = vsel %vm560_vm0, 0.0, %v3088_v60  ;;  %v3119_v60 = vmul.f32 %v3105_v42, %v6623_v39 }
 0xf78   : > { %3022 = vmatpush.msrb.mxu2 %v3006_v31  ;;  %v5492_v34 = vpack.i.bf16 %v8089_v37, %v8092_v5  ;;  %v3111_v52 = vmul.f32 %v8092_v5, %v6582_v18  ;;  %v3112_v63 = vmul.f32 %v8089_v37, %v6635_v44  ;;  %v3135_v59 = vmul.f32 %v8092_v5, %v6612_v33 }
 0xf79   : > { %v2983_v61 = vsel %vm776_vm1, %v2979_v51, %v2982_v38  ;;  %v3007_v24 = vsel %vm776_vm1, %v7903_v25, %v2979_v51  ;;  %v3117_v25 = vmul.f32 %v8092_v5, %v6584_v19  ;;  %v3136_v57 = vmul.f32 %v8089_v37, %v6618_v36 }
 0xf7a   : > { %5493 = vrot.lane.b32.xlu2 %v5492_v34, %s6379_s2  ;;  %3023 = vmatpush.msrb.mxu2 %v7897_v2  ;;  %v5497_v2 = vpack.i.bf16 %v3112_v63, %v3111_v52  ;;  %v3125_v52 = vmul.f32 %v3105_v42, %v6586_v20 }
 0xf7b   : > { %3041 = vmatpush.msra.mxu3 %v2983_v61  ;;  %v5582_v35 = vpack.i.bf16 %v3136_v57, %v3135_v59 }
 0xf7c   : > { %3024 = vmatpush.msrb.mxu2 %v7925_v53  ;;  %v3118_v53 = vmul.f32 %v8089_v37, %v6640_v45 }
 0xf7d   : > { %3042 = vmatpush.msra.mxu3 %v3007_v24 }
 0xf7e   : > { %3025 = vmatpush.msrb.mxu2 %v7933_v13  ;;  %v3124_v13 = vmul.f32 %v8089_v37, %v6603_v28 }
 0xf7f   : > { %3043 = vmatpush.msra.mxu3 %v7909_v6  ;;  %v5502_v6 = vpack.i.bf16 %v3118_v53, %v3117_v25 }
 0xf80   : > { %3026 = vmatpush.msrb.mxu2 %v7950_v29  ;;  %v3129_v29 = vmul.f32 %v8092_v5, %v6576_v15 }
 0xf81   : > { %3044 = vmatpush.msra.mxu3 %v7930_v46  ;;  %4898 = vmatmul.msk.f32.vlgmr.msrb.gmra.mxu2 %vm1254_vm12, %v3008_v30  ;;  %v3123_v46 = vmul.f32 %v8092_v5, %v6580_v17 }
 0xf82   : > { %5498 = vrot.lane.b32.xlu2 %v5497_v2, %s6377_s12 }
 0xf83   : > { %3045 = vmatpush.msra.mxu3 %v7920_v1  ;;  %v5507_v1 = vpack.i.bf16 %v3124_v13, %v3123_v46 }
 0xf85   : > { %3046 = vmatpush.msra.mxu3 %v7953_v12  ;;  %v3130_v12 = vmul.f32 %v8089_v37, %v6646_v48 }
 0xf86   : > { %4899 = vmatmul.msk.f32.vlgmr.msra.gmra.mxu3 %vm1254_vm12, %v3008_v30 }
 0xf87   : > { %v5512_v56 = vpack.i.bf16 %v3130_v12, %v3129_v29 }
 0xf8a   : > { %5503 = vrot.lane.b32.xlu2 %v5502_v6, %s6378_s24  ;;  %v3131_v6 = vmul.f32 %v3105_v42, %v6578_v16 }
 0xf92   : > { %5508 = vrot.lane.b32.xlu2 %v5507_v1, %s6374_s20 }
 0xf9a   : > { %5513 = vrot.lane.b32.xlu2 %v5512_v56, %s6376_s16  ;;  %v3137_v56 = vmul.f32 %v3105_v42, %v6588_v22 }
 0xfa2   : > { %5518 = vrot.lane.b32.xlu2 %v5492_v34, %s6375_s13 }
 0xfaa   : > { %5583 = vrot.lane.b32.xlu2 %v5582_v35, %s6373_s29 }
0x1004   : > { %v3028_v41 = vpop.f32.mrf.mxu2 }
0x1005   : > { %v3059_v58 = vrot.slane %v3028_v41, 4 }
0x1007   : > { %v8141_v26 = vsel %vm776_vm1, %v7977_v10, %v3059_v58  ;;  %v8205_v58 = vpop.permute.xlu2 %5493 }
0x1008   : > { %3091 = vrot.lane.b32.xlu0 %v8141_v26, %s6370_s19 }
0x1009   : > { %v3048_v47 = vpop.f32.mrf.mxu3 }
0x100a   : > { %v3060_v0 = vrot.slane %v3048_v47, 4 }
0x100c   : > { %v8147_v54 = vsel %vm776_vm1, %v7979_v50, %v3060_v0 }
0x100d   : > { %3093 = vrot.lane.b32.xlu1 %v8147_v54, %s6370_s19 }
0x100f   : > { %v8207_v47 = vpop.permute.xlu2 %5498 }
0x107a   : > { %v3092_v3 = vpop.permute.xlu0 %3091 }
0x107b   : > { %v8153_v38 = vsel %vm560_vm0, 0.0, %v3092_v3 }
0x107c   : > { %v5522_v10 = vpack.i.bf16 %v8153_v38, %v3105_v42  ;;  %v3114_v55 = vmul.f32 %v8153_v38, %v6582_v18  ;;  %v3120_v7 = vmul.f32 %v8153_v38, %v6584_v19  ;;  %v3126_v61 = vmul.f32 %v8153_v38, %v6580_v17 }
0x107d   : > { %v3132_v25 = vmul.f32 %v8153_v38, %v6576_v15  ;;  %v3138_v12 = vmul.f32 %v8153_v38, %v6612_v33 }
0x107e   : > { %5523 = vrot.lane.b32.xlu0 %v5522_v10, %s6379_s2  ;;  %v5532_v62 = vpack.i.bf16 %v3114_v55, %v3113_v11  ;;  %v5542_v51 = vpack.i.bf16 %v3120_v7, %v3119_v60  ;;  %v5552_v63 = vpack.i.bf16 %v3126_v61, %v3125_v52 }
0x107f   : > { %v3094_v9 = vpop.permute.xlu1 %3093  ;;  %v5562_v46 = vpack.i.bf16 %v3132_v25, %v3131_v6  ;;  %v5587_v59 = vpack.i.bf16 %v3138_v12, %v3137_v56 }
0x1080   : > { %v8158_v32 = vsel %vm560_vm0, %v3092_v3, %v3094_v9  ;;  %v3106_v50 = vsel %vm560_vm0, %v3094_v9, 0.0  ;;  %v5496_v3 = vunpack.i.h.bf16 %v8205_v58 }
0x1081   : > { %v5527_v49 = vpack.i.bf16 %v3106_v50, %v8158_v32  ;;  %v3115_v4 = vmul.f32 %v8158_v32, %v6635_v44  ;;  %v3116_v8 = vmul.f32 %v3106_v50, %v6590_v23  ;;  %v3121_v31 = vmul.f32 %v8158_v32, %v6640_v45 }
0x1082   : > { %v3122_v34 = vmul.f32 %v3106_v50, %v6623_v39  ;;  %v3127_v30 = vmul.f32 %v8158_v32, %v6603_v28  ;;  %v3128_v2 = vmul.f32 %v3106_v50, %v6586_v20  ;;  %v3133_v13 = vmul.f32 %v8158_v32, %v6646_v48 }
0x1083   : > { %5528 = vrot.lane.b32.xlu1 %v5527_v49, %s6379_s2  ;;  %v5537_v43 = vpack.i.bf16 %v3116_v8, %v3115_v4  ;;  %v3134_v1 = vmul.f32 %v3106_v50, %v6578_v16  ;;  %v3139_v57 = vmul.f32 %v8158_v32, %v6618_v36  ;;  %v3140_v35 = vmul.f32 %v3106_v50, %v6588_v22 }
0x1084   : > { %v5547_v24 = vpack.i.bf16 %v3122_v34, %v3121_v31  ;;  %v5557_v53 = vpack.i.bf16 %v3128_v2, %v3127_v30 }
0x1085   : > { %v5572_v29 = vpack.i.bf16 %v3134_v1, %v3133_v13  ;;  %v5592_v41 = vpack.i.bf16 %v3140_v35, %v3139_v57 }
0x1086   : > { %5533 = vrot.lane.b32.xlu0 %v5532_v62, %s6377_s12  ;;  %v8225_v62 = vpop.permute.xlu2 %5503 }
0x108b   : > { %5538 = vrot.lane.b32.xlu1 %v5537_v43, %s6377_s12 }
0x108e   : > { %5543 = vrot.lane.b32.xlu0 %v5542_v51, %s6378_s24  ;;  %v8231_v7 = vpop.permute.xlu2 %5508 }
0x1093   : > { %5548 = vrot.lane.b32.xlu1 %v5547_v24, %s6378_s24 }
0x1096   : > { %5553 = vrot.lane.b32.xlu0 %v5552_v63, %s6374_s20  ;;  %v5514_v31 = vpop.permute.xlu2 %5513 }
0x1097   : > { %v5516_v13 = vunpack.i.h.bf16 %v5514_v31  ;;  %v5515_v1 = vunpack.i.l.bf16 %v5514_v31 }
0x109b   : > { %5558 = vrot.lane.b32.xlu1 %v5557_v53, %s6374_s20 }
0x109e   : > { %5563 = vrot.lane.b32.xlu0 %v5562_v46, %s6376_s16  ;;  %v5519_v24 = vpop.permute.xlu2 %5518 }
0x109f   : > { %v5521_v63 = vunpack.i.h.bf16 %v5519_v24  ;;  %v5520_v30 = vunpack.i.l.bf16 %v5519_v24  ;;  %v5510_v24 = vunpack.i.l.bf16 %v8231_v7 }
0x10a3   : > { %5573 = vrot.lane.b32.xlu1 %v5572_v29, %s6376_s16 }
0x10a6   : > { %5568 = vrot.lane.b32.xlu0 %v5522_v10, %s6375_s13  ;;  %v5584_v57 = vpop.permute.xlu2 %5583 }
0x10ab   : > { %5578 = vrot.lane.b32.xlu1 %v5527_v49, %s6375_s13 }
0x10ae   : > { %5588 = vrot.lane.b32.xlu0 %v5587_v59, %s6373_s29 }
0x10b3   : > { %5593 = vrot.lane.b32.xlu1 %v5592_v41, %s6373_s29 }
0x10f0   : > { %v5524_v0 = vpop.permute.xlu0 %5523 }
0x10f1   : > { %v5525_v42 = vunpack.i.l.bf16 %v5524_v0  ;;  %v5526_v50 = vunpack.i.h.bf16 %v5524_v0  ;;  %v3281_v0 = vsel %vm750_vm10, %v5520_v30, %v5521_v63 }
0x10f3   : > { %v8213_v10 = vsel %vm662_vm3, %v5496_v3, %v5525_v42 }
0x10f5   : > { %v8215_v9 = vpop.permute.xlu1 %5528 }
0x10f6   : > { %v5530_v55 = vunpack.i.l.bf16 %v8215_v9 }
0x10f8   : > { %v8218_v49 = vpop.permute.xlu0 %5533  ;;  %v8223_v11 = vsel %vm662_vm3, %v5526_v50, %v5530_v55  ;;  %v5511_v50 = vunpack.i.h.bf16 %v8231_v7 }
0x10fd   : > { %v8227_v4 = vpop.permute.xlu1 %5538 }
0x1100   : > { %v8229_v8 = vpop.permute.xlu0 %5543 }
0x1105   : > { %v8233_v43 = vpop.permute.xlu1 %5548 }
0x1108   : > { %v8235_v60 = vpop.permute.xlu0 %5553 }
0x1109   : > { %v5556_v30 = vunpack.i.h.bf16 %v8235_v60 }
0x110d   : > { %v5559_v51 = vpop.permute.xlu1 %5558 }
0x1110   : > { %v5564_v34 = vpop.permute.xlu0 %5563 }
0x1111   : > { %v5566_v35 = vunpack.i.h.bf16 %v5564_v34  ;;  %v5565_v41 = vunpack.i.l.bf16 %v5564_v34  ;;  %v5585_v34 = vunpack.i.l.bf16 %v5584_v57 }
0x1115   : > { %v5574_v61 = vpop.permute.xlu1 %5573 }
0x1116   : > { %v5576_v29 = vunpack.i.h.bf16 %v5574_v61  ;;  %v5575_v12 = vunpack.i.l.bf16 %v5574_v61  ;;  %v5560_v61 = vunpack.i.l.bf16 %v5559_v51 }
0x1118   : > { %v5569_v52 = vpop.permute.xlu0 %5568 }
0x1119   : > { %v5571_v25 = vunpack.i.h.bf16 %v5569_v52  ;;  %v5570_v53 = vunpack.i.l.bf16 %v5569_v52  ;;  %v3263_v52 = vsel %vm736_vm8, %v5566_v35, %v5575_v12 }
0x111b   : > { %v3282_v42 = vsel %vm750_vm10, %v5521_v63, %v5570_v53 }
0x111d   : > { %v5579_v2 = vpop.permute.xlu1 %5578 }
0x111e   : > { %v5581_v6 = vunpack.i.h.bf16 %v5579_v2  ;;  %v5580_v46 = vunpack.i.l.bf16 %v5579_v2  ;;  %v3264_v2 = vsel %vm736_vm8, %v5575_v12, %v5576_v29 }
0x1120   : > { %v3283_v56 = vsel %vm750_vm10, %v5571_v25, %v5580_v46  ;;  %v3284_v59 = vsel %vm750_vm10, %v5580_v46, %v5581_v6  ;;  %v5589_v31 = vpop.permute.xlu0 %5588  ;;  %v3261_v25 = vsel %vm736_vm8, %v5515_v1, %v5516_v13  ;;  %v5586_v6 = vunpack.i.h.bf16 %v5584_v57 }
0x1121   : > { %3339 = vmatpush.msra.mxu0 %v3283_v56  ;;  %3421 = vmatpush.msra.mxu2 %v3284_v59  ;;  %v5561_v46 = vunpack.i.h.bf16 %v5559_v51  ;;  %v5591_v53 = vunpack.i.h.bf16 %v5589_v31  ;;  %v3262_v59 = vsel %vm736_vm8, %v5516_v13, %v5565_v41  ;;  %v5590_v35 = vunpack.i.l.bf16 %v5589_v31 }
0x1122   : > { %v3237_v1 = vsel %vm719_vm9, %v5556_v30, %v5560_v61  ;;  %v3235_v57 = vsel %vm719_vm9, %v5510_v24, %v5511_v50  ;;  %v3307_v13 = vsel %vm764_vm6, %v5585_v34, %v5586_v6  ;;  %v5550_v31 = vunpack.i.l.bf16 %v8233_v43 }
0x1123   : > { %3340 = vmatpush.msra.mxu0 %v3281_v0  ;;  %3422 = vmatpush.msra.mxu2 %v3282_v42  ;;  %v5555_v0 = vunpack.i.l.bf16 %v8235_v60  ;;  %v3238_v51 = vsel %vm719_vm9, %v5560_v61, %v5561_v46  ;;  %v3068_v60 = vld [vmem:[#allocation15 + $0x8] sm:$0xff]  ;;  %v3308_v42 = vsel %vm764_vm6, %v5586_v6, %v5590_v35  ;;  %v5506_v24 = vunpack.i.h.bf16 %v8225_v62 }
0x1124   : > { %v5505_v61 = vunpack.i.l.bf16 %v8225_v62  ;;  %v5501_v6 = vunpack.i.h.bf16 %v8207_v47  ;;  %v5536_v34 = vunpack.i.h.bf16 %v8218_v49  ;;  %v5535_v30 = vunpack.i.l.bf16 %v8218_v49 }
0x1125   : > { %v5594_v63 = vpop.permute.xlu1 %5593  ;;  %3341 = vmatpush.msra.mxu0 %v3263_v52  ;;  %3423 = vmatpush.msra.mxu2 %v3264_v2  ;;  %v3236_v41 = vsel %vm719_vm9, %v5511_v50, %v5555_v0  ;;  %v5551_v52 = vunpack.i.h.bf16 %v8233_v43  ;;  %v5546_v2 = vunpack.i.h.bf16 %v8229_v8  ;;  %v5545_v50 = vunpack.i.l.bf16 %v8229_v8  ;;  %v3070_v8 = vld [vmem:[#allocation15 + $0x18] sm:$0xff] }
0x1126   : > { %v5596_v7 = vunpack.i.h.bf16 %v5594_v63  ;;  %v5595_v56 = vunpack.i.l.bf16 %v5594_v63  ;;  %v5540_v43 = vunpack.i.l.bf16 %v8227_v4  ;;  %v5531_v46 = vunpack.i.h.bf16 %v8215_v9 }
0x1127   : > { %3342 = vmatpush.msra.mxu0 %v3261_v25  ;;  %3424 = vmatpush.msra.mxu2 %v3262_v59  ;;  %v5541_v25 = vunpack.i.h.bf16 %v8227_v4  ;;  %v3212_v62 = vsel %vm696_vm14, %v5550_v31, %v5551_v52  ;;  %v3184_v49 = vsel %vm679_vm13, %v5501_v6, %v5535_v30  ;;  %v3072_v59 = vld [vmem:[#allocation15 + $0x28] sm:$0xff]  ;;  %v3109_v0 = vmul.f32 %v8153_v38, %v6702_v14  ;;  %v3074_v38 = vld [vmem:[#allocation15 + $0x38] sm:$0xff] }
0x1128   : > { %v3309_v29 = vsel %vm764_vm6, %v5591_v53, %v5595_v56  ;;  %v3310_v12 = vsel %vm764_vm6, %v5595_v56, %v5596_v7  ;;  %v3185_v4 = vsel %vm679_vm13, %v5536_v34, %v5540_v43  ;;  %v3160_v7 = vsel %vm662_vm3, %v5530_v55, %v5531_v46  ;;  %v3067_v55 = vld [vmem:[#allocation15] sm:$0xff] }
0x1129   : > { %3343 = vmatpush.msra.mxu0 %v3237_v1  ;;  %3394 = vmatpush.msrb.mxu1 %v3309_v29  ;;  %v3186_v63 = vsel %vm679_vm13, %v5540_v43, %v5541_v25  ;;  %v3110_v35 = vmul.f32 %v8158_v32, %v6705_v21  ;;  %v3107_v9 = vmul.f32 %v8092_v5, %v6702_v14  ;;  %v3076_v5 = vld [vmem:[#allocation15 + $0x48] sm:$0xff]  ;;  %v3071_v32 = vld [vmem:[#allocation15 + $0x20] sm:$0xff]  ;;  %v3082_v29 = vld [vmem:[#allocation15 + $0x78] sm:$0xff] }
0x112a   : > { %3425 = vmatpush.msra.mxu2 %v3238_v51  ;;  %3476 = vmatpush.msrb.mxu3 %v3310_v12  ;;  %v3075_v1 = vld [vmem:[#allocation15 + $0x40] sm:$0xff]  ;;  %v3077_v12 = vld [vmem:[#allocation15 + $0x50] sm:$0xff] }
0x112b   : > { %3344 = vmatpush.msra.mxu0 %v3235_v57  ;;  %3395 = vmatpush.msrb.mxu1 %v3307_v13  ;;  %v3079_v51 = vld [vmem:[#allocation15 + $0x60] sm:$0xff]  ;;  %v3081_v57 = vld [vmem:[#allocation15 + $0x70] sm:$0xff] }
0x112c   : > { %3426 = vmatpush.msra.mxu2 %v3236_v41  ;;  %3477 = vmatpush.msrb.mxu3 %v3308_v42 }
0x112d   : > { %3345 = vmatpush.msra.mxu0 %v8141_v26  ;;  %4900 = vmatmul.msk.f32.vlgmr.msrb.gmra.mxu1 %vm595_vm4, %v3068_v60  ;;  %v3211_v26 = vsel %vm696_vm14, %v5546_v2, %v5550_v31 }
0x112e   : > { %3427 = vmatpush.msra.mxu2 %v8147_v54  ;;  %4908 = vmatmul.msk.f32.vlgmr.msrb.gmra.mxu3 %vm595_vm4, %v3068_v60  ;;  %v5500_v54 = vunpack.i.l.bf16 %v8207_v47  ;;  %v5495_v47 = vunpack.i.l.bf16 %v8205_v58  ;;  %v3108_v58 = vmul.f32 %v8089_v37, %v6705_v21  ;;  %v3078_v37 = vld [vmem:[#allocation15 + $0x58] sm:$0xff] }
0x112f   : > { %3346 = vmatpush.msra.mxu0 %v8039_v27  ;;  %v3209_v27 = vsel %vm696_vm14, %v5505_v61, %v5506_v24 }
0x1130   : > { %3428 = vmatpush.msra.mxu2 %v8047_v40  ;;  %v3210_v40 = vsel %vm696_vm14, %v5506_v24, %v5545_v50  ;;  %v3183_v53 = vsel %vm679_vm13, %v5500_v54, %v5501_v6  ;;  %v3157_v56 = vsel %vm662_vm3, %v5495_v47, %v5496_v3  ;;  %v3069_v3 = vld [vmem:[#allocation15 + $0x10] sm:$0xff] }
0x1131   : > { %3347 = vmatpush.msra.mxu0 %v3211_v26 }
0x1132   : > { %3429 = vmatpush.msra.mxu2 %v3212_v62 }
0x1133   : > { %3348 = vmatpush.msra.mxu0 %v3209_v27 }
0x1134   : > { %3430 = vmatpush.msra.mxu2 %v3210_v40 }
0x1135   : > { %3349 = vmatpush.msra.mxu0 %v3185_v4  ;;  %4901 = vmatmul.msk.f32.gmra.mxu1 %vm595_vm4, %v3070_v8 }
0x1136   : > { %3431 = vmatpush.msra.mxu2 %v3186_v63  ;;  %4909 = vmatmul.msk.f32.gmra.mxu3 %vm595_vm4, %v3070_v8 }
0x1137   : > { %3350 = vmatpush.msra.mxu0 %v3183_v53 }
0x1138   : > { %3432 = vmatpush.msra.mxu2 %v3184_v49 }
0x1139   : > { %3351 = vmatpush.msra.mxu0 %v8223_v11  ;;  %v3080_v11 = vld [vmem:[#allocation15 + $0x68] sm:$0xff] }
0x113a   : > { %3433 = vmatpush.msra.mxu2 %v3160_v7 }
0x113b   : > { %3352 = vmatpush.msra.mxu0 %v3157_v56 }
0x113c   : > { %3434 = vmatpush.msra.mxu2 %v8213_v10  ;;  %v3073_v10 = vld [vmem:[#allocation15 + $0x30] sm:$0xff] }
0x113d   : > { %3353 = vmatpush.msra.mxu0 %v3109_v0  ;;  %4902 = vmatmul.msk.f32.gmra.mxu1 %vm595_vm4, %v3072_v59 }
0x113e   : > { %3435 = vmatpush.msra.mxu2 %v3110_v35  ;;  %4910 = vmatmul.msk.f32.gmra.mxu3 %vm595_vm4, %v3072_v59 }
0x113f   : > { %3354 = vmatpush.msra.mxu0 %v3107_v9 }
0x1140   : > { %3436 = vmatpush.msra.mxu2 %v3108_v58  ;;  %3355 = vmatmul.f32.vlgmr.msra.gmra.mxu0 %v3067_v55 }
0x1141   : > { %3437 = vmatmul.f32.vlgmr.msra.gmra.mxu2 %v3067_v55 }
0x1145   : > { %4903 = vmatmul.msk.f32.gmra.mxu1 %vm595_vm4, %v3074_v38 }
0x1146   : > { %4911 = vmatmul.msk.f32.gmra.mxu3 %vm595_vm4, %v3074_v38 }
0x1148   : > { %3358 = vmatmul.f32.gmra.mxu0 %v3069_v3 }
0x1149   : > { %3440 = vmatmul.f32.gmra.mxu2 %v3069_v3 }
0x114d   : > { %4904 = vmatmul.msk.f32.gmra.mxu1 %vm595_vm4, %v3076_v5 }
0x114e   : > { %4912 = vmatmul.msk.f32.gmra.mxu3 %vm595_vm4, %v3076_v5 }
0x1150   : > { %3361 = vmatmul.f32.gmra.mxu0 %v3071_v32 }
0x1151   : > { %3443 = vmatmul.f32.gmra.mxu2 %v3071_v32 }
0x1155   : > { %4905 = vmatmul.msk.f32.gmra.mxu1 %vm595_vm4, %v3078_v37 }
0x1156   : > { %4913 = vmatmul.msk.f32.gmra.mxu3 %vm595_vm4, %v3078_v37 }
0x1158   : > { %3364 = vmatmul.f32.gmra.mxu0 %v3073_v10 }
0x1159   : > { %3446 = vmatmul.f32.gmra.mxu2 %v3073_v10 }
0x115d   : > { %4906 = vmatmul.msk.f32.gmra.mxu1 %vm595_vm4, %v3080_v11 }
0x115e   : > { %4914 = vmatmul.msk.f32.gmra.mxu3 %vm595_vm4, %v3080_v11 }
0x1160   : > { %3367 = vmatmul.f32.gmra.mxu0 %v3075_v1 }
0x1161   : > { %3449 = vmatmul.f32.gmra.mxu2 %v3075_v1 }
0x1165   : > { %4907 = vmatmul.msk.f32.gmra.mxu1 %vm595_vm4, %v3082_v29 }
0x1166   : > { %4915 = vmatmul.msk.f32.gmra.mxu3 %vm595_vm4, %v3082_v29 }
0x1168   : > { %3370 = vmatmul.f32.gmra.mxu0 %v3077_v12 }
0x1169   : > { %3452 = vmatmul.f32.gmra.mxu2 %v3077_v12 }
0x1170   : > { %3373 = vmatmul.f32.gmra.mxu0 %v3079_v51 }
0x1171   : > { %3455 = vmatmul.f32.gmra.mxu2 %v3079_v51 }
0x1178   : > { %3376 = vmatmul.f32.gmra.mxu0 %v3081_v57 }
0x1179   : > { %3458 = vmatmul.f32.gmra.mxu2 %v3081_v57 }
0x11aa   : > { %v3397_v13 = vpop.f32.mrf.mxu1 }
0x11b1   : > { %v3479_v60 = vpop.f32.mrf.mxu3 }
0x11b2   : > { %v3400_v41 = vpop.f32.mrf.mxu1 }
0x11b9   : > { %v3482_v52 = vpop.f32.mrf.mxu3 }
0x11ba   : > { %v3403_v24 = vpop.f32.mrf.mxu1 }
0x11bd   : > { %v3356_v42 = vpop.f32.mrf.mxu0 }
0x11be   : > { %v8315_v31 = vadd.f32 %v3397_v13, %v3356_v42 }
0x11c0   : > { %9878 = vst [vmem:[#allocation26_spill] sm:$0xff] %v8315_v31  ;;  %3529 = vrot.lane.b32.xlu2 %v8315_v31, %s6370_s19 }
0x11c1   : > { %v3485_v26 = vpop.f32.mrf.mxu3 }
0x11c2   : > { %v3406_v25 = vpop.f32.mrf.mxu1 }
0x11c4   : > { %v3438_v61 = vpop.f32.mrf.mxu2 }
0x11c5   : > { %v8319_v2 = vadd.f32 %v3479_v60, %v3438_v61  ;;  %v3359_v50 = vpop.f32.mrf.mxu0 }
0x11c6   : > { %v8321_v43 = vadd.f32 %v3400_v41, %v3359_v50 }
0x11c7   : > { %9879 = vst [vmem:[#allocation27_spill] sm:$0xff] %v8319_v2  ;;  %3531 = vrot.lane.b32.xlu0 %v8319_v2, %s6370_s19 }
0x11c8   : > { %9880 = vst [vmem:[#allocation28_spill] sm:$0xff] %v8321_v43  ;;  %3533 = vrot.lane.b32.xlu1 %v8321_v43, %s6370_s19 }
0x11c9   : > { %v3488_v27 = vpop.f32.mrf.mxu3 }
0x11ca   : > { %v3409_v4 = vpop.f32.mrf.mxu1 }
0x11cc   : > { %v3441_v62 = vpop.f32.mrf.mxu2 }
0x11cd   : > { %v8327_v6 = vadd.f32 %v3482_v52, %v3441_v62  ;;  %v3362_v54 = vpop.f32.mrf.mxu0 }
0x11ce   : > { %v8329_v34 = vadd.f32 %v3403_v24, %v3362_v54 }
0x11cf   : > { %9881 = vst [vmem:[#allocation29_spill] sm:$0xff] %v8327_v6  ;;  %3535 = vrot.lane.b32.xlu2 %v8327_v6, %s6370_s19 }
0x11d0   : > { %9882 = vst [vmem:[#allocation30_spill] sm:$0xff] %v8329_v34  ;;  %3537 = vrot.lane.b32.xlu0 %v8329_v34, %s6370_s19 }
0x11d1   : > { %v3491_v47 = vpop.f32.mrf.mxu3 }
0x11d2   : > { %v3412_v56 = vpop.f32.mrf.mxu1 }
0x11d4   : > { %v3444_v8 = vpop.f32.mrf.mxu2 }
0x11d5   : > { %v8335_v30 = vadd.f32 %v3485_v26, %v3444_v8  ;;  %v3365_v40 = vpop.f32.mrf.mxu0 }
0x11d6   : > { %v8337_v46 = vadd.f32 %v3406_v25, %v3365_v40 }
0x11d7   : > { %9883 = vst [vmem:[#allocation31_spill] sm:$0xff] %v8335_v30  ;;  %3539 = vrot.lane.b32.xlu1 %v8335_v30, %s6370_s19 }
0x11d8   : > { %9884 = vst [vmem:[#allocation32_spill] sm:$0xff] %v8337_v46  ;;  %3541 = vrot.lane.b32.xlu2 %v8337_v46, %s6370_s19 }
0x11d9   : > { %v3494_v55 = vpop.f32.mrf.mxu3 }
0x11da   : > { %v3415_v58 = vpop.f32.mrf.mxu1 }
0x11dc   : > { %v3447_v63 = vpop.f32.mrf.mxu2 }
0x11dd   : > { %v8343_v53 = vadd.f32 %v3488_v27, %v3447_v63  ;;  %v3368_v49 = vpop.f32.mrf.mxu0 }
0x11de   : > { %v8345_v7 = vadd.f32 %v3409_v4, %v3368_v49 }
0x11df   : > { %9885 = vst [vmem:[#allocation33_spill] sm:$0xff] %v8343_v53  ;;  %3543 = vrot.lane.b32.xlu0 %v8343_v53, %s6370_s19 }
0x11e0   : > { %9886 = vst [vmem:[#allocation34_spill] sm:$0xff] %v8345_v7  ;;  %3545 = vrot.lane.b32.xlu1 %v8345_v7, %s6370_s19 }
0x11e1   : > { %v3497_v37 = vpop.f32.mrf.mxu3 }
0x11e2   : > { %v3418_v10 = vpop.f32.mrf.mxu1 }
0x11e4   : > { %v3450_v59 = vpop.f32.mrf.mxu2 }
0x11e5   : > { %v8351_v0 = vadd.f32 %v3491_v47, %v3450_v59  ;;  %v3371_v35 = vpop.f32.mrf.mxu0 }
0x11e6   : > { %v8353_v9 = vadd.f32 %v3412_v56, %v3371_v35 }
0x11e7   : > { %9887 = vst [vmem:[#allocation35_spill] sm:$0xff] %v8351_v0  ;;  %3547 = vrot.lane.b32.xlu2 %v8351_v0, %s6370_s19 }
0x11e8   : > { %9888 = vst [vmem:[#allocation36_spill] sm:$0xff] %v8353_v9  ;;  %3549 = vrot.lane.b32.xlu0 %v8353_v9, %s6370_s19 }
0x11e9   : > { %v3500_v51 = vpop.f32.mrf.mxu3 }
0x11ec   : > { %v3453_v38 = vpop.f32.mrf.mxu2 }
0x11ed   : > { %v8359_v3 = vadd.f32 %v3494_v55, %v3453_v38  ;;  %v3374_v5 = vpop.f32.mrf.mxu0 }
0x11ee   : > { %v8361_v32 = vadd.f32 %v3415_v58, %v3374_v5 }
0x11ef   : > { %9889 = vst [vmem:[#allocation37_spill] sm:$0xff] %v8359_v3  ;;  %3551 = vrot.lane.b32.xlu1 %v8359_v3, %s6370_s19 }
0x11f0   : > { %9890 = vst [vmem:[#allocation38_spill] sm:$0xff] %v8361_v32  ;;  %3553 = vrot.lane.b32.xlu2 %v8361_v32, %s6370_s19 }
0x11f4   : > { %v3456_v11 = vpop.f32.mrf.mxu2 }
0x11f5   : > { %v8367_v1 = vadd.f32 %v3497_v37, %v3456_v11  ;;  %v3377_v29 = vpop.f32.mrf.mxu0 }
0x11f6   : > { %v8369_v12 = vadd.f32 %v3418_v10, %v3377_v29 }
0x11f7   : > { %9891 = vst [vmem:[#allocation39_spill] sm:$0xff] %v8367_v1  ;;  %3555 = vrot.lane.b32.xlu0 %v8367_v1, %s6370_s19 }
0x11f8   : > { %9892 = vst [vmem:[#allocation40_spill] sm:$0xff] %v8369_v12  ;;  %3557 = vrot.lane.b32.xlu1 %v8369_v12, %s6370_s19 }
0x11fc   : > { %v3459_v57 = vpop.f32.mrf.mxu2 }
0x11fd   : > { %v8375_v13 = vadd.f32 %v3500_v51, %v3459_v57 }
0x11ff   : > { %9893 = vst [vmem:[#allocation41_spill] sm:$0xff] %v8375_v13  ;;  %3559 = vrot.lane.b32.xlu2 %v8375_v13, %s6370_s19 }
0x121a   : > { %v3530_v60 = vpop.permute.xlu2 %3529 }
0x121b   : > { %v8380_v52 = vsel %vm560_vm0, 0.0, %v3530_v60 }
0x121c   : > { %9894 = vst [vmem:[#allocation42_spill] sm:$0xff] %v8380_v52  ;;  %v8424_v35 = vmul.f32 %v8380_v52, %v6576_v15  ;;  %v8428_v55 = vmul.f32 %v8380_v52, %v6612_v33 }
0x121e   : > { %9898 = vst [vmem:[#allocation46_spill] sm:$0xff] %v8428_v55 }
0x1229   : > { %v3536_v41 = vpop.permute.xlu2 %3535 }
0x122a   : > { %v8383_v24 = vsel %vm560_vm0, %v3536_v41, 0.0 }
0x122b   : > { %v8439_v5 = vmul.f32 %v8383_v24, %v6578_v16  ;;  %v8443_v37 = vmul.f32 %v8383_v24, %v6588_v22 }
0x122d   : > { %9899 = vst [vmem:[#allocation47_spill] sm:$0xff] %v8439_v5 }
0x122e   : > { %9900 = vst [vmem:[#allocation48_spill] sm:$0xff] %v8443_v37 }
0x1232   : > { %v3542_v2 = vpop.permute.xlu2 %3541 }
0x1239   : > { %v3532_v42 = vpop.permute.xlu0 %3531 }
0x123a   : > { %v8386_v61 = vsel %vm560_vm0, %v3530_v60, %v3532_v42  ;;  %v3534_v50 = vpop.permute.xlu1 %3533  ;;  %v8389_v26 = vsel %vm560_vm0, %v3532_v42, 0.0 }
0x123b   : > { %9895 = vst [vmem:[#allocation43_spill] sm:$0xff] %v8386_v61  ;;  %v8392_v25 = vsel %vm560_vm0, %v3534_v50, %v3536_v41  ;;  %v8395_v62 = vsel %vm560_vm0, 0.0, %v3534_v50  ;;  %v5597_v54 = vpack.i.bf16 %v8386_v61, %v8380_v52  ;;  %v3627_v47 = vmul.f32 %v8389_v26, %v6590_v23 }
0x123c   : > { %9896 = vst [vmem:[#allocation44_spill] sm:$0xff] %v8392_v25  ;;  %v5607_v27 = vpack.i.bf16 %v8395_v62, %v8389_v26  ;;  %v5642_v8 = vpack.i.bf16 %v8383_v24, %v8392_v25  ;;  %v3628_v40 = vmul.f32 %v8395_v62, %v6582_v18  ;;  %v8410_v4 = vmul.f32 %v8395_v62, %v6576_v15 }
0x123d   : > { %9897 = vst [vmem:[#allocation45_spill] sm:$0xff] %v8395_v62  ;;  %5598 = vrot.lane.b32.xlu0 %v5597_v54, %s6379_s2  ;;  %v8414_v63 = vmul.f32 %v8392_v25, %v6646_v48  ;;  %v5647_v59 = vpack.i.bf16 %v8392_v25, %v8395_v62  ;;  %v8435_v38 = vmul.f32 %v8386_v61, %v6646_v48 }
0x123e   : > { %5608 = vrot.lane.b32.xlu1 %v5607_v27, %s6379_s2  ;;  %5643 = vrot.lane.b32.xlu2 %v5642_v8, %s6379_s2  ;;  %v5627_v56 = vpack.i.bf16 %v3628_v40, %v3627_v47  ;;  %v8449_v10 = vmul.f32 %v8395_v62, %v6612_v33  ;;  %v8453_v11 = vmul.f32 %v8392_v25, %v6618_v36 }
0x123f   : > { %v8457_v29 = vmul.f32 %v8386_v61, %v6618_v36  ;;  %v3626_v51 = vmul.f32 %v8386_v61, %v6635_v44  ;;  %v3652_v57 = vmul.f32 %v8395_v62, %v6584_v19  ;;  %v8467_v41 = vmul.f32 %v8389_v26, %v6578_v16 }
0x1240   : > { %v3629_v42 = vmul.f32 %v8392_v25, %v6635_v44  ;;  %v8477_v27 = vmul.f32 %v8389_v26, %v6588_v22  ;;  %v3625_v8 = vmul.f32 %v8380_v52, %v6582_v18  ;;  %v3630_v50 = vmul.f32 %v8383_v24, %v6590_v23 }
0x1241   : > { %9901 = vst [vmem:[#allocation49_spill] sm:$0xff] %v8467_v41  ;;  %v3650_v30 = vmul.f32 %v8386_v61, %v6640_v45  ;;  %v3548_v31 = vpop.permute.xlu2 %3547 }
0x1242   : > { %9902 = vst [vmem:[#allocation50_spill] sm:$0xff] %v8477_v27  ;;  %v3538_v47 = vpop.permute.xlu0 %3537  ;;  %v5612_v60 = vpack.i.bf16 %v3626_v51, %v3625_v8  ;;  %v5652_v58 = vpack.i.bf16 %v3630_v50, %v3629_v42  ;;  %v3676_v51 = vmul.f32 %v8395_v62, %v6580_v17  ;;  %v3649_v50 = vmul.f32 %v8380_v52, %v6584_v19 }
0x1243   : > { %v8490_v6 = vsel %vm560_vm0, 0.0, %v3538_v47  ;;  %v8619_v7 = vsel %vm560_vm0, %v3548_v31, 0.0 }
0x1244   : > { %9903 = vst [vmem:[#allocation51_spill] sm:$0xff] %v8490_v6  ;;  %v8506_v42 = vmul.f32 %v8490_v6, %v6576_v15  ;;  %v5617_v3 = vpack.i.bf16 %v3650_v30, %v3649_v50  ;;  %v8543_v30 = vsel %vm560_vm0, 0.0, %v3542_v2  ;;  %v3677_v50 = vmul.f32 %v8392_v25, %v6603_v28 }
0x1245   : > { %5603 = vrot.lane.b32.xlu0 %v5597_v54, %s6375_s13  ;;  %9908 = vst [vmem:[#allocation56_spill] sm:$0xff] %v8543_v30  ;;  %v3631_v62 = vmul.f32 %v8490_v6, %v6582_v18  ;;  %v3634_v5 = vmul.f32 %v8543_v30, %v6582_v18  ;;  %v3655_v27 = vmul.f32 %v8490_v6, %v6584_v19 }
0x1246   : > { %5628 = vrot.lane.b32.xlu1 %v5627_v56, %s6377_s12  ;;  %5648 = vrot.lane.b32.xlu2 %v5647_v59, %s6375_s13  ;;  %v3651_v59 = vmul.f32 %v8389_v26, %v6623_v39 }
0x1248   : > { %v5632_v49 = vpack.i.bf16 %v3652_v57, %v3651_v59  ;;  %v3653_v57 = vmul.f32 %v8392_v25, %v6640_v45  ;;  %v3654_v59 = vmul.f32 %v8383_v24, %v6623_v39 }
0x1249   : > { %v3540_v56 = vpop.permute.xlu1 %3539 }
0x124a   : > { %v8493_v40 = vsel %vm560_vm0, %v3538_v47, %v3540_v56  ;;  %v3675_v47 = vmul.f32 %v8389_v26, %v6586_v20  ;;  %v5657_v13 = vpack.i.bf16 %v3654_v59, %v3653_v57  ;;  %v8548_v57 = vsel %vm560_vm0, %v3540_v56, 0.0  ;;  %v8629_v21 = vpop.permute.xlu2 %3553 }
0x124b   : > { %9904 = vst [vmem:[#allocation52_spill] sm:$0xff] %v8493_v40  ;;  %v5677_v32 = vpack.i.bf16 %v8543_v30, %v8548_v57  ;;  %v3633_v37 = vmul.f32 %v8548_v57, %v6590_v23 }
0x124c   : > { %v5637_v1 = vpack.i.bf16 %v3676_v51, %v3675_v47  ;;  %v3674_v51 = vmul.f32 %v8386_v61, %v6603_v28  ;;  %v3678_v47 = vmul.f32 %v8383_v24, %v6586_v20  ;;  %v8583_v61 = vmul.f32 %v8543_v30, %v6576_v15 }
0x124d   : > { %5613 = vrot.lane.b32.xlu0 %v5612_v60, %s6377_s12  ;;  %v8510_v60 = vmul.f32 %v8493_v40, %v6646_v48 }
0x124e   : > { %5633 = vrot.lane.b32.xlu1 %v5632_v49, %s6378_s24  ;;  %5653 = vrot.lane.b32.xlu2 %v5652_v58, %s6377_s12  ;;  %v8514_v49 = vmul.f32 %v8490_v6, %v6612_v33  ;;  %v8518_v58 = vmul.f32 %v8493_v40, %v6618_v36  ;;  %v5662_v25 = vpack.i.bf16 %v3678_v47, %v3677_v50 }
0x1251   : > { %v3544_v0 = vpop.permute.xlu0 %3543 }
0x1252   : > { %v3546_v8 = vpop.permute.xlu1 %3545  ;;  %v8535_v34 = vsel %vm560_vm0, %v3542_v2, %v3544_v0  ;;  %v3673_v2 = vmul.f32 %v8380_v52, %v6580_v17 }
0x1253   : > { %v8531_v43 = vsel %vm560_vm0, 0.0, %v3546_v8  ;;  %9906 = vst [vmem:[#allocation54_spill] sm:$0xff] %v8535_v34  ;;  %v8538_v46 = vsel %vm560_vm0, %v3546_v8, %v3548_v31  ;;  %v8567_v56 = vmul.f32 %v8535_v34, %v6646_v48  ;;  %v5672_v8 = vpack.i.bf16 %v8493_v40, %v8490_v6 }
0x1254   : > { %9905 = vst [vmem:[#allocation53_spill] sm:$0xff] %v8531_v43  ;;  %v8577_v59 = vmul.f32 %v8535_v34, %v6618_v36  ;;  %v5622_v53 = vpack.i.bf16 %v3674_v51, %v3673_v2  ;;  %v8598_v2 = vmul.f32 %v8548_v57, %v6578_v16  ;;  %v8636_v31 = vmul.f32 %v8619_v7, %v6578_v16 }
0x1255   : > { %5618 = vrot.lane.b32.xlu0 %v5617_v3, %s6378_s24  ;;  %9907 = vst [vmem:[#allocation55_spill] sm:$0xff] %v8538_v46  ;;  %v8551_v3 = vsel %vm560_vm0, %v3544_v0, 0.0  ;;  %v8587_v0 = vmul.f32 %v8543_v30, %v6612_v33 }
0x1256   : > { %5638 = vrot.lane.b32.xlu1 %v5637_v1, %s6374_s20  ;;  %5658 = vrot.lane.b32.xlu2 %v5657_v13, %s6378_s24  ;;  %v8557_v1 = vmul.f32 %v8531_v43, %v6612_v33  ;;  %v8563_v13 = vmul.f32 %v8538_v46, %v6618_v36  ;;  %9909 = vst [vmem:[#allocation57_spill] sm:$0xff] %v8598_v2 }
0x1257   : > { %v8602_v54 = vmul.f32 %v8551_v3, %v6578_v16  ;;  %v8610_v50 = vmul.f32 %v8551_v3, %v6588_v22  ;;  %v5712_v12 = vpack.i.bf16 %v8551_v3, %v8535_v34  ;;  %9913 = vst [vmem:[#allocation61_spill] sm:$0xff] %v8636_v31  ;;  %v5717_v31 = vpack.i.bf16 %v8535_v34, %v8543_v30 }
0x1259   : > { %9910 = vst [vmem:[#allocation58_spill] sm:$0xff] %v8602_v54  ;;  %v8668_v54 = vpop.permute.xlu2 %3559 }
0x125a   : > { %9912 = vst [vmem:[#allocation60_spill] sm:$0xff] %v8610_v50  ;;  %v8631_v52 = vpop.permute.xlu0 %3549  ;;  %v5697_v50 = vpack.i.bf16 %v3634_v5, %v3633_v37  ;;  %v8683_v5 = vsel %vm560_vm0, %v8668_v54, 0.0 }
0x125b   : > { %v8735_v55 = vsel %vm560_vm0, 0.0, %v8631_v52 }
0x125d   : > { %5623 = vrot.lane.b32.xlu0 %v5622_v53, %s6374_s20  ;;  %v8606_v53 = vmul.f32 %v8548_v57, %v6588_v22 }
0x125e   : > { %5673 = vrot.lane.b32.xlu1 %v5672_v8, %s6375_s13  ;;  %5663 = vrot.lane.b32.xlu2 %v5662_v25, %s6374_s20  ;;  %v3632_v25 = vmul.f32 %v8493_v40, %v6635_v44 }
0x125f   : > { %9911 = vst [vmem:[#allocation59_spill] sm:$0xff] %v8606_v53 }
0x1260   : > { %v5682_v41 = vpack.i.bf16 %v3632_v25, %v3631_v62  ;;  %v3657_v62 = vmul.f32 %v8548_v57, %v6623_v39  ;;  %v3658_v25 = vmul.f32 %v8543_v30, %v6584_v19 }
0x1261   : > { %v8612_v47 = vpop.permute.xlu1 %3551 }
0x1262   : > { %v8623_v9 = vsel %vm560_vm0, %v8612_v47, 0.0 }
0x1263   : > { %v8640_v51 = vmul.f32 %v8623_v9, %v6578_v16  ;;  %v8654_v14 = vmul.f32 %v8623_v9, %v6588_v22 }
0x1265   : > { %5668 = vrot.lane.b32.xlu0 %v5672_v8, %s6379_s2  ;;  %9914 = vst [vmem:[#allocation62_spill] sm:$0xff] %v8640_v51  ;;  %v8650_v8 = vmul.f32 %v8619_v7, %v6588_v22  ;;  %v3656_v51 = vmul.f32 %v8493_v40, %v6640_v45 }
0x1266   : > { %5678 = vrot.lane.b32.xlu1 %v5677_v32, %s6379_s2  ;;  %5713 = vrot.lane.b32.xlu2 %v5712_v12, %s6379_s2  ;;  %9916 = vst [vmem:[#allocation64_spill] sm:$0xff] %v8654_v14  ;;  %v3635_v32 = vmul.f32 %v8535_v34, %v6635_v44  ;;  %v3636_v12 = vmul.f32 %v8551_v3, %v6590_v23 }
0x1267   : > { %9915 = vst [vmem:[#allocation63_spill] sm:$0xff] %v8650_v8  ;;  %v8709_v8 = vmul.f32 %v8683_v5, %v6588_v22 }
0x1268   : > { %v5722_v53 = vpack.i.bf16 %v3636_v12, %v3635_v32  ;;  %v8701_v12 = vmul.f32 %v8683_v5, %v6578_v16 }
0x1269   : > { %v8670_v2 = vpop.permute.xlu0 %3555  ;;  %9918 = vst [vmem:[#allocation66_spill] sm:$0xff] %v8709_v8 }
0x126a   : > { %v8687_v37 = vsel %vm560_vm0, %v8670_v2, 0.0 }
0x126b   : > { %v8697_v32 = vmul.f32 %v8687_v37, %v6578_v16  ;;  %v8705_v14 = vmul.f32 %v8687_v37, %v6588_v22  ;;  %v3680_v16 = vmul.f32 %v8493_v40, %v6603_v28  ;;  %v3681_v22 = vmul.f32 %v8548_v57, %v6586_v20 }
0x126c   : > { %v5747_v40 = vpack.i.bf16 %v8735_v55, %v8619_v7 }
0x126d   : > { %5683 = vrot.lane.b32.xlu0 %v5682_v41, %s6377_s12  ;;  %v3659_v41 = vmul.f32 %v8535_v34, %v6640_v45  ;;  %9917 = vst [vmem:[#allocation65_spill] sm:$0xff] %v8705_v14 }
0x126e   : > { %5698 = vrot.lane.b32.xlu1 %v5697_v50, %s6377_s12  ;;  %5723 = vrot.lane.b32.xlu2 %v5722_v53, %s6377_s12  ;;  %v3660_v53 = vmul.f32 %v8551_v3, %v6623_v39  ;;  %v5687_v50 = vpack.i.bf16 %v3656_v51, %v3655_v27  ;;  %v5702_v27 = vpack.i.bf16 %v3658_v25, %v3657_v62 }
0x126f   : > { %v3683_v62 = vmul.f32 %v8535_v34, %v6603_v28  ;;  %v3688_v34 = vmul.f32 %v8735_v55, %v6580_v17 }
0x1270   : > { %v5727_v51 = vpack.i.bf16 %v3660_v53, %v3659_v41  ;;  %v3684_v41 = vmul.f32 %v8551_v3, %v6586_v20  ;;  %v3679_v53 = vmul.f32 %v8490_v6, %v6580_v17 }
0x1272   : > { %v5692_v25 = vpack.i.bf16 %v3680_v16, %v3679_v53  ;;  %v5742_v16 = vpack.i.bf16 %v8538_v46, %v8531_v43 }
0x1275   : > { %5688 = vrot.lane.b32.xlu0 %v5687_v50, %s6378_s24  ;;  %v3682_v50 = vmul.f32 %v8543_v30, %v6580_v17 }
0x1276   : > { %5703 = vrot.lane.b32.xlu1 %v5702_v27, %s6378_s24  ;;  %5728 = vrot.lane.b32.xlu2 %v5727_v51, %s6378_s24  ;;  %v5732_v51 = vpack.i.bf16 %v3684_v41, %v3683_v62  ;;  %v3639_v62 = vmul.f32 %v8619_v7, %v6590_v23  ;;  %v8753_v41 = vsel %vm560_vm0, %v8631_v52, %v8612_v47 }
0x1277   : > { %v5707_v27 = vpack.i.bf16 %v3682_v50, %v3681_v22  ;;  %v3640_v22 = vmul.f32 %v8735_v55, %v6582_v18  ;;  %9919 = vst [vmem:[#allocation67_spill] sm:$0xff] %v8753_v41  ;;  %v5787_v50 = vpack.i.bf16 %v8623_v9, %v8753_v41  ;;  %v3664_v52 = vmul.f32 %v8735_v55, %v6584_v19 }
0x1278   : > { %v3641_v47 = vmul.f32 %v8753_v41, %v6635_v44  ;;  %v3689_v6 = vmul.f32 %v8753_v41, %v6603_v28 }
0x1279   : > { %v5772_v53 = vpack.i.bf16 %v3640_v22, %v3639_v62  ;;  %v3661_v62 = vmul.f32 %v8531_v43, %v6584_v19 }
0x127d   : > { %5693 = vrot.lane.b32.xlu0 %v5692_v25, %s6374_s20  ;;  %v3642_v25 = vmul.f32 %v8623_v9, %v6590_v23 }
0x127e   : > { %5708 = vrot.lane.b32.xlu1 %v5707_v27, %s6374_s20  ;;  %5733 = vrot.lane.b32.xlu2 %v5732_v51, %s6374_s20  ;;  %v3663_v27 = vmul.f32 %v8619_v7, %v6623_v39 }
0x127f   : > { %v5802_v22 = vpack.i.bf16 %v3642_v25, %v3641_v47 }
0x1285   : > { %5718 = vrot.lane.b32.xlu0 %v5717_v31, %s6375_s13  ;;  %v3638_v31 = vmul.f32 %v8538_v46, %v6635_v44 }
0x1286   : > { %5748 = vrot.lane.b32.xlu1 %v5747_v40, %s6379_s2  ;;  %5743 = vrot.lane.b32.xlu2 %v5742_v16, %s6375_s13  ;;  %v3637_v40 = vmul.f32 %v8531_v43, %v6582_v18 }
0x1288   : > { %v5752_v51 = vpack.i.bf16 %v3638_v31, %v3637_v40  ;;  %v3665_v40 = vmul.f32 %v8753_v41, %v6640_v45  ;;  %v3666_v31 = vmul.f32 %v8623_v9, %v6623_v39 }
0x128d   : > { %5738 = vrot.lane.b32.xlu0 %v5742_v16, %s6379_s2  ;;  %v5777_v16 = vpack.i.bf16 %v3664_v52, %v3663_v27  ;;  %v3687_v52 = vmul.f32 %v8619_v7, %v6586_v20  ;;  %v5807_v27 = vpack.i.bf16 %v3666_v31, %v3665_v40  ;;  %v3709_v31 = vmul.f32 %v8531_v43, %v6576_v15 }
0x128e   : > { %5773 = vrot.lane.b32.xlu1 %v5772_v53, %s6377_s12  ;;  %5788 = vrot.lane.b32.xlu2 %v5787_v50, %s6379_s2  ;;  %v3662_v53 = vmul.f32 %v8538_v46, %v6640_v45 }
0x128f   : > { %v5782_v25 = vpack.i.bf16 %v3688_v34, %v3687_v52  ;;  %v3690_v34 = vmul.f32 %v8623_v9, %v6586_v20  ;;  %v3710_v52 = vmul.f32 %v8538_v46, %v6646_v48 }
0x1290   : > { %v5757_v47 = vpack.i.bf16 %v3662_v53, %v3661_v62  ;;  %v5792_v53 = vpack.i.bf16 %v8753_v41, %v8735_v55 }
0x1291   : > { %v5812_v40 = vpack.i.bf16 %v3690_v34, %v3689_v6  ;;  %v8820_v6 = vsel %vm560_vm0, %v8629_v21, %v8670_v2 }
0x1295   : > { %5753 = vrot.lane.b32.xlu0 %v5752_v51, %s6377_s12  ;;  %v3685_v51 = vmul.f32 %v8531_v43, %v6580_v17 }
0x1296   : > { %5778 = vrot.lane.b32.xlu1 %v5777_v16, %s6378_s24  ;;  %5803 = vrot.lane.b32.xlu2 %v5802_v22, %s6377_s12  ;;  %v3686_v16 = vmul.f32 %v8538_v46, %v6603_v28  ;;  %v3736_v46 = vmul.f32 %v8735_v55, %v6612_v33 }
0x1298   : > { %v8779_v50 = vpop.permute.xlu2 %5643  ;;  %v5762_v62 = vpack.i.bf16 %v3686_v16, %v3685_v51  ;;  %v5767_v51 = vpack.i.bf16 %v3710_v52, %v3709_v31  ;;  %v5797_v16 = vpack.i.bf16 %v8619_v7, %v8623_v9  ;;  %v3712_v7 = vmul.f32 %v8735_v55, %v6576_v15 }
0x1299   : > { %9920 = vst [vmem:[#allocation68_spill] sm:$0xff] %v8779_v50  ;;  %v3737_v9 = vmul.f32 %v8753_v41, %v6618_v36  ;;  %v9812_v31 = vunpack.i.l.bf16 %v8779_v50 }
0x129b   : > { %v5822_v8 = vpack.i.bf16 %v3737_v9, %v3736_v46 }
0x129d   : > { %5758 = vrot.lane.b32.xlu0 %v5757_v47, %s6378_s24  ;;  %v3558_v47 = vpop.permute.xlu1 %3557 }
0x129e   : > { %5783 = vrot.lane.b32.xlu1 %v5782_v25, %s6374_s20  ;;  %5808 = vrot.lane.b32.xlu2 %v5807_v27, %s6378_s24  ;;  %v8815_v27 = vsel %vm560_vm0, 0.0, %v8629_v21  ;;  %v8870_v46 = vsel %vm560_vm0, 0.0, %v3558_v47 }
0x129f   : > { %v5832_v34 = vpack.i.bf16 %v8820_v6, %v8815_v27 }
0x12a0   : > { %v8796_v22 = vpop.permute.xlu2 %5648 }
0x12a1   : > { %9921 = vst [vmem:[#allocation69_spill] sm:$0xff] %v8796_v22  ;;  %v3739_v22 = vmul.f32 %v8815_v27, %v6612_v33 }
0x12a5   : > { %5763 = vrot.lane.b32.xlu0 %v5762_v62, %s6374_s20 }
0x12a6   : > { %5793 = vrot.lane.b32.xlu1 %v5792_v53, %s6375_s13  ;;  %5813 = vrot.lane.b32.xlu2 %v5812_v40, %s6374_s20  ;;  %v3713_v53 = vmul.f32 %v8753_v41, %v6646_v48  ;;  %v3740_v40 = vmul.f32 %v8820_v6, %v6618_v36 }
0x12a8   : > { %v8811_v25 = vpop.permute.xlu2 %5653  ;;  %v5817_v30 = vpack.i.bf16 %v3713_v53, %v3712_v7  ;;  %v5857_v14 = vpack.i.bf16 %v3740_v40, %v3739_v22  ;;  %v3644_v22 = vmul.f32 %v8820_v6, %v6635_v44 }
0x12a9   : > { %9922 = vst [vmem:[#allocation70_spill] sm:$0xff] %v8811_v25 }
0x12ad   : > { %5768 = vrot.lane.b32.xlu0 %v5767_v51, %s6376_s16 }
0x12ae   : > { %5798 = vrot.lane.b32.xlu1 %v5797_v16, %s6375_s13  ;;  %5833 = vrot.lane.b32.xlu2 %v5832_v34, %s6375_s13 }
0x12af   : > { %v8829_v62 = vpop.permute.xlu0 %5598 }
0x12b0   : > { %v5609_v21 = vpop.permute.xlu1 %5608  ;;  %v8833_v2 = vpop.permute.xlu2 %5658  ;;  %v9814_v52 = vunpack.i.h.bf16 %v8829_v62 }
0x12b1   : > { %9923 = vst [vmem:[#allocation71_spill] sm:$0xff] %v8833_v2  ;;  %v5611_v51 = vunpack.i.h.bf16 %v5609_v21  ;;  %v5610_v16 = vunpack.i.l.bf16 %v5609_v21 }
0x12b3   : > { %v8850_v41 = vsel %vm662_vm3, %v5611_v51, %v9812_v31  ;;  %v8855_v43 = vsel %vm662_vm3, %v9814_v52, %v5610_v16  ;;  %v9813_v51 = vunpack.i.l.bf16 %v8811_v25  ;;  %v8867_v16 = vsel %vm560_vm0, %v3558_v47, %v8668_v54 }
0x12b4   : > { %9924 = vst [vmem:[#allocation72_spill] sm:$0xff] %v8855_v43  ;;  %vm4441_vm0 = vcmask 523264  }
0x12b5   : > { %5818 = vrot.lane.b32.xlu0 %v5817_v30, %s6376_s16 }
0x12b6   : > { %5823 = vrot.lane.b32.xlu1 %v5822_v8, %s6373_s29  ;;  %5858 = vrot.lane.b32.xlu2 %v5857_v14, %s6373_s29  ;;  %v5837_v14 = vpack.i.bf16 %v8870_v46, %v8687_v37  ;;  %v5877_v8 = vpack.i.bf16 %v8683_v5, %v8867_v16 }
0x12b7   : > { %v8860_v21 = vpop.permute.xlu0 %5603 }
0x12b8   : > { %9925 = vst [vmem:[#allocation73_spill] sm:$0xff] %v8860_v21  ;;  %v5629_v53 = vpop.permute.xlu1 %5628  ;;  %v8862_v7 = vpop.permute.xlu2 %5663 }
0x12b9   : > { %9926 = vst [vmem:[#allocation74_spill] sm:$0xff] %v8862_v7  ;;  %v5631_v31 = vunpack.i.h.bf16 %v5629_v53  ;;  %v5630_v47 = vunpack.i.l.bf16 %v5629_v53 }
0x12bb   : > { %v8875_v30 = vsel %vm679_vm13, %v5631_v31, %v9813_v51  ;;  %v3646_v51 = vmul.f32 %v8870_v46, %v6582_v18 }
0x12bc   : > { %9927 = vst [vmem:[#allocation75_spill] sm:$0xff] %v8875_v30  ;;  %v5887_v30 = vpack.i.bf16 %v8687_v37, %v8683_v5 }
0x12bd   : > { %5828 = vrot.lane.b32.xlu0 %v5832_v34, %s6379_s2  ;;  %v9819_v34 = vunpack.i.l.bf16 %v8833_v2 }
0x12be   : > { %5838 = vrot.lane.b32.xlu1 %v5837_v14, %s6379_s2  ;;  %5878 = vrot.lane.b32.xlu2 %v5877_v8, %s6379_s2  ;;  %v3643_v14 = vmul.f32 %v8815_v27, %v6582_v18  ;;  %v3645_v8 = vmul.f32 %v8687_v37, %v6590_v23 }
0x12bf   : > { %v8884_v54 = vpop.permute.xlu0 %5613 }
0x12c0   : > { %9928 = vst [vmem:[#allocation76_spill] sm:$0xff] %v8884_v54  ;;  %v9820_v9 = vunpack.i.h.bf16 %v8884_v54  ;;  %v5634_v40 = vpop.permute.xlu1 %5633  ;;  %v8889_v31 = vpop.permute.xlu2 %5713  ;;  %v5842_v25 = vpack.i.bf16 %v3644_v22, %v3643_v14  ;;  %v5862_v50 = vpack.i.bf16 %v3646_v51, %v3645_v8  ;;  %v3668_v22 = vmul.f32 %v8820_v6, %v6640_v45 }
0x12c1   : > { %v5636_v52 = vunpack.i.h.bf16 %v5634_v40  ;;  %v3670_v51 = vmul.f32 %v8870_v46, %v6584_v19  ;;  %v3667_v8 = vmul.f32 %v8815_v27, %v6584_v19 }
0x12c2   : > { %v8901_v53 = vsel %vm679_vm13, %v9820_v9, %v5630_v47  ;;  %v5635_v47 = vunpack.i.l.bf16 %v5634_v40  ;;  %v3669_v40 = vmul.f32 %v8687_v37, %v6623_v39  ;;  %v3648_v9 = vmul.f32 %v8683_v5, %v6590_v23 }
0x12c3   : > { %9929 = vst [vmem:[#allocation77_spill] sm:$0xff] %v8901_v53  ;;  %v8906_v43 = vsel %vm696_vm14, %v5636_v52, %v9819_v34  ;;  %v5847_v2 = vpack.i.bf16 %v3668_v22, %v3667_v8  ;;  %v3716_v23 = vmul.f32 %v8820_v6, %v6646_v48 }
0x12c4   : > { %v5867_v54 = vpack.i.bf16 %v3670_v51, %v3669_v40  ;;  %v5882_v51 = vpack.i.bf16 %v8867_v16, %v8870_v46 }
0x12c5   : > { %5843 = vrot.lane.b32.xlu0 %v5842_v25, %s6377_s12  ;;  %v3647_v25 = vmul.f32 %v8867_v16, %v6635_v44 }
0x12c6   : > { %5863 = vrot.lane.b32.xlu1 %v5862_v50, %s6377_s12  ;;  %5888 = vrot.lane.b32.xlu2 %v5887_v30, %s6375_s13  ;;  %v9826_v50 = vunpack.i.l.bf16 %v8862_v7 }
0x12c7   : > { %v8913_v18 = vpop.permute.xlu0 %5618  ;;  %v5892_v21 = vpack.i.bf16 %v3648_v9, %v3647_v25  ;;  %v3671_v9 = vmul.f32 %v8867_v16, %v6640_v45 }
0x12c8   : > { %v9837_v14 = vunpack.i.h.bf16 %v8913_v18  ;;  %v5639_v52 = vpop.permute.xlu1 %5638  ;;  %v8918_v34 = vpop.permute.xlu2 %5723 }
0x12c9   : > { %9930 = vst [vmem:[#allocation78_spill] sm:$0xff] %v8918_v34  ;;  %v5641_v30 = vunpack.i.h.bf16 %v5639_v52 }
0x12ca   : > { %v8934_v53 = vsel %vm696_vm14, %v9837_v14, %v5635_v47  ;;  %v5640_v47 = vunpack.i.l.bf16 %v5639_v52 }
0x12cb   : > { %9931 = vst [vmem:[#allocation79_spill] sm:$0xff] %v8934_v53  ;;  %v8939_v44 = vsel %vm719_vm9, %v5641_v30, %v9826_v50 }
0x12cd   : > { %5848 = vrot.lane.b32.xlu0 %v5847_v2, %s6378_s24  ;;  %v3715_v2 = vmul.f32 %v8815_v27, %v6576_v15 }
0x12ce   : > { %5868 = vrot.lane.b32.xlu1 %v5867_v54, %s6378_s24  ;;  %5893 = vrot.lane.b32.xlu2 %v5892_v21, %s6377_s12  ;;  %v3672_v21 = vmul.f32 %v8683_v5, %v6623_v39  ;;  %v3694_v39 = vmul.f32 %v8870_v46, %v6580_v17 }
0x12cf   : > { %v8944_v19 = vpop.permute.xlu0 %5623  ;;  %v5852_v52 = vpack.i.bf16 %v3716_v23, %v3715_v2  ;;  %v3691_v23 = vmul.f32 %v8815_v27, %v6580_v17  ;;  %v9934_v17 = vpack.i.bf16 %v8563_v13, %v8557_v1  ;;  %v9937_v13 = vpack.i.bf16 %v8548_v57, %v8551_v3 }
0x12d0   : > { %v9827_v22 = vunpack.i.h.bf16 %v8944_v19  ;;  %v8949_v8 = vpop.permute.xlu1 %5673  ;;  %v8951_v30 = vpop.permute.xlu2 %5728  ;;  %v5897_v25 = vpack.i.bf16 %v3672_v21, %v3671_v9  ;;  %v3692_v57 = vmul.f32 %v8820_v6, %v6603_v28 }
0x12d2   : > { %v8962_v54 = vsel %vm719_vm9, %v9827_v22, %v5640_v47  ;;  %v9828_v47 = vunpack.i.l.bf16 %v8889_v31 }
0x12d3   : > { %9932 = vst [vmem:[#allocation80_spill] sm:$0xff] %v8962_v54 }
0x12d5   : > { %5853 = vrot.lane.b32.xlu0 %v5852_v52, %s6376_s16  ;;  %v5872_v52 = vpack.i.bf16 %v3694_v39, %v3691_v23  ;;  %v9935_v39 = vpack.i.bf16 %v8567_v56, %v8583_v61  ;;  %v9938_v56 = vpack.i.bf16 %v8414_v63, %v8410_v4  ;;  %v3718_v4 = vmul.f32 %v8870_v46, %v6576_v15 }
0x12d6   : > { %5883 = vrot.lane.b32.xlu1 %v5882_v51, %s6375_s13  ;;  %5898 = vrot.lane.b32.xlu2 %v5897_v25, %s6378_s24  ;;  %v3719_v63 = vmul.f32 %v8867_v16, %v6646_v48  ;;  %v9941_v48 = vpack.i.bf16 %v8389_v26, %v8383_v24 }
0x12d7   : > { %v8969_v45 = vpop.permute.xlu0 %5668 }
0x12d8   : > { %v5679_v40 = vpop.permute.xlu1 %5678  ;;  %v8973_v50 = vpop.permute.xlu2 %5733  ;;  %v9840_v9 = vunpack.i.h.bf16 %v8969_v45  ;;  %v5947_v15 = vpack.i.bf16 %v3719_v63, %v3718_v4  ;;  %v3743_v4 = vmul.f32 %v8867_v16, %v6618_v36  ;;  %v3693_v63 = vmul.f32 %v8687_v37, %v6586_v20 }
0x12d9   : > { %9933 = vst [vmem:[#allocation81_spill] sm:$0xff] %v8973_v50  ;;  %v5681_v2 = vunpack.i.h.bf16 %v5679_v40  ;;  %v5680_v21 = vunpack.i.l.bf16 %v5679_v40 }
0x12db   : > { %v8982_v51 = vsel %vm662_vm3, %v5681_v2, %v9828_v47  ;;  %v8987_v25 = vsel %vm662_vm3, %v9840_v9, %v5680_v21  ;;  %v9829_v21 = vunpack.i.l.bf16 %v8918_v34 }
0x12dd   : > { %5873 = vrot.lane.b32.xlu0 %v5872_v52, %s6374_s20 }
0x12de   : > { %5913 = vrot.lane.b32.xlu1 %v9934_v17, %s6373_s29  ;;  %5903 = vrot.lane.b32.xlu2 %v9935_v39, %s6376_s16  ;;  %v9939_v17 = vpack.i.bf16 %v8510_v60, %v8506_v42  ;;  %v9832_v42 = vunpack.i.l.bf16 %v8951_v30 }
0x12df   : > { %v8998_v40 = vpop.permute.xlu0 %5683 }
0x12e0   : > { %v5699_v23 = vpop.permute.xlu1 %5698  ;;  %v9000_v2 = vpop.permute.xlu2 %5743  ;;  %v9834_v22 = vunpack.i.h.bf16 %v8998_v40 }
0x12e1   : > { %v5701_v52 = vunpack.i.h.bf16 %v5699_v23  ;;  %v5700_v47 = vunpack.i.l.bf16 %v5699_v23 }
0x12e3   : > { %v9007_v1 = vsel %vm679_vm13, %v5701_v52, %v9829_v21  ;;  %v9012_v61 = vsel %vm679_vm13, %v9834_v22, %v5700_v47  ;;  %v3695_v47 = vmul.f32 %v8867_v16, %v6603_v28  ;;  %v9944_v21 = vpack.i.bf16 %v8577_v59, %v8587_v0 }
0x12e4   : > { %9936 = vst [vmem:[#allocation82_spill] sm:$0xff] %v9012_v61  ;;  %v9946_v0 = vpack.i.bf16 %v8435_v38, %v8424_v35  ;;  %v9947_v59 = vpack.i.bf16 %v8453_v11, %v8449_v10  ;;  %v9948_v35 = vpack.i.bf16 %v8697_v32, %v8701_v12  ;;  %v9949_v38 = vld [vmem:[#allocation46_spill] sm:$0xff]  ;;  %v9951_v11 = vld [vmem:[#allocation65_spill] sm:$0xff] }
0x12e5   : > { %5908 = vrot.lane.b32.xlu0 %v9937_v13, %s6375_s13  ;;  %v9950_v10 = vpack.i.bf16 %v8457_v29, %v9949_v38  ;;  %v9956_v29 = vld [vmem:[#allocation61_spill] sm:$0xff]  ;;  %v9957_v12 = vld [vmem:[#allocation62_spill] sm:$0xff]  ;;  %v9960_v38 = vld [vmem:[#allocation64_spill] sm:$0xff] }
0x12e6   : > { %5933 = vrot.lane.b32.xlu1 %v9938_v56, %s6376_s16  ;;  %5918 = vrot.lane.b32.xlu2 %v9939_v17, %s6376_s16  ;;  %v5922_v56 = vpack.i.bf16 %v3692_v57, %v3695_v47 }
0x12e7   : > { %v9026_v39 = vpop.permute.xlu0 %5688 }
0x12e8   : > { %v5704_v23 = vpop.permute.xlu1 %5703  ;;  %v9030_v52 = vpop.permute.xlu2 %5788  ;;  %v9839_v60 = vunpack.i.h.bf16 %v9026_v39 }
0x12e9   : > { %v5706_v3 = vunpack.i.h.bf16 %v5704_v23  ;;  %v5705_v13 = vunpack.i.l.bf16 %v5704_v23  ;;  %v9850_v54 = vunpack.i.l.bf16 %v9030_v52 }
0x12eb   : > { %v9043_v17 = vsel %vm696_vm14, %v5706_v3, %v9832_v42  ;;  %v9048_v28 = vsel %vm696_vm14, %v9839_v60, %v5705_v13  ;;  %v3742_v3 = vmul.f32 %v8870_v46, %v6612_v33  ;;  %v9831_v13 = vunpack.i.l.bf16 %v8973_v50 }
0x12ec   : > { %9940 = vst [vmem:[#allocation83_spill] sm:$0xff] %v9048_v28  ;;  %v5745_v50 = vunpack.i.l.bf16 %v9000_v2 }
0x12ed   : > { %5923 = vrot.lane.b32.xlu0 %v5922_v56, %s6374_s20  ;;  %v5952_v36 = vpack.i.bf16 %v3743_v4, %v3742_v3  ;;  %v9945_v3 = vpack.i.bf16 %v8518_v58, %v8514_v49  ;;  %v9952_v58 = vld [vmem:[#allocation66_spill] sm:$0xff] }
0x12ee   : > { %5948 = vrot.lane.b32.xlu1 %v5947_v15, %s6376_s16  ;;  %5938 = vrot.lane.b32.xlu2 %v9941_v48, %s6375_s13  ;;  %v3696_v15 = vmul.f32 %v8683_v5, %v6586_v20 }
0x12ef   : > { %v9056_v47 = vpop.permute.xlu0 %5693 }
0x12f0   : > { %v5709_v23 = vpop.permute.xlu1 %5708  ;;  %v9058_v57 = vpop.permute.xlu2 %5803  ;;  %v9833_v56 = vunpack.i.h.bf16 %v9056_v47  ;;  %v5962_v37 = vpack.i.bf16 %v3693_v63, %v3696_v15  ;;  %v9953_v15 = vpack.i.bf16 %v9951_v11, %v9952_v58  ;;  %v9963_v11 = vld [vmem:[#allocation58_spill] sm:$0xff] }
0x12f1   : > { %9942 = vst [vmem:[#allocation84_spill] sm:$0xff] %v9058_v57  ;;  %v5711_v24 = vunpack.i.h.bf16 %v5709_v23  ;;  %v5710_v26 = vunpack.i.l.bf16 %v5709_v23 }
0x12f3   : > { %v9073_v48 = vsel %vm719_vm9, %v5711_v24, %v9831_v13  ;;  %v9078_v33 = vsel %vm719_vm9, %v9833_v56, %v5710_v26  ;;  %v9830_v24 = vunpack.i.l.bf16 %v9058_v57 }
0x12f4   : > { %9943 = vst [vmem:[#allocation85_spill] sm:$0xff] %v9078_v33 }
0x12f5   : > { %5928 = vrot.lane.b32.xlu0 %v9944_v21, %s6373_s29 }
0x12f6   : > { %5953 = vrot.lane.b32.xlu1 %v5952_v36, %s6373_s29  ;;  %5963 = vrot.lane.b32.xlu2 %v5962_v37, %s6374_s20 }
0x12f7   : > { %v9086_v20 = vpop.permute.xlu0 %5718 }
0x12f8   : > { %v9088_v5 = vpop.permute.xlu1 %5748  ;;  %v9090_v23 = vpop.permute.xlu2 %5808 }
0x12fd   : > { %5943 = vrot.lane.b32.xlu0 %v9945_v3, %s6373_s29 }
0x12fe   : > { %5958 = vrot.lane.b32.xlu1 %v9946_v0, %s6376_s16  ;;  %5968 = vrot.lane.b32.xlu2 %v9947_v59, %s6373_s29 }
0x12ff   : > { %v9104_v21 = vpop.permute.xlu0 %5738 }
0x1300   : > { %v5774_v4 = vpop.permute.xlu1 %5773  ;;  %v9106_v63 = vpop.permute.xlu2 %5813  ;;  %v9851_v34 = vunpack.i.h.bf16 %v9104_v21  ;;  %v5740_v57 = vunpack.i.l.bf16 %v9104_v21 }
0x1301   : > { %v5776_v26 = vunpack.i.h.bf16 %v5774_v4  ;;  %v5775_v37 = vunpack.i.l.bf16 %v5774_v4  ;;  %v9836_v13 = vunpack.i.l.bf16 %v9106_v63 }
0x1303   : > { %v9112_v49 = vsel %vm679_vm13, %v5776_v26, %v9830_v24  ;;  %v9958_v26 = vpack.i.bf16 %v9956_v29, %v9957_v12  ;;  %v9966_v12 = vld [vmem:[#allocation59_spill] sm:$0xff] }
0x1305   : > { %5978 = vrot.lane.b32.xlu0 %v9948_v35, %s6376_s16  ;;  %v9959_v35 = vld [vmem:[#allocation63_spill] sm:$0xff] }
0x1306   : > { %5973 = vrot.lane.b32.xlu1 %v9950_v10, %s6373_s29  ;;  %5993 = vrot.lane.b32.xlu2 %v9953_v15, %s6373_s29  ;;  %v9961_v4 = vpack.i.bf16 %v9959_v35, %v9960_v38  ;;  %v9962_v10 = vld [vmem:[#allocation57_spill] sm:$0xff] }
0x1307   : > { %v9126_v36 = vpop.permute.xlu0 %5753  ;;  %v9964_v58 = vpack.i.bf16 %v9962_v10, %v9963_v11  ;;  %v9969_v38 = vld [vmem:[#allocation49_spill] sm:$0xff]  ;;  %v9972_v11 = vld [vmem:[#allocation50_spill] sm:$0xff] }
0x1308   : > { %v9835_v3 = vunpack.i.h.bf16 %v9126_v36  ;;  %v9129_v0 = vpop.permute.xlu1 %5778  ;;  %v9131_v59 = vpop.permute.xlu2 %5833 }
0x1309   : > { %9954 = vst [vmem:[#allocation46_spill] sm:$0xff] %v9129_v0 }
0x130a   : > { %v9136_v32 = vsel %vm679_vm13, %v9835_v3, %v5775_v37 }
0x130b   : > { %9955 = vst [vmem:[#allocation65_spill] sm:$0xff] %v9136_v32 }
0x130d   : > { %5983 = vrot.lane.b32.xlu0 %v9958_v26, %s6376_s16  ;;  %v9967_v26 = vld [vmem:[#allocation60_spill] sm:$0xff] }
0x130e   : > { %5988 = vrot.lane.b32.xlu1 %v9961_v4, %s6373_s29  ;;  %5998 = vrot.lane.b32.xlu2 %v9964_v58, %s6376_s16  ;;  %v9968_v35 = vpack.i.bf16 %v9966_v12, %v9967_v26  ;;  %v9970_v4 = vld [vmem:[#allocation47_spill] sm:$0xff]  ;;  %v9973_v58 = vld [vmem:[#allocation48_spill] sm:$0xff] }
0x130f   : > { %v9150_v15 = vpop.permute.xlu0 %5758  ;;  %v9971_v10 = vpack.i.bf16 %v9969_v38, %v9970_v4  ;;  %v9974_v56 = vpack.i.bf16 %v9972_v11, %v9973_v58 }
0x1310   : > { %9965 = vst [vmem:[#allocation66_spill] sm:$0xff] %v9150_v15  ;;  %v5784_v24 = vpop.permute.xlu1 %5783  ;;  %v9152_v37 = vpop.permute.xlu2 %5858 }
0x1311   : > { %v5786_v42 = vunpack.i.h.bf16 %v5784_v24  ;;  %v5785_v3 = vunpack.i.l.bf16 %v5784_v24 }
0x1313   : > { %v9158_v29 = vsel %vm719_vm9, %v5786_v42, %v9836_v13 }
0x1315   : > { %6003 = vrot.lane.b32.xlu0 %v9968_v35, %s6373_s29 }
0x1316   : > { %6008 = vrot.lane.b32.xlu1 %v9971_v10, %s6376_s16  ;;  %6013 = vrot.lane.b32.xlu2 %v9974_v56, %s6373_s29  ;;  %v9841_v56 = vunpack.i.h.bf16 %v9000_v2 }
0x1317   : > { %v9172_v22 = vpop.permute.xlu0 %5763 }
0x1318   : > { %v9838_v42 = vunpack.i.h.bf16 %v9172_v22  ;;  %v9175_v13 = vpop.permute.xlu1 %5793  ;;  %v9177_v14 = vpop.permute.xlu2 %5878 }
0x1319   : > { %v9848_v60 = vunpack.i.l.bf16 %v9177_v14 }
0x131a   : > { %v9182_v12 = vsel %vm719_vm9, %v9838_v42, %v5785_v3 }
0x131b   : > { %9975 = vst [vmem:[#allocation61_spill] sm:$0xff] %v9182_v12  ;;  %v3817_v12 = vsel %vm662_vm3, %v5740_v57, %v9851_v34 }
0x131f   : > { %v9184_v26 = vpop.permute.xlu0 %5768 }
0x1320   : > { %v9186_v35 = vpop.permute.xlu1 %5798  ;;  %v9190_v24 = vpop.permute.xlu2 %5888 }
0x1321   : > { %v5801_v38 = vunpack.i.h.bf16 %v9186_v35 }
0x1323   : > { %v9195_v4 = vsel %vm750_vm10, %v9841_v56, %v5801_v38  ;;  %v5751_v38 = vunpack.i.h.bf16 %v9088_v5 }
0x1327   : > { %v9197_v10 = vpop.permute.xlu0 %5818 }
0x1328   : > { %v9199_v11 = vpop.permute.xlu1 %5823  ;;  %v9201_v3 = vpop.permute.xlu2 %5893 }
0x132f   : > { %v9203_v58 = vpop.permute.xlu0 %5828 }
0x1330   : > { %v9205_v42 = vpop.permute.xlu1 %5838  ;;  %v9849_v9 = vunpack.i.h.bf16 %v9203_v58  ;;  %v5830_v61 = vunpack.i.l.bf16 %v9203_v58  ;;  %v9221_v53 = vpop.permute.xlu2 %5898 }
0x1331   : > { %v5841_v32 = vunpack.i.h.bf16 %v9205_v42 }
0x1332   : > { %v3821_v33 = vsel %vm662_vm3, %v5830_v61, %v9849_v9  ;;  %v5600_v61 = vunpack.i.l.bf16 %v8829_v62 }
0x1333   : > { %v3823_v56 = vsel %vm662_vm3, %v5841_v32, %v9848_v60  ;;  %v3819_v32 = vsel %vm662_vm3, %v5751_v38, %v9850_v54  ;;  %v5670_v60 = vunpack.i.l.bf16 %v8969_v45 }
0x1334   : > { %4448 = vmatpush.msra.mxu1 %v3823_v56 }
0x1336   : > { %4449 = vmatpush.msra.mxu1 %v3821_v33  ;;  %v9977_v33 = vunpack.i.h.bf16 %v8969_v45 }
0x1337   : > { %v9223_v7 = vpop.permute.xlu0 %5843 }
0x1338   : > { %v9228_v56 = vpop.permute.xlu1 %5863  ;;  %4450 = vmatpush.msra.mxu1 %v3819_v32  ;;  %v3813_v9 = vsel %vm662_vm3, %v5670_v60, %v9977_v33  ;;  %v9978_v32 = vunpack.i.h.bf16 %v8829_v62  ;;  %v9248_v34 = vpop.permute.xlu2 %5903  ;;  %v9979_v60 = vld [vmem:[#allocation24_spill] sm:$0xff] }
0x1339   : > { %9976 = vst [vmem:[#allocation62_spill] sm:$0xff] %v9228_v56  ;;  %v3623_v33 = vmul.f32 %v8870_v46, %v9979_v60 }
0x133a   : > { %4451 = vmatpush.msra.mxu1 %v3817_v12  ;;  %v3809_v57 = vsel %vm662_vm3, %v5600_v61, %v9978_v32  ;;  %v9852_v12 = vunpack.i.l.bf16 %v9221_v53  ;;  %v3621_v61 = vmul.f32 %v8815_v27, %v9979_v60  ;;  %v9855_v32 = vunpack.i.l.bf16 %v9090_v23 }
0x133c   : > { %4452 = vmatpush.msra.mxu1 %v8982_v51 }
0x133e   : > { %4453 = vmatpush.msra.mxu1 %v3813_v9 }
0x133f   : > { %v9239_v38 = vpop.permute.xlu0 %5848 }
0x1340   : > { %v9241_v54 = vpop.permute.xlu1 %5868  ;;  %4454 = vmatpush.msra.mxu1 %v8850_v41  ;;  %v5850_v45 = vunpack.i.l.bf16 %v9239_v38  ;;  %v5781_v41 = vunpack.i.h.bf16 %v9129_v0  ;;  %v9980_v28 = vunpack.i.h.bf16 %v9239_v38 }
0x1341   : > { %v5871_v9 = vunpack.i.h.bf16 %v9241_v54 }
0x1342   : > { %4455 = vmatpush.msra.mxu1 %v3809_v57  ;;  %v5760_v57 = vunpack.i.l.bf16 %v9150_v15  ;;  %v4029_v46 = vsel %vm696_vm14, %v5850_v45, %v9980_v28  ;;  %v4027_v27 = vsel %vm696_vm14, %v5781_v41, %v9855_v32  ;;  %v5690_v28 = vunpack.i.l.bf16 %v9026_v39 }
0x1343   : > { %v4031_v62 = vsel %vm696_vm14, %v5871_v9, %v9852_v12  ;;  %v3619_v9 = vmul.f32 %v8735_v55, %v9979_v60  ;;  %v9981_v12 = vld [vmem:[#allocation53_spill] sm:$0xff]  ;;  %v9982_v55 = vunpack.i.h.bf16 %v9150_v15  ;;  %v5835_v41 = vunpack.i.l.bf16 %v9131_v59 }
0x1344   : > { %4456 = vmatpush.msra.mxu1 %v3623_v33  ;;  %4471 = vmatpush.msra.mxu3 %v4031_v62  ;;  %v3617_v51 = vmul.f32 %v9981_v12, %v9979_v60  ;;  %v9288_v12 = vpop.permute.xlu2 %5918  ;;  %v5795_v15 = vunpack.i.l.bf16 %v9175_v13 }
0x1346   : > { %4457 = vmatpush.msra.mxu1 %v3621_v61  ;;  %4472 = vmatpush.msra.mxu3 %v4029_v46  ;;  %v4025_v46 = vsel %vm696_vm14, %v5760_v57, %v9982_v55  ;;  %v9984_v57 = vld [vmem:[#allocation51_spill] sm:$0xff]  ;;  %v5620_v55 = vunpack.i.l.bf16 %v8913_v18 }
0x1347   : > { %v9269_v33 = vpop.permute.xlu0 %5853 }
0x1348   : > { %v9274_v62 = vpop.permute.xlu1 %5883  ;;  %4458 = vmatpush.msra.mxu1 %v3619_v9  ;;  %4473 = vmatpush.msra.mxu3 %v4027_v27  ;;  %v9983_v9 = vld [vmem:[#allocation56_spill] sm:$0xff] }
0x1349   : > { %v9858_v45 = vunpack.i.h.bf16 %v9274_v62  ;;  %v5885_v61 = vunpack.i.l.bf16 %v9274_v62  ;;  %v3615_v27 = vmul.f32 %v9983_v9, %v9979_v60 }
0x134a   : > { %4459 = vmatpush.msra.mxu1 %v3617_v51  ;;  %4474 = vmatpush.msra.mxu3 %v4025_v46  ;;  %v3613_v51 = vmul.f32 %v9984_v57, %v9979_v60  ;;  %v9985_v46 = vunpack.i.h.bf16 %v9026_v39  ;;  %v5866_v57 = vunpack.i.h.bf16 %v9228_v56  ;;  %v9990_v39 = vunpack.i.h.bf16 %v8913_v18 }
0x134b   : > { %v4319_v32 = vsel %vm750_vm10, %v5885_v61, %v9858_v45  ;;  %v9986_v61 = vunpack.i.h.bf16 %v9131_v59  ;;  %v5675_v56 = vunpack.i.l.bf16 %v8949_v8 }
0x134c   : > { %4460 = vmatpush.msra.mxu1 %v3615_v27  ;;  %4475 = vmatpush.msra.mxu3 %v9043_v17  ;;  %v4021_v9 = vsel %vm696_vm14, %v5690_v28, %v9985_v46  ;;  %v9987_v17 = vld [vmem:[#allocation45_spill] sm:$0xff]  ;;  %v9989_v46 = vld [vmem:[#allocation42_spill] sm:$0xff] }
0x134d   : > { %4517 = vmatpush.msrb.mxu2 %v4319_v32  ;;  %v4317_v27 = vsel %vm750_vm10, %v5835_v41, %v9986_v61  ;;  %v3611_v45 = vmul.f32 %v9987_v17, %v9979_v60  ;;  %v5720_v32 = vunpack.i.l.bf16 %v9086_v20  ;;  %v9861_v61 = vunpack.i.l.bf16 %v9201_v3 }
0x134e   : > { %4461 = vmatpush.msra.mxu1 %v3613_v51  ;;  %4476 = vmatpush.msra.mxu3 %v4021_v9  ;;  %v9988_v51 = vunpack.i.h.bf16 %v9175_v13  ;;  %v3609_v9 = vmul.f32 %v9989_v46, %v9979_v60  ;;  %v5845_v17 = vunpack.i.l.bf16 %v9223_v7 }
0x134f   : > { %v9309_v0 = vpop.permute.xlu0 %5873  ;;  %4518 = vmatpush.msrb.mxu2 %v4317_v27  ;;  %v9860_v27 = vunpack.i.h.bf16 %v9223_v7 }
0x1350   : > { %v9313_v28 = vpop.permute.xlu1 %5913  ;;  %4462 = vmatpush.msra.mxu1 %v3611_v45  ;;  %4477 = vmatpush.msra.mxu3 %v8906_v43  ;;  %v4315_v41 = vsel %vm750_vm10, %v5795_v15, %v9988_v51  ;;  %v4017_v45 = vsel %vm696_vm14, %v5620_v55, %v9990_v39  ;;  %v9864_v43 = vunpack.i.h.bf16 %v8949_v8  ;;  %v9991_v15 = vunpack.i.h.bf16 %v9000_v2  ;;  %v9994_v2 = vld [vmem:[#allocation73_spill] sm:$0xff] }
0x1351   : > { %4519 = vmatpush.msrb.mxu2 %v4315_v41  ;;  %v3927_v51 = vsel %vm679_vm13, %v5866_v57, %v9861_v61  ;;  %v9992_v41 = vld [vmem:[#allocation69_spill] sm:$0xff]  ;;  %v9993_v55 = vunpack.i.h.bf16 %v9086_v20  ;;  %v9862_v57 = vunpack.i.h.bf16 %v9994_v2  ;;  %v9371_v61 = vld [vmem:[#allocation16] sm:$0xff] }
0x1352   : > { %4463 = vmatpush.msra.mxu1 %v3609_v9  ;;  %4478 = vmatpush.msra.mxu3 %v4017_v45  ;;  %v4313_v60 = vsel %vm750_vm10, %v5745_v50, %v9991_v15  ;;  %v9863_v46 = vunpack.i.h.bf16 %v9992_v41  ;;  %v5650_v18 = vunpack.i.l.bf16 %v9992_v41  ;;  %v5755_v9 = vunpack.i.l.bf16 %v9126_v36  ;;  %v9341_v45 = vpop.permute.xlu2 %5938  ;;  %9998 = vst [vmem:[#allocation63_spill] sm:$0xff] %v9371_v61 }
0x1353   : > { %4520 = vmatpush.msrb.mxu2 %v4313_v60  ;;  %v4311_v39 = vsel %vm750_vm10, %v5720_v32, %v9993_v55  ;;  %v3925_v50 = vsel %vm679_vm13, %v5845_v17, %v9860_v27  ;;  %v5605_v15 = vunpack.i.l.bf16 %v9994_v2  ;;  %v4309_v60 = vsel %vm750_vm10, %v5675_v56, %v9864_v43  ;;  %4464 = vmatmul.f32.vlgmr.msra.gmra.mxu1 %v9371_v61 }
0x1354   : > { %4479 = vmatpush.msra.mxu3 %v3927_v51  ;;  %v4307_v17 = vsel %vm750_vm10, %v5650_v18, %v9863_v46  ;;  %v5685_v55 = vunpack.i.l.bf16 %v8998_v40  ;;  %v10001_v43 = vunpack.i.l.bf16 %v9177_v14 }
0x1355   : > { %4521 = vmatpush.msrb.mxu2 %v4311_v39  ;;  %v9995_v39 = vunpack.i.h.bf16 %v9126_v36  ;;  %v4305_v56 = vsel %vm750_vm10, %v5605_v15, %v9862_v57  ;;  %v5881_v36 = vunpack.i.h.bf16 %v9177_v14  ;;  %v5855_v57 = vunpack.i.l.bf16 %v9269_v33 }
0x1356   : > { %4480 = vmatpush.msra.mxu3 %v3925_v50  ;;  %v5770_v14 = vunpack.i.l.bf16 %v9184_v26 }
0x1357   : > { %v9351_v51 = vpop.permute.xlu0 %5908  ;;  %4522 = vmatpush.msrb.mxu2 %v4309_v60  ;;  %v3921_v50 = vsel %vm679_vm13, %v5755_v9, %v9995_v39  ;;  %v9996_v60 = vld [vmem:[#allocation76_spill] sm:$0xff] }
0x1358   : > { %v9353_v32 = vpop.permute.xlu1 %5933  ;;  %4481 = vmatpush.msra.mxu3 %v9112_v49  ;;  %v5615_v27 = vunpack.i.l.bf16 %v9996_v60  ;;  %v9997_v49 = vunpack.i.h.bf16 %v8998_v40  ;;  %v9999_v15 = vunpack.i.h.bf16 %v9996_v60  ;;  %v5876_v40 = vunpack.i.h.bf16 %v9309_v0 }
0x1359   : > { %4523 = vmatpush.msrb.mxu2 %v4307_v17  ;;  %v5820_v60 = vunpack.i.l.bf16 %v9197_v10 }
0x135a   : > { %4482 = vmatpush.msra.mxu3 %v3921_v50  ;;  %v3917_v18 = vsel %vm679_vm13, %v5685_v55, %v9997_v49  ;;  %v9375_v9 = vpop.permute.xlu2 %5963  ;;  %v3913_v39 = vsel %vm679_vm13, %v5615_v27, %v9999_v15  ;;  %v10000_v49 = vld [vmem:[#allocation75_spill] sm:$0xff]  ;;  %v5875_v15 = vunpack.i.l.bf16 %v9309_v0  ;;  %v5695_v55 = vunpack.i.l.bf16 %v9056_v47 }
0x135b   : > { %4524 = vmatpush.msrb.mxu2 %v4305_v56 }
0x135c   : > { %4483 = vmatpush.msra.mxu3 %v9007_v1  ;;  %v5840_v1 = vunpack.i.l.bf16 %v9205_v42  ;;  %v5791_v42 = vunpack.i.h.bf16 %v9030_v52 }
0x135e   : > { %4484 = vmatpush.msra.mxu3 %v3917_v18  ;;  %v5765_v18 = vunpack.i.l.bf16 %v9172_v22 }
0x135f   : > { %v9377_v17 = vpop.permute.xlu0 %5923 }
0x1360   : > { %v9866_v50 = vunpack.i.l.bf16 %v9377_v17  ;;  %v9386_v56 = vpop.permute.xlu1 %5948  ;;  %4485 = vmatpush.msra.mxu3 %v10000_v49  ;;  %v3824_v49 = vsel %vm662_vm3, %v10001_v43, %v5881_v36  ;;  %v10003_v43 = vunpack.i.h.bf16 %v9377_v17 }
0x1361   : > { %v5950_v27 = vunpack.i.l.bf16 %v9386_v56  ;;  %v10002_v61 = vunpack.i.h.bf16 %v9386_v56 }
0x1362   : > { %4486 = vmatpush.msra.mxu3 %v3913_v39  ;;  %v4135_v46 = vsel %vm719_vm9, %v5876_v40, %v9866_v50  ;;  %v9407_v39 = vld [vmem:[#allocation16 + $0x8] sm:$0xff]  ;;  %v4133_v36 = vsel %vm719_vm9, %v5875_v15, %v10003_v43  ;;  %v10004_v50 = vunpack.i.h.bf16 %v9203_v58  ;;  %v5716_v40 = vunpack.i.h.bf16 %v8889_v31 }
0x1363   : > { %4494 = vmatpush.msrb.mxu0 %v4135_v46  ;;  %v4239_v0 = vsel %vm736_vm8, %v5950_v27, %v10002_v61  ;;  %4487 = vmatmul.f32.vlgmr.msra.gmra.mxu3 %v9407_v39  ;;  %v10005_v61 = vunpack.i.h.bf16 %v9269_v33  ;;  %v10006_v15 = vunpack.i.l.bf16 %v9030_v52  ;;  %v10008_v43 = vunpack.i.h.bf16 %v9104_v21 }
0x1364   : > { %4563 = vmatpush.msrb.mxu3 %v3824_v49  ;;  %4525 = vmatpush.msrb.mxu2 %v4239_v0  ;;  %v3822_v46 = vsel %vm662_vm3, %v10004_v50, %v5840_v1  ;;  %v5750_v49 = vunpack.i.l.bf16 %v9088_v5  ;;  %v5906_v1 = vunpack.i.h.bf16 %v9248_v34  ;;  %v5905_v50 = vunpack.i.l.bf16 %v9248_v34 }
0x1365   : > { %4495 = vmatpush.msrb.mxu0 %v4133_v36  ;;  %v4237_v27 = vsel %vm736_vm8, %v5855_v57, %v10005_v61  ;;  %v3820_v58 = vsel %vm662_vm3, %v10006_v15, %v5791_v42  ;;  %v10007_v57 = vunpack.i.h.bf16 %v9197_v10  ;;  %v5860_v42 = vunpack.i.l.bf16 %v9152_v37 }
0x1366   : > { %4564 = vmatpush.msrb.mxu3 %v3822_v46  ;;  %4526 = vmatpush.msrb.mxu2 %v4237_v27  ;;  %v3818_v36 = vsel %vm662_vm3, %v10008_v43, %v5750_v49  ;;  %v10009_v61 = vunpack.i.h.bf16 %v9172_v22  ;;  %v5920_v21 = vunpack.i.l.bf16 %v9288_v12  ;;  %v9450_v49 = vpop.permute.xlu2 %5968  ;;  %v10011_v22 = vld [vmem:[#allocation68_spill] sm:$0xff]  ;;  %v5935_v52 = vunpack.i.l.bf16 %v9353_v32 }
0x1367   : > { %v9429_v5 = vpop.permute.xlu0 %5928  ;;  %4496 = vmatpush.msrb.mxu0 %v9158_v29  ;;  %v4235_v0 = vsel %vm736_vm8, %v5820_v60, %v10007_v57  ;;  %v10010_v29 = vunpack.i.h.bf16 %v9184_v26  ;;  %v5921_v60 = vunpack.i.h.bf16 %v9288_v12  ;;  %v5646_v43 = vunpack.i.h.bf16 %v10011_v22 }
0x1368   : > { %4565 = vmatpush.msrb.mxu3 %v3820_v58  ;;  %v9440_v46 = vpop.permute.xlu1 %5953  ;;  %v4129_v27 = vsel %vm719_vm9, %v5765_v18, %v10009_v61  ;;  %4527 = vmatpush.msrb.mxu2 %v4235_v0  ;;  %v5825_v0 = vunpack.i.l.bf16 %v9199_v11 }
0x1369   : > { %v4233_v15 = vsel %vm736_vm8, %v5770_v14, %v10010_v29  ;;  %v5956_v58 = vunpack.i.h.bf16 %v9440_v46  ;;  %v5955_v57 = vunpack.i.l.bf16 %v9440_v46  ;;  %4497 = vmatpush.msrb.mxu0 %v4129_v27  ;;  %v10012_v14 = vunpack.i.l.bf16 %v8889_v31 }
0x136a   : > { %4566 = vmatpush.msrb.mxu3 %v3818_v36  ;;  %4528 = vmatpush.msrb.mxu2 %v4233_v15  ;;  %v5936_v29 = vunpack.i.h.bf16 %v9353_v32  ;;  %v4231_v36 = vsel %vm736_vm8, %v5905_v50, %v5906_v1  ;;  %v5625_v15 = vunpack.i.l.bf16 %v8944_v19  ;;  %v5916_v31 = vunpack.i.h.bf16 %v9313_v28 }
0x136b   : > { %v3816_v61 = vsel %vm662_vm3, %v10012_v14, %v5716_v40  ;;  %4498 = vmatpush.msrb.mxu0 %v9073_v48  ;;  %v4423_v27 = vsel %vm764_vm6, %v5955_v57, %v5956_v58  ;;  %v5915_v40 = vunpack.i.l.bf16 %v9313_v28  ;;  %v10013_v14 = vunpack.i.h.bf16 %v9056_v47 }
0x136c   : > { %4567 = vmatpush.msrb.mxu3 %v3816_v61  ;;  %4529 = vmatpush.msrb.mxu2 %v4231_v36  ;;  %v4229_v48 = vsel %vm736_vm8, %v5920_v21, %v5921_v60  ;;  %v10014_v50 = vunpack.i.h.bf16 %v9152_v37  ;;  %v10015_v61 = vunpack.i.l.bf16 %v10011_v22  ;;  %v9496_v22 = vld [vmem:[#allocation16 + $0x30] sm:$0xf]  ;;  %v10062_v28 = vunpack.i.h.bf16 %v9197_v10 }
0x136d   : > { %v4125_v18 = vsel %vm719_vm9, %v5695_v55, %v10013_v14  ;;  %4548 = vmatpush.msrb.mxu1 %v4423_v27  ;;  %v5931_v55 = vunpack.i.h.bf16 %v9429_v5  ;;  %v10017_v27 = vunpack.i.h.bf16 %v8944_v19  ;;  %v10019_v19 = vld [vmem:[#allocation72_spill] sm:$0xff]  ;;  %4490 = vmatmul.f32.gmra.mxu3 %v9496_v22 }
0x136e   : > { %4499 = vmatpush.msrb.mxu0 %v4125_v18  ;;  %4568 = vmatpush.msrb.mxu3 %v8987_v25  ;;  %v4421_v57 = vsel %vm764_vm6, %v5860_v42, %v10014_v50  ;;  %v3812_v47 = vsel %vm662_vm3, %v10015_v61, %v5646_v43  ;;  %v5930_v18 = vunpack.i.l.bf16 %v9429_v5  ;;  %v4227_v25 = vsel %vm736_vm8, %v5935_v52, %v5936_v29 }
0x136f   : > { %4530 = vmatpush.msrb.mxu2 %v4229_v48  ;;  %4549 = vmatpush.msrb.mxu1 %v4421_v57  ;;  %v9487_v36 = vpop.permute.xlu0 %5943  ;;  %v10016_v42 = vunpack.i.h.bf16 %v9199_v11  ;;  %v4121_v14 = vsel %vm719_vm9, %v5625_v15, %v10017_v27  ;;  %v10018_v48 = vld [vmem:[#allocation25_spill] sm:$0xff]  ;;  %v5891_v15 = vunpack.i.h.bf16 %v9190_v24 }
0x1370   : > { %4500 = vmatpush.msrb.mxu0 %v8939_v44  ;;  %4569 = vmatpush.msrb.mxu3 %v3812_v47  ;;  %v9498_v43 = vpop.permute.xlu1 %5958  ;;  %v4417_v44 = vsel %vm764_vm6, %v5915_v40, %v5916_v31  ;;  %v3624_v52 = vmul.f32 %v8867_v16, %v10018_v48  ;;  %v5946_v50 = vunpack.i.h.bf16 %v9487_v36  ;;  %v5890_v47 = vunpack.i.l.bf16 %v9190_v24 }
0x1371   : > { %v4419_v21 = vsel %vm764_vm6, %v5825_v0, %v10016_v42  ;;  %4531 = vmatpush.msrb.mxu2 %v4227_v25  ;;  %v5945_v0 = vunpack.i.l.bf16 %v9487_v36  ;;  %v5961_v57 = vunpack.i.h.bf16 %v9498_v43  ;;  %v5960_v61 = vunpack.i.l.bf16 %v9498_v43  ;;  %v9520_v42 = vpop.permute.xlu2 %5993  ;;  %v10081_v43 = vld [vmem:[#allocation82_spill] sm:$0xff] }
0x1372   : > { %4550 = vmatpush.msrb.mxu1 %v4419_v21  ;;  %4501 = vmatpush.msrb.mxu0 %v4121_v14  ;;  %v3622_v40 = vmul.f32 %v8820_v6, %v10018_v48  ;;  %v5971_v16 = vunpack.i.h.bf16 %v9450_v49  ;;  %v5970_v25 = vunpack.i.l.bf16 %v9450_v49  ;;  %v10020_v21 = vld [vmem:[#allocation40_spill] sm:$0xff]  ;;  %v4415_v24 = vsel %vm764_vm6, %v5930_v18, %v5931_v55  ;;  %v10021_v14 = vld [vmem:[#allocation38_spill] sm:$0xff] }
0x1373   : > { %4570 = vmatpush.msrb.mxu3 %v10019_v19  ;;  %v4225_v27 = vsel %vm736_vm8, %v5960_v61, %v5961_v57  ;;  %v5800_v6 = vunpack.i.l.bf16 %v9186_v35  ;;  %v10023_v61 = vld [vmem:[#allocation67_spill] sm:$0xff]  ;;  %v10024_v35 = vld [vmem:[#allocation36_spill] sm:$0xff] }
0x1374   : > { %4551 = vmatpush.msrb.mxu1 %v4417_v44  ;;  %4502 = vmatpush.msrb.mxu0 %v10020_v21  ;;  %v10022_v44 = vunpack.i.h.bf16 %v9274_v62  ;;  %v3620_v21 = vmul.f32 %v10023_v61, %v10018_v48 }
0x1375   : > { %4571 = vmatpush.msrb.mxu3 %v3624_v52  ;;  %4532 = vmatpush.msrb.mxu2 %v4225_v27  ;;  %v4413_v52 = vsel %vm764_vm6, %v5945_v0, %v5946_v50  ;;  %v10026_v0 = vld [vmem:[#allocation55_spill] sm:$0xff] }
0x1376   : > { %4552 = vmatpush.msrb.mxu1 %v4415_v24  ;;  %4503 = vmatpush.msrb.mxu0 %v10021_v14  ;;  %v4320_v19 = vsel %vm750_vm10, %v10022_v44, %v5890_v47  ;;  %v4411_v47 = vsel %vm764_vm6, %v5970_v25, %v5971_v16  ;;  %v3618_v27 = vmul.f32 %v10026_v0, %v10018_v48  ;;  %v9550_v24 = vld [vmem:[#allocation16 + $0x28] sm:$0xf]  ;;  %v10027_v44 = vunpack.i.h.bf16 %v9175_v13 }
0x1377   : > { %4572 = vmatpush.msrb.mxu3 %v3622_v40  ;;  %4632 = vmatpush.msra.mxu2 %v4320_v19  ;;  %v9539_v18 = vpop.permute.xlu0 %5978  ;;  %v10025_v40 = vunpack.i.h.bf16 %v9131_v59  ;;  %v10028_v59 = vld [vmem:[#allocation54_spill] sm:$0xff]  ;;  %v5910_v25 = vunpack.i.l.bf16 %v9351_v51  ;;  %v5870_v13 = vunpack.i.l.bf16 %v9241_v54 }
0x1378   : > { %4553 = vmatpush.msrb.mxu1 %v4413_v52  ;;  %4504 = vmatpush.msrb.mxu0 %v10024_v35  ;;  %v9552_v14 = vpop.permute.xlu1 %5973  ;;  %v4316_v19 = vsel %vm750_vm10, %v10027_v44, %v5800_v6  ;;  %v5901_v52 = vunpack.i.h.bf16 %v9221_v53  ;;  %v10029_v35 = vld [vmem:[#allocation34_spill] sm:$0xff]  ;;  %v5911_v6 = vunpack.i.h.bf16 %v9351_v51  ;;  %v5811_v44 = vunpack.i.h.bf16 %v9090_v23 }
0x1379   : > { %4573 = vmatpush.msrb.mxu3 %v3620_v21  ;;  %v4318_v62 = vsel %vm750_vm10, %v10025_v40, %v5891_v15  ;;  %v3616_v15 = vmul.f32 %v10028_v59, %v10018_v48  ;;  %v5976_v61 = vunpack.i.h.bf16 %v9552_v14  ;;  %v5975_v21 = vunpack.i.l.bf16 %v9552_v14  ;;  %4467 = vmatmul.f32.gmra.mxu1 %v9550_v24  ;;  %v10030_v40 = vld [vmem:[#allocation32_spill] sm:$0xff]  ;;  %v10032_v54 = vld [vmem:[#allocation30_spill] sm:$0xff] }
0x137a   : > { %4633 = vmatpush.msra.mxu2 %v4318_v62  ;;  %4554 = vmatpush.msrb.mxu1 %v4411_v47  ;;  %v10031_v47 = vld [vmem:[#allocation52_spill] sm:$0xff]  ;;  %v10033_v51 = vunpack.i.l.bf16 %v9221_v53  ;;  %v10034_v59 = vunpack.i.h.bf16 %v9086_v20  ;;  %v5965_v53 = vunpack.i.l.bf16 %v9375_v9  ;;  %v10038_v20 = vunpack.i.h.bf16 %v9239_v38 }
0x137b   : > { %4505 = vmatpush.msrb.mxu0 %v10029_v35  ;;  %4574 = vmatpush.msrb.mxu3 %v3618_v27  ;;  %v4409_v62 = vsel %vm764_vm6, %v5975_v21, %v5976_v61  ;;  %v3614_v0 = vmul.f32 %v10031_v47, %v10018_v48  ;;  %v9575_v27 = vpop.permute.xlu2 %5998  ;;  %v10035_v21 = vld [vmem:[#allocation44_spill] sm:$0xff]  ;;  %v5731_v47 = vunpack.i.h.bf16 %v8951_v30  ;;  %v5816_v38 = vunpack.i.h.bf16 %v9106_v63 }
0x137c   : > { %4634 = vmatpush.msra.mxu2 %v4316_v19  ;;  %4555 = vmatpush.msrb.mxu1 %v4409_v62  ;;  %v4032_v19 = vsel %vm696_vm14, %v10033_v51, %v5901_v52  ;;  %v3612_v35 = vmul.f32 %v10035_v21, %v10018_v48  ;;  %v10037_v52 = vld [vmem:[#allocation28_spill] sm:$0xff]  ;;  %v10040_v21 = vunpack.i.l.bf16 %v9090_v23  ;;  %v10044_v23 = vunpack.i.h.bf16 %v9992_v41 }
0x137d   : > { %4506 = vmatpush.msrb.mxu0 %v10030_v40  ;;  %4575 = vmatpush.msrb.mxu3 %v3616_v15  ;;  %v4312_v15 = vsel %vm750_vm10, %v10034_v59, %v5910_v25  ;;  %v5940_v40 = vunpack.i.l.bf16 %v9341_v45  ;;  %v4030_v25 = vsel %vm696_vm14, %v10038_v20, %v5870_v13  ;;  %v5995_v59 = vunpack.i.l.bf16 %v9520_v42  ;;  %v10041_v13 = vld [vmem:[#allocation46_spill] sm:$0xff] }
0x137e   : > { %4635 = vmatpush.msra.mxu2 %v9195_v4  ;;  %4586 = vmatpush.msra.mxu1 %v4032_v19  ;;  %v10036_v4 = vld [vmem:[#allocation43_spill] sm:$0xff]  ;;  %v5941_v19 = vunpack.i.h.bf16 %v9341_v45  ;;  %v10043_v45 = vunpack.i.l.bf16 %v9377_v17  ;;  %v10048_v41 = vunpack.i.h.bf16 %v9994_v2 }
0x137f   : > { %4507 = vmatpush.msrb.mxu0 %v10032_v54  ;;  %4576 = vmatpush.msrb.mxu3 %v3614_v0  ;;  %v3610_v62 = vmul.f32 %v10036_v4, %v10018_v48  ;;  %v9591_v0 = vpop.permute.xlu0 %5983  ;;  %v10039_v54 = vunpack.i.h.bf16 %v8949_v8  ;;  %v5996_v48 = vunpack.i.h.bf16 %v9520_v42  ;;  %v5780_v4 = vunpack.i.l.bf16 %v10041_v13  ;;  %v10051_v13 = vld [vmem:[#allocation81_spill] sm:$0xff] }
0x1380   : > { %4636 = vmatpush.msra.mxu2 %v4312_v15  ;;  %4587 = vmatpush.msra.mxu1 %v4030_v25  ;;  %v5989_v15 = vpop.permute.xlu1 %5988  ;;  %v5966_v8 = vunpack.i.h.bf16 %v9375_v9  ;;  %v4136_v42 = vsel %vm719_vm9, %v10043_v45, %v5965_v53  ;;  %v4424_v9 = vsel %vm764_vm6, %v5956_v58, %v5995_v59  ;;  %v5981_v25 = vunpack.i.h.bf16 %v9539_v18 }
0x1381   : > { %4508 = vmatpush.msrb.mxu0 %v10037_v52  ;;  %4577 = vmatpush.msrb.mxu3 %v3612_v35  ;;  %v4310_v51 = vsel %vm750_vm10, %v10039_v54, %v5911_v6  ;;  %v4028_v35 = vsel %vm696_vm14, %v10040_v21, %v5811_v44  ;;  %v10042_v6 = vld [vmem:[#allocation26_spill] sm:$0xff]  ;;  %v5980_v52 = vunpack.i.l.bf16 %v9539_v18  ;;  %v5990_v20 = vunpack.i.l.bf16 %v5989_v15 }
0x1382   : > { %4637 = vmatpush.msra.mxu2 %v4310_v51  ;;  %4588 = vmatpush.msra.mxu1 %v4028_v35  ;;  %v4308_v44 = vsel %vm750_vm10, %v10044_v23, %v5940_v40  ;;  %v10047_v51 = vunpack.i.h.bf16 %v9377_v17  ;;  %v5991_v35 = vunpack.i.h.bf16 %v5989_v15  ;;  %v4306_v46 = vsel %vm750_vm10, %v10048_v41, %v5941_v19  ;;  %v10050_v40 = vld [vmem:[#allocation71_spill] sm:$0xff] }
0x1383   : > { %4509 = vmatpush.msrb.mxu0 %v10042_v6  ;;  %4578 = vmatpush.msrb.mxu3 %v3610_v62  ;;  %v10045_v62 = vld [vmem:[#allocation66_spill] sm:$0xff]  ;;  %v10049_v58 = vunpack.i.h.bf16 %v9152_v37  ;;  %v5661_v59 = vunpack.i.h.bf16 %v10050_v40  ;;  %v5736_v6 = vunpack.i.h.bf16 %v10051_v13  ;;  %v10052_v17 = vunpack.i.l.bf16 %v8951_v30 }
0x1384   : > { %4638 = vmatpush.msra.mxu2 %v4308_v44  ;;  %v10046_v54 = vunpack.i.h.bf16 %v10045_v62  ;;  %v4134_v21 = vsel %vm719_vm9, %v10047_v51, %v5966_v8  ;;  %v5985_v19 = vunpack.i.l.bf16 %v9591_v0  ;;  %v10054_v37 = vunpack.i.h.bf16 %v9386_v56  ;;  %v10058_v56 = vld [vmem:[#allocation61_spill] sm:$0xff] }
0x1385   : > { %4609 = vmatpush.msra.mxu0 %v4136_v42  ;;  %4663 = vmatpush.msra.mxu3 %v4424_v9  ;;  %v4422_v18 = vsel %vm764_vm6, %v10049_v58, %v5996_v48  ;;  %v4024_v15 = vsel %vm696_vm14, %v10052_v17, %v5731_v47  ;;  %v10055_v8 = vunpack.i.h.bf16 %v9199_v11  ;;  %v6014_v42 = vpop.permute.xlu2 %6013  ;;  %v10057_v9 = vld [vmem:[#allocation83_spill] sm:$0xff]  ;;  %v4418_v11 = vsel %vm764_vm6, %v5916_v31, %v5991_v35  ;;  %v10063_v35 = vld [vmem:[#allocation62_spill] sm:$0xff] }
0x1386   : > { %v4026_v53 = vsel %vm696_vm14, %v10046_v54, %v5780_v4  ;;  %4639 = vmatpush.msra.mxu2 %v4306_v46  ;;  %v10053_v4 = vunpack.i.l.bf16 %v9106_v63  ;;  %v4240_v48 = vsel %vm736_vm8, %v10054_v37, %v5980_v52  ;;  %v10056_v63 = vunpack.i.h.bf16 %v9269_v33  ;;  %v10059_v52 = vld [vmem:[#allocation74_spill] sm:$0xff] }
0x1387   : > { %4589 = vmatpush.msra.mxu1 %v4026_v53  ;;  %4610 = vmatpush.msra.mxu0 %v4134_v21  ;;  %v4420_v45 = vsel %vm764_vm6, %v10055_v8, %v5990_v20  ;;  %v6004_v30 = vpop.permute.xlu0 %6003  ;;  %v5666_v20 = vunpack.i.h.bf16 %v10059_v52  ;;  %v5896_v62 = vunpack.i.h.bf16 %v9201_v3  ;;  %v10060_v33 = vunpack.i.l.bf16 %v10050_v40  ;;  %v10065_v40 = vld [vmem:[#allocation85_spill] sm:$0xff]  ;;  %v10072_v8 = vld [vmem:[#allocation80_spill] sm:$0xff] }
0x1388   : > { %4664 = vmatpush.msra.mxu3 %v4422_v18  ;;  %v4132_v2 = vsel %vm719_vm9, %v10053_v4, %v5816_v38  ;;  %4640 = vmatpush.msra.mxu2 %v4240_v48  ;;  %v4238_v47 = vsel %vm736_vm8, %v10056_v63, %v5981_v25  ;;  %v5986_v38 = vunpack.i.h.bf16 %v9591_v0  ;;  %v6006_v23 = vunpack.i.h.bf16 %v6004_v30  ;;  %v6009_v46 = vpop.permute.xlu1 %6008  ;;  %v10064_v18 = vld [vmem:[#allocation79_spill] sm:$0xff]  ;;  %v3506_v4 = vld [vmem:[#allocation16 + $0x18] sm:$0xff]  ;;  %v10071_v48 = vld [vmem:[#allocation78_spill] sm:$0xff] }
0x1389   : > { %4590 = vmatpush.msra.mxu1 %v4024_v15  ;;  %4611 = vmatpush.msra.mxu0 %v4132_v2  ;;  %v6005_v44 = vunpack.i.l.bf16 %v6004_v30  ;;  %v4020_v0 = vsel %vm696_vm14, %v10060_v33, %v5661_v59  ;;  %v10061_v25 = vunpack.i.l.bf16 %v10051_v13  ;;  %v6000_v53 = vunpack.i.l.bf16 %v9575_v27  ;;  %v10076_v30 = vld [vmem:[#allocation70_spill] sm:$0xff]  ;;  %v10086_v33 = vld [vmem:[#allocation31_spill] sm:$0xff] }
0x138a   : > { %4665 = vmatpush.msra.mxu3 %v4420_v45  ;;  %4641 = vmatpush.msra.mxu2 %v4238_v47  ;;  %v6015_v51 = vunpack.i.l.bf16 %v6014_v42  ;;  %v4236_v31 = vsel %vm736_vm8, %v10062_v28, %v5985_v19  ;;  %v5865_v41 = vunpack.i.l.bf16 %v10063_v35  ;;  %v6001_v58 = vunpack.i.h.bf16 %v9575_v27  ;;  %v3505_v45 = vld [vmem:[#allocation16 + $0x10] sm:$0xff]  ;;  %v10077_v47 = vld [vmem:[#allocation39_spill] sm:$0xff] }
0x138b   : > { %4591 = vmatpush.msra.mxu1 %v10057_v9  ;;  %4612 = vmatpush.msra.mxu0 %v10058_v56  ;;  %v4128_v54 = vsel %vm719_vm9, %v10061_v25, %v5736_v6  ;;  %v4416_v21 = vsel %vm764_vm6, %v5931_v55, %v6005_v44  ;;  %v10066_v59 = vunpack.i.h.bf16 %v9184_v26  ;;  %v4414_v5 = vsel %vm764_vm6, %v5946_v50, %v6006_v23  ;;  %v10067_v55 = vld [vmem:[#allocation84_spill] sm:$0xff]  ;;  %v10079_v23 = vld [vmem:[#allocation63_spill] sm:$0xff]  ;;  %v10080_v44 = vld [vmem:[#allocation37_spill] sm:$0xff] }
0x138c   : > { %4666 = vmatpush.msra.mxu3 %v4418_v11  ;;  %4642 = vmatpush.msra.mxu2 %v4236_v31  ;;  %v5806_v13 = vunpack.i.h.bf16 %v10067_v55  ;;  %v10068_v6 = vunpack.i.l.bf16 %v9201_v3  ;;  %v10069_v17 = vunpack.i.l.bf16 %v10059_v52  ;;  %v6010_v26 = vunpack.i.l.bf16 %v6009_v46  ;;  %v3510_v11 = vld [vmem:[#allocation16 + $0x38] sm:$0xf]  ;;  %v10088_v25 = vld [vmem:[#allocation27_spill] sm:$0xff] }
0x138d   : > { %4592 = vmatpush.msra.mxu1 %v4020_v0  ;;  %4613 = vmatpush.msra.mxu0 %v4128_v54  ;;  %v4234_v10 = vsel %vm736_vm8, %v10066_v59, %v5986_v38  ;;  %v4232_v36 = vsel %vm736_vm8, %v5906_v1, %v6000_v53  ;;  %v4412_v50 = vsel %vm764_vm6, %v5971_v16, %v6015_v51  ;;  %v6016_v2 = vunpack.i.h.bf16 %v6014_v42  ;;  %v10075_v42 = vld [vmem:[#allocation65_spill] sm:$0xff]  ;;  %v3511_v38 = vld [vmem:[#allocation16 + $0x40] sm:$0xf] }
0x138e   : > { %4667 = vmatpush.msra.mxu3 %v4416_v21  ;;  %4643 = vmatpush.msra.mxu2 %v4234_v10  ;;  %v3928_v27 = vsel %vm679_vm13, %v10068_v6, %v5896_v62  ;;  %v4124_v15 = vsel %vm719_vm9, %v10069_v17, %v5666_v20  ;;  %v10070_v3 = vunpack.i.h.bf16 %v9223_v7  ;;  %v6011_v37 = vunpack.i.h.bf16 %v6009_v46  ;;  %v10084_v52 = vld [vmem:[#allocation33_spill] sm:$0xff]  ;;  %v3512_v62 = vld [vmem:[#allocation16 + $0x48] sm:$0xf] }
0x138f   : > { %4593 = vmatpush.msra.mxu1 %v10064_v18  ;;  %4614 = vmatpush.msra.mxu0 %v10065_v40  ;;  %v4230_v34 = vsel %vm736_vm8, %v5921_v60, %v6001_v58  ;;  %v5726_v1 = vunpack.i.h.bf16 %v10071_v48  ;;  %v4410_v49 = vsel %vm764_vm6, %v5976_v61, %v6016_v2  ;;  %v10073_v7 = vunpack.i.l.bf16 %v10067_v55  ;;  %v10074_v60 = vld [vmem:[#allocation41_spill] sm:$0xff]  ;;  %v3507_v61 = vld [vmem:[#allocation16 + $0x20] sm:$0xff] }
0x1390   : > { %4668 = vmatpush.msra.mxu3 %v4414_v5  ;;  %4644 = vmatpush.msra.mxu2 %v4232_v36  ;;  %v3926_v19 = vsel %vm679_vm13, %v10070_v3, %v5865_v41  ;;  %v4228_v12 = vsel %vm736_vm8, %v5936_v29, %v6010_v26  ;;  %v4226_v14 = vsel %vm736_vm8, %v5961_v57, %v6011_v37  ;;  %v5656_v63 = vunpack.i.h.bf16 %v10076_v30  ;;  %v10082_v57 = vld [vmem:[#allocation35_spill] sm:$0xff]  ;;  %v10085_v20 = vld [vmem:[#allocation77_spill] sm:$0xff] }
0x1391   : > { %4594 = vmatpush.msra.mxu1 %v3928_v27  ;;  %4615 = vmatpush.msra.mxu0 %v4124_v15  ;;  %v3924_v16 = vsel %vm679_vm13, %v10073_v7, %v5806_v13  ;;  %v10078_v32 = vunpack.i.l.bf16 %v10071_v48  ;;  %v10083_v9 = vunpack.i.l.bf16 %v10076_v30  ;;  %v10087_v0 = vld [vmem:[#allocation29_spill] sm:$0xff] }
0x1392   : > { %4669 = vmatpush.msra.mxu3 %v4412_v50  ;;  %4533 = vmatmul.f32.vlgmr.msrb.gmra.mxu2 %v3506_v4 }
0x1393   : > { %4595 = vmatpush.msra.mxu1 %v3926_v19  ;;  %4616 = vmatpush.msra.mxu0 %v10072_v8  ;;  %v3920_v29 = vsel %vm679_vm13, %v10078_v32, %v5726_v1  ;;  %v3916_v56 = vsel %vm679_vm13, %v10083_v9, %v5656_v63 }
0x1394   : > { %4645 = vmatpush.msra.mxu2 %v4230_v34  ;;  %4670 = vmatpush.msra.mxu3 %v4410_v49 }
0x1395   : > { %4596 = vmatpush.msra.mxu1 %v3924_v16  ;;  %4617 = vmatpush.msra.mxu0 %v10074_v60 }
0x1396   : > { %4646 = vmatpush.msra.mxu2 %v4228_v12  ;;  %4510 = vmatmul.f32.vlgmr.msrb.gmra.mxu0 %v3505_v45 }
0x1397   : > { %4597 = vmatpush.msra.mxu1 %v10075_v42  ;;  %4618 = vmatpush.msra.mxu0 %v10077_v47 }
0x1398   : > { %4647 = vmatpush.msra.mxu2 %v4226_v14  ;;  %4579 = vmatmul.f32.vlgmr.msrb.gmra.mxu3 %v10079_v23 }
0x1399   : > { %4598 = vmatpush.msra.mxu1 %v3920_v29  ;;  %4619 = vmatpush.msra.mxu0 %v10080_v44 }
0x139a   : > { %4916 = vmatmul.msk.f32.vlgmr.msrb.gmra.mxu1 %vm4441_vm0, %v3507_v61  ;;  %4536 = vmatmul.f32.gmra.mxu2 %v3511_v38 }
0x139b   : > { %4599 = vmatpush.msra.mxu1 %v10081_v43  ;;  %4620 = vmatpush.msra.mxu0 %v10082_v57 }
0x139d   : > { %4600 = vmatpush.msra.mxu1 %v3916_v56  ;;  %4621 = vmatpush.msra.mxu0 %v10084_v52 }
0x139e   : > { %4513 = vmatmul.f32.gmra.mxu0 %v3510_v11 }
0x139f   : > { %4601 = vmatpush.msra.mxu1 %v10085_v20  ;;  %4622 = vmatpush.msra.mxu0 %v10086_v33 }
0x13a0   : > { %4582 = vmatmul.f32.gmra.mxu3 %v9550_v24 }
0x13a1   : > { %4623 = vmatpush.msra.mxu0 %v10087_v0 }
0x13a2   : > { %4917 = vmatmul.msk.f32.gmra.mxu1 %vm4441_vm0, %v3512_v62  ;;  %4648 = vmatmul.f32.vlgmr.msra.gmra.mxu2 %v3506_v4 }
0x13a3   : > { %4624 = vmatpush.msra.mxu0 %v10088_v25 }
0x13a6   : > { %4625 = vmatmul.f32.vlgmr.msra.gmra.mxu0 %v3505_v45 }
0x13a8   : > { %4918 = vmatmul.msk.f32.vlgmr.msra.gmra.mxu3 %vm4441_vm0, %v3507_v61 }
0x13aa   : > { %4602 = vmatmul.f32.vlgmr.msra.gmra.mxu1 %v9407_v39  ;;  %4651 = vmatmul.f32.gmra.mxu2 %v3511_v38 }
0x13ae   : > { %4628 = vmatmul.f32.gmra.mxu0 %v3510_v11 }
0x13b0   : > { %4919 = vmatmul.msk.f32.gmra.mxu3 %vm4441_vm0, %v3512_v62 }
0x13b2   : > { %4605 = vmatmul.f32.gmra.mxu1 %v9496_v22 }
0x13d0   : > { %v4465_v24 = vpop.f32.mrf.mxu1 }
0x13e6   : > { %v4488_v54 = vpop.f32.mrf.mxu3 }
0x13e7   : > { %v4489_v51 = vadd.f32 %v4488_v54, %v4465_v24 }
0x13f0   : > { %v4491_v31 = vpop.f32.mrf.mxu3 }
0x13f6   : > { %v4468_v53 = vpop.f32.mrf.mxu1 }
0x13f7   : > { %v4492_v39 = vadd.f32 %v4491_v31, %v4468_v53 }
0x1413   : > { %v4511_v28 = vpop.f32.mrf.mxu0 }
0x1414   : > { %v4512_v21 = vadd.f32 %v4511_v28, %v4489_v51 }
0x1415   : > { %v4534_v35 = vpop.f32.mrf.mxu2 }
0x1416   : > { %v4535_v41 = vadd.f32 %v4534_v35, %v4512_v21 }
0x1417   : > { %v4557_v46 = vpop.f32.mrf.mxu1 }
0x1418   : > { %v4558_v58 = vadd.f32 %v4557_v46, %v4535_v41 }
0x141a   : > { %4678 = vst [vmem:[%s544_s30] sm:$0xff] %v4558_v58 }
0x141b   : > { %v4514_v18 = vpop.f32.mrf.mxu0  ;;  %v4580_v22 = vpop.f32.mrf.mxu3 }
0x141c   : > { %v4515_v40 = vadd.f32 %v4514_v18, %v4492_v39 }
0x141d   : > { %v4537_v59 = vpop.f32.mrf.mxu2 }
0x141e   : > { %v4538_v10 = vadd.f32 %v4537_v59, %v4515_v40 }
0x141f   : > { %v4560_v5 = vpop.f32.mrf.mxu1 }
0x1420   : > { %v4561_v55 = vadd.f32 %v4560_v5, %v4538_v10 }
0x1422   : > { %4680 = vst [vmem:[%s544_s30 + $0x10] sm:$0xf] %v4561_v55 }
0x1423   : > { %v4583_v13 = vpop.f32.mrf.mxu3  ;;  %v4626_v6 = vpop.f32.mrf.mxu0 }
0x1425   : > { %v4649_v17 = vpop.f32.mrf.mxu2 }
0x1427   : > { %v4603_v27 = vpop.f32.mrf.mxu1 }
0x1428   : > { %v4604_v15 = vadd.f32 %v4603_v27, %v4580_v22 }
0x142a   : > { %v4627_v4 = vadd.f32 %v4626_v6, %v4604_v15 }
0x142b   : > { %v4672_v36 = vpop.f32.mrf.mxu3  ;;  %v4629_v3 = vpop.f32.mrf.mxu0 }
0x142c   : > { %v4650_v26 = vadd.f32 %v4649_v17, %v4627_v4 }
0x142d   : > { %v4652_v37 = vpop.f32.mrf.mxu2 }
0x142e   : > { %v4673_v50 = vadd.f32 %v4672_v36, %v4650_v26 }
0x142f   : > { %v4606_v2 = vpop.f32.mrf.mxu1 }
0x1430   : > { %4679 = vst [vmem:[%s544_s30 + $0x8] sm:$0xff] %v4673_v50  ;;  %v4607_v19 = vadd.f32 %v4606_v2, %v4583_v13 }
0x1432   : > { %v4630_v34 = vadd.f32 %v4629_v3, %v4607_v19 }
0x1433   : > { %v4675_v1 = vpop.f32.mrf.mxu3 }
0x1434   : > { %v4653_v48 = vadd.f32 %v4652_v37, %v4630_v34 }
0x1436   : > { %v4676_v8 = vadd.f32 %v4675_v1, %v4653_v48 }
0x1438   : > { %4681 = vst [vmem:[%s544_s30 + $0x18] sm:$0xf] %v4676_v8 }
0x1439 PF: > { %s27_s17 = sadd.s32 1, %s6349_s17  }
0x143a   : > { %p24_p7 = scmp.ge.s32.totalorder %s27_s17, 4  }
0x143c   :  { %26 = sbr.rel (!%p24_p7) target bundleno = 8 (0x8), region = 136 }
0x1441   :  { %4703 = vsyncpa [#allocation3], 1 }
0x1442   :  { %4705 = vsyncpa [#allocation3 + $0x1], 1 }
0x1443   :  { %4706 = vsyncpa [#allocation5], 1 }
0x1444   :  { %4707 = vsyncpa [#allocation8], 1 }
0x1445   :  { %4708 = vsyncpa [#allocation11], 1 }
0x1446   :  { %4709 = vsyncpa [#allocation14], 1 }
0x1447   :  { %4710 = vsyncpa [#allocation17], 1 }

</bundles_post_ra>
